<compile_context>
chip_gen: v7x
topology: tpu7x:2x2x1
jax: 0.10.0
libtpu: 0.0.40
codegen_flags: <defaults>
</compile_context>

<pallas_src>
import jax
import jax.numpy as jnp
from jax.experimental import pallas as pl
from jax.experimental.pallas import tpu as pltpu

EPS = 1e-5
CIN = 216          # input feature count (216 channels x 1 x 1 spatial)

# layer dims: (cin, cout, has_bn)  -- matches the PyTorch module exactly
LAYER_DIMS = [
    (216, 64, True),    # conv1 (+BN +ReLU)
    (64, 64, True),     # residual1.conv1 (+BN +ReLU)
    (64, 64, True),     # residual1.conv2 (+BN), then +identity, ReLU
    (64, 128, True),    # conv2
    (128, 128, True),   # residual2.conv1
    (128, 128, True),   # residual2.conv2
    (128, 256, True),   # conv3
    (256, 256, True),   # residual3.conv1
    (256, 256, True),   # residual3.conv2
    (256, 256, True),   # fc1
    (256, 128, True),   # fc2
    (128, 64, True),    # fc3
    (64, 1, False),     # fc4 (no BN, no ReLU)
]
N_LAYERS = len(LAYER_DIMS)


def dnnr_kernel(x_ref, *refs):
    """Whole network for one batch tile: 12 fused (bf16 matmul + f32 bias
    [+ReLU]) stages, 3 residual adds and the scalar fc4 head, VMEM-resident."""
    w_refs = refs[:N_LAYERS]
    b_refs = refs[N_LAYERS:2 * N_LAYERS]
    o_ref = refs[2 * N_LAYERS]

    def dense(h_bf16, i, relu):
        # bf16 x bf16 on the MXU, f32 accumulation; bias add + ReLU in f32.
        y = jnp.dot(h_bf16, w_refs[i][...], preferred_element_type=jnp.float32)
        y = y + b_refs[i][...]
        return jnp.maximum(y, 0.0) if relu else y

    def bf16(h):
        return h.astype(jnp.bfloat16)

    # In-kernel bf16 cast of the raw f32 input tile (no wrapper pass, no pad).
    x = x_ref[...].astype(jnp.bfloat16)           # (TB, 216)

    # conv1 (+BN+ReLU)
    h = dense(x, 0, True)
    # residual1
    r = dense(bf16(h), 1, True)
    h = jnp.maximum(dense(bf16(r), 2, False) + h, 0.0)
    # conv2
    h = dense(bf16(h), 3, True)
    # residual2
    r = dense(bf16(h), 4, True)
    h = jnp.maximum(dense(bf16(r), 5, False) + h, 0.0)
    # conv3
    h = dense(bf16(h), 6, True)
    # residual3
    r = dense(bf16(h), 7, True)
    h = jnp.maximum(dense(bf16(r), 8, False) + h, 0.0)
    # flatten is a no-op (1x1 spatial); dropout is identity at inference.
    # fc1..fc3 (+BN+ReLU)
    h = dense(bf16(h), 9, True)
    h = dense(bf16(h), 10, True)
    h = dense(bf16(h), 11, True)                  # (TB, 64) f32

    # fc4: scalar head.  Per-row dot against the 64-vector on the VPU/XLU,
    # lane-packing the TB scalars into a (TB//128, 128) tile so the HBM store
    # is lane-dense at 4 B per point.
    tb = h.shape[0]
    h3 = h.reshape(tb // 128, 128, -1)            # leading-dim split: free
    y = jnp.sum(h3 * w_refs[12][...], axis=-1)    # (TB//128, 128) f32
    y = y + b_refs[12][...]                       # (1, 1) broadcast bias
    o_ref[...] = y[None].astype(o_ref.dtype)      # (1, TB//128, 128)


def _round_up(n, m):
    return (n + m - 1) // m * m


def _choose_tb(B, max_tb=1024):
    """Batch tile: multiple of 128 (fills the MXU M dim and keeps the fc4
    lane-packing exact), capped at max_tb, and halved so the parallel grid
    has >= 2 steps (v7x has 2 TensorCores) whenever the batch allows it."""
    bp = _round_up(max(B, 1), 128)
    tb = min(max_tb, bp)
    if bp // tb < 2 and tb > 128:
        tb = _round_up(tb // 2, 128)
    return tb


def dnnr_forward(x_nchw, weights, biases, *, max_tb=1024):
    """x_nchw: (B, 216, 1, 1) float32.
    weights[i]: (in, out) f32 BN-folded; biases[i]: (1, out) f32.
    Returns (B, 1) float32."""
    B = x_nchw.shape[0]
    x2 = x_nchw.reshape(B, CIN).astype(jnp.float32)   # free reshape, raw f32 in

    TB = _choose_tb(B, max_tb)
    Bp = _round_up(B, TB)
    if Bp != B:                                       # only pad when needed
        x2 = jnp.pad(x2, ((0, Bp - B), (0, 0)))
    n_tiles = Bp // TB

    # Param prep: bf16 matmul weights, f32 biases; fc4 becomes an f32 row
    # vector (1, 64) plus a scalar bias (1, 1) for the VPU scalar head.
    w_list, b_list = [], []
    for i, (w, b) in enumerate(zip(weights, biases)):
        if i == N_LAYERS - 1:
            w_list.append(w.reshape(1, -1).astype(jnp.float32))
            b_list.append(b.reshape(1, 1).astype(jnp.float32))
        else:
            w_list.append(w.astype(jnp.bfloat16))
            b_list.append(b.astype(jnp.float32))

    grid = (n_tiles,)
    in_specs = [pl.BlockSpec((TB, CIN), lambda i: (i, 0))]
    # Constant index maps: weights/biases stay VMEM-resident across grid steps.
    in_specs += [pl.BlockSpec(w.shape, lambda i: (0, 0)) for w in w_list]
    in_specs += [pl.BlockSpec(b.shape, lambda i: (0, 0)) for b in b_list]
    # Lane-packed scalar output: (n_tiles, TB//128, 128) f32 == 4 B per point.
    out_spec = pl.BlockSpec((1, TB // 128, 128), lambda i: (i, 0, 0))

    out = pl.pallas_call(
        dnnr_kernel,
        grid=grid,
        in_specs=in_specs,
        out_specs=out_spec,
        out_shape=jax.ShapeDtypeStruct((n_tiles, TB // 128, 128), jnp.float32),
        compiler_params=pltpu.CompilerParams(
            dimension_semantics=("parallel",)),
    )(x2, *w_list, *b_list)

    # Metadata-only reshape + tiny slice (packing preserves batch order).
    return out.reshape(Bp, 1)[:B]


def _fold_bn(W, b, gamma, beta, mean, var):
    """Fold eval-mode BatchNorm into the preceding linear/1x1-conv.
    W: (out, in) torch convention; returns (in, out) weight and (1, out) bias."""
    scale = gamma / jnp.sqrt(var + EPS)
    W_eff = (W * scale[:, None]).T.astype(jnp.float32)
    b_eff = ((b - mean) * scale + beta).reshape(1, -1).astype(jnp.float32)
    return W_eff, b_eff


def init_params(key):
    weights, biases = [], []
    for (cin, cout, has_bn) in LAYER_DIMS:
        key, kw, kb, kg, kbe, km, kv = jax.random.split(key, 7)
        W = 0.1 * jax.random.normal(kw, (cout, cin), jnp.float32)
        b = 0.1 * jax.random.normal(kb, (cout,), jnp.float32)
        if has_bn:
            gamma = jax.random.uniform(kg, (cout,), jnp.float32, 0.5, 1.5)
            beta = 0.1 * jax.random.normal(kbe, (cout,), jnp.float32)
            mean = 0.1 * jax.random.normal(km, (cout,), jnp.float32)
            var = jax.random.uniform(kv, (cout,), jnp.float32, 0.5, 1.5)
            W_eff, b_eff = _fold_bn(W, b, gamma, beta, mean, var)
        else:
            W_eff = W.T.astype(jnp.float32)
            b_eff = b.reshape(1, -1).astype(jnp.float32)
        weights.append(W_eff)
        biases.append(b_eff)
    return weights, biases


def ref_forward(x_nchw, weights, biases):
    """Pure-JAX reference mirroring the kernel's dtype flow (bf16 weights and
    matmul inputs, f32 accumulation / bias / residual / ReLU, f32 fc4 head)."""
    B = x_nchw.shape[0]
    w_bf = [w.astype(jnp.bfloat16) for w in weights[:-1]]
    b_f32 = [b.astype(jnp.float32) for b in biases]

    def dense(h, i, relu):
        y = jnp.dot(h.astype(jnp.bfloat16), w_bf[i],
                    preferred_element_type=jnp.float32) + b_f32[i]
        return jnp.maximum(y, 0.0) if relu else y

    x2 = x_nchw.reshape(B, -1).astype(jnp.float32)
    h = dense(x2, 0, True)
    r = dense(h, 1, True)
    h = jnp.maximum(dense(r, 2, False) + h, 0.0)
    h = dense(h, 3, True)
    r = dense(h, 4, True)
    h = jnp.maximum(dense(r, 5, False) + h, 0.0)
    h = dense(h, 6, True)
    r = dense(h, 7, True)
    h = jnp.maximum(dense(r, 8, False) + h, 0.0)
    h = dense(h, 9, True)
    h = dense(h, 10, True)
    h = dense(h, 11, True)
    # fc4 in f32 (matches the kernel's VPU scalar head).
    return jnp.dot(h, weights[-1].astype(jnp.float32)) + b_f32[-1]


if __name__ == "__main__":
    key = jax.random.PRNGKey(0)
    key, kx = jax.random.split(key)

    B = 2
    # Input must be (B, 216, 1, 1): fc1 expects 256 features after flatten,
    # so the spatial map is 1x1 ("point" network).
    x = jax.random.normal(kx, (B, CIN, 1, 1), jnp.float32)

    weights, biases = init_params(key)

    out = dnnr_forward(x, weights, biases)
    out = jax.block_until_ready(out)

    ref = ref_forward(x, weights, biases)
    assert out.shape == (B, 1)
    assert jnp.allclose(out, ref, rtol=2e-2, atol=2e-2), (out, ref)

    # TODO(synk): training-mode BatchNorm (batch statistics) and dropout
    # sampling are not implemented; this kernel is eval/inference semantics.
    print("KERNEL_OK")
</pallas_src>

<mosaic_0001>
module attributes {stable_mosaic.version = 11 : i64} {
  func.func @dnnr_kernel(%arg0: i32, %arg1: memref<128x216xf32, #tpu.memory_space<vmem>>, %arg2: memref<216x64xbf16, #tpu.memory_space<vmem>>, %arg3: memref<64x64xbf16, #tpu.memory_space<vmem>>, %arg4: memref<64x64xbf16, #tpu.memory_space<vmem>>, %arg5: memref<64x128xbf16, #tpu.memory_space<vmem>>, %arg6: memref<128x128xbf16, #tpu.memory_space<vmem>>, %arg7: memref<128x128xbf16, #tpu.memory_space<vmem>>, %arg8: memref<128x256xbf16, #tpu.memory_space<vmem>>, %arg9: memref<256x256xbf16, #tpu.memory_space<vmem>>, %arg10: memref<256x256xbf16, #tpu.memory_space<vmem>>, %arg11: memref<256x256xbf16, #tpu.memory_space<vmem>>, %arg12: memref<256x128xbf16, #tpu.memory_space<vmem>>, %arg13: memref<128x64xbf16, #tpu.memory_space<vmem>>, %arg14: memref<1x64xf32, #tpu.memory_space<vmem>>, %arg15: memref<1x64xf32, #tpu.memory_space<vmem>>, %arg16: memref<1x64xf32, #tpu.memory_space<vmem>>, %arg17: memref<1x64xf32, #tpu.memory_space<vmem>>, %arg18: memref<1x128xf32, #tpu.memory_space<vmem>>, %arg19: memref<1x128xf32, #tpu.memory_space<vmem>>, %arg20: memref<1x128xf32, #tpu.memory_space<vmem>>, %arg21: memref<1x256xf32, #tpu.memory_space<vmem>>, %arg22: memref<1x256xf32, #tpu.memory_space<vmem>>, %arg23: memref<1x256xf32, #tpu.memory_space<vmem>>, %arg24: memref<1x256xf32, #tpu.memory_space<vmem>>, %arg25: memref<1x128xf32, #tpu.memory_space<vmem>>, %arg26: memref<1x64xf32, #tpu.memory_space<vmem>>, %arg27: memref<1x1xf32, #tpu.memory_space<vmem>>, %arg28: memref<1x1x128xf32, #tpu.memory_space<vmem>>) attributes {dimension_semantics = [#tpu.dimension_semantics<parallel>], iteration_bounds = array<i64: 1>, scalar_prefetch = 0 : i64, scratch_operands = 0 : i64, tpu.core_type = #tpu.core_type<tc>, window_params = [{transform_indices = @transform_0, window_bounds = array<i64: 128, 216>}, {pipeline_mode = #tpu.pipeline_mode<synchronous>, transform_indices = @transform_1, window_bounds = array<i64: 216, 64>}, {pipeline_mode = #tpu.pipeline_mode<synchronous>, transform_indices = @transform_2, window_bounds = array<i64: 64, 64>}, {pipeline_mode = #tpu.pipeline_mode<synchronous>, transform_indices = @transform_3, window_bounds = array<i64: 64, 64>}, {pipeline_mode = #tpu.pipeline_mode<synchronous>, transform_indices = @transform_4, window_bounds = array<i64: 64, 128>}, {pipeline_mode = #tpu.pipeline_mode<synchronous>, transform_indices = @transform_5, window_bounds = array<i64: 128, 128>}, {pipeline_mode = #tpu.pipeline_mode<synchronous>, transform_indices = @transform_6, window_bounds = array<i64: 128, 128>}, {pipeline_mode = #tpu.pipeline_mode<synchronous>, transform_indices = @transform_7, window_bounds = array<i64: 128, 256>}, {pipeline_mode = #tpu.pipeline_mode<synchronous>, transform_indices = @transform_8, window_bounds = array<i64: 256, 256>}, {pipeline_mode = #tpu.pipeline_mode<synchronous>, transform_indices = @transform_9, window_bounds = array<i64: 256, 256>}, {pipeline_mode = #tpu.pipeline_mode<synchronous>, transform_indices = @transform_10, window_bounds = array<i64: 256, 256>}, {pipeline_mode = #tpu.pipeline_mode<synchronous>, transform_indices = @transform_11, window_bounds = array<i64: 256, 128>}, {pipeline_mode = #tpu.pipeline_mode<synchronous>, transform_indices = @transform_12, window_bounds = array<i64: 128, 64>}, {pipeline_mode = #tpu.pipeline_mode<synchronous>, transform_indices = @transform_13, window_bounds = array<i64: 1, 64>}, {pipeline_mode = #tpu.pipeline_mode<synchronous>, transform_indices = @transform_14, window_bounds = array<i64: 1, 64>}, {pipeline_mode = #tpu.pipeline_mode<synchronous>, transform_indices = @transform_15, window_bounds = array<i64: 1, 64>}, {pipeline_mode = #tpu.pipeline_mode<synchronous>, transform_indices = @transform_16, window_bounds = array<i64: 1, 64>}, {pipeline_mode = #tpu.pipeline_mode<synchronous>, transform_indices = @transform_17, window_bounds = array<i64: 1, 128>}, {pipeline_mode = #tpu.pipeline_mode<synchronous>, transform_indices = @transform_18, window_bounds = array<i64: 1, 128>}, {pipeline_mode = #tpu.pipeline_mode<synchronous>, transform_indices = @transform_19, window_bounds = array<i64: 1, 128>}, {pipeline_mode = #tpu.pipeline_mode<synchronous>, transform_indices = @transform_20, window_bounds = array<i64: 1, 256>}, {pipeline_mode = #tpu.pipeline_mode<synchronous>, transform_indices = @transform_21, window_bounds = array<i64: 1, 256>}, {pipeline_mode = #tpu.pipeline_mode<synchronous>, transform_indices = @transform_22, window_bounds = array<i64: 1, 256>}, {pipeline_mode = #tpu.pipeline_mode<synchronous>, transform_indices = @transform_23, window_bounds = array<i64: 1, 256>}, {pipeline_mode = #tpu.pipeline_mode<synchronous>, transform_indices = @transform_24, window_bounds = array<i64: 1, 128>}, {pipeline_mode = #tpu.pipeline_mode<synchronous>, transform_indices = @transform_25, window_bounds = array<i64: 1, 64>}, {pipeline_mode = #tpu.pipeline_mode<synchronous>, transform_indices = @transform_26, window_bounds = array<i64: 1, 1>}, {transform_indices = @transform_27, window_bounds = array<i64: 1, 1, 128>}]} {
    %c0 = arith.constant 0 : index
    %c0_0 = arith.constant 0 : index
    %0 = vector.load %arg1[%c0, %c0_0] : memref<128x216xf32, #tpu.memory_space<vmem>>, vector<128x216xf32>
    %1 = arith.truncf %0 : vector<128x216xf32> to vector<128x216xbf16>
    %c0_1 = arith.constant 0 : index
    %c0_2 = arith.constant 0 : index
    %2 = vector.load %arg2[%c0_1, %c0_2] : memref<216x64xbf16, #tpu.memory_space<vmem>>, vector<216x64xbf16>
    %cst = arith.constant dense<0.000000e+00> : vector<128x64xf32>
    %3 = tpu.matmul %1, %2, %cst {dimension_numbers = #tpu.dot_dimension_numbers<[1], [0], [0], [1], [0, 0, 1, 1], [], []>} : vector<128x216xbf16>, vector<216x64xbf16>, vector<128x64xf32> -> vector<128x64xf32>
    %c0_3 = arith.constant 0 : index
    %c0_4 = arith.constant 0 : index
    %4 = vector.load %arg15[%c0_3, %c0_4] : memref<1x64xf32, #tpu.memory_space<vmem>>, vector<1x64xf32>
    %5 = vector.broadcast %4 : vector<1x64xf32> to vector<128x64xf32>
    %6 = arith.addf %3, %5 : vector<128x64xf32>
    %cst_5 = arith.constant 0.000000e+00 : f32
    %7 = vector.broadcast %cst_5 : f32 to vector<128x64xf32>
    %8 = arith.maximumf %6, %7 : vector<128x64xf32>
    %9 = arith.truncf %8 : vector<128x64xf32> to vector<128x64xbf16>
    %c0_6 = arith.constant 0 : index
    %c0_7 = arith.constant 0 : index
    %10 = vector.load %arg3[%c0_6, %c0_7] : memref<64x64xbf16, #tpu.memory_space<vmem>>, vector<64x64xbf16>
    %cst_8 = arith.constant dense<0.000000e+00> : vector<128x64xf32>
    %11 = tpu.matmul %9, %10, %cst_8 {dimension_numbers = #tpu.dot_dimension_numbers<[1], [0], [0], [1], [0, 0, 1, 1], [], []>} : vector<128x64xbf16>, vector<64x64xbf16>, vector<128x64xf32> -> vector<128x64xf32>
    %c0_9 = arith.constant 0 : index
    %c0_10 = arith.constant 0 : index
    %12 = vector.load %arg16[%c0_9, %c0_10] : memref<1x64xf32, #tpu.memory_space<vmem>>, vector<1x64xf32>
    %13 = vector.broadcast %12 : vector<1x64xf32> to vector<128x64xf32>
    %14 = arith.addf %11, %13 : vector<128x64xf32>
    %cst_11 = arith.constant 0.000000e+00 : f32
    %15 = vector.broadcast %cst_11 : f32 to vector<128x64xf32>
    %16 = arith.maximumf %14, %15 : vector<128x64xf32>
    %17 = arith.truncf %16 : vector<128x64xf32> to vector<128x64xbf16>
    %c0_12 = arith.constant 0 : index
    %c0_13 = arith.constant 0 : index
    %18 = vector.load %arg4[%c0_12, %c0_13] : memref<64x64xbf16, #tpu.memory_space<vmem>>, vector<64x64xbf16>
    %cst_14 = arith.constant dense<0.000000e+00> : vector<128x64xf32>
    %19 = tpu.matmul %17, %18, %cst_14 {dimension_numbers = #tpu.dot_dimension_numbers<[1], [0], [0], [1], [0, 0, 1, 1], [], []>} : vector<128x64xbf16>, vector<64x64xbf16>, vector<128x64xf32> -> vector<128x64xf32>
    %c0_15 = arith.constant 0 : index
    %c0_16 = arith.constant 0 : index
    %20 = vector.load %arg17[%c0_15, %c0_16] : memref<1x64xf32, #tpu.memory_space<vmem>>, vector<1x64xf32>
    %21 = vector.broadcast %20 : vector<1x64xf32> to vector<128x64xf32>
    %22 = arith.addf %19, %21 : vector<128x64xf32>
    %23 = arith.addf %22, %8 : vector<128x64xf32>
    %cst_17 = arith.constant 0.000000e+00 : f32
    %24 = vector.broadcast %cst_17 : f32 to vector<128x64xf32>
    %25 = arith.maximumf %23, %24 : vector<128x64xf32>
    %26 = arith.truncf %25 : vector<128x64xf32> to vector<128x64xbf16>
    %c0_18 = arith.constant 0 : index
    %c0_19 = arith.constant 0 : index
    %27 = vector.load %arg5[%c0_18, %c0_19] : memref<64x128xbf16, #tpu.memory_space<vmem>>, vector<64x128xbf16>
    %cst_20 = arith.constant dense<0.000000e+00> : vector<128x128xf32>
    %28 = tpu.matmul %26, %27, %cst_20 {dimension_numbers = #tpu.dot_dimension_numbers<[1], [0], [0], [1], [0, 0, 1, 1], [], []>} : vector<128x64xbf16>, vector<64x128xbf16>, vector<128x128xf32> -> vector<128x128xf32>
    %c0_21 = arith.constant 0 : index
    %c0_22 = arith.constant 0 : index
    %29 = vector.load %arg18[%c0_21, %c0_22] : memref<1x128xf32, #tpu.memory_space<vmem>>, vector<1x128xf32>
    %30 = vector.broadcast %29 : vector<1x128xf32> to vector<128x128xf32>
    %31 = arith.addf %28, %30 : vector<128x128xf32>
    %cst_23 = arith.constant 0.000000e+00 : f32
    %32 = vector.broadcast %cst_23 : f32 to vector<128x128xf32>
    %33 = arith.maximumf %31, %32 : vector<128x128xf32>
    %34 = arith.truncf %33 : vector<128x128xf32> to vector<128x128xbf16>
    %c0_24 = arith.constant 0 : index
    %c0_25 = arith.constant 0 : index
    %35 = vector.load %arg6[%c0_24, %c0_25] : memref<128x128xbf16, #tpu.memory_space<vmem>>, vector<128x128xbf16>
    %cst_26 = arith.constant dense<0.000000e+00> : vector<128x128xf32>
    %36 = tpu.matmul %34, %35, %cst_26 {dimension_numbers = #tpu.dot_dimension_numbers<[1], [0], [0], [1], [0, 0, 1, 1], [], []>} : vector<128x128xbf16>, vector<128x128xbf16>, vector<128x128xf32> -> vector<128x128xf32>
    %c0_27 = arith.constant 0 : index
    %c0_28 = arith.constant 0 : index
    %37 = vector.load %arg19[%c0_27, %c0_28] : memref<1x128xf32, #tpu.memory_space<vmem>>, vector<1x128xf32>
    %38 = vector.broadcast %37 : vector<1x128xf32> to vector<128x128xf32>
    %39 = arith.addf %36, %38 : vector<128x128xf32>
    %cst_29 = arith.constant 0.000000e+00 : f32
    %40 = vector.broadcast %cst_29 : f32 to vector<128x128xf32>
    %41 = arith.maximumf %39, %40 : vector<128x128xf32>
    %42 = arith.truncf %41 : vector<128x128xf32> to vector<128x128xbf16>
    %c0_30 = arith.constant 0 : index
    %c0_31 = arith.constant 0 : index
    %43 = vector.load %arg7[%c0_30, %c0_31] : memref<128x128xbf16, #tpu.memory_space<vmem>>, vector<128x128xbf16>
    %cst_32 = arith.constant dense<0.000000e+00> : vector<128x128xf32>
    %44 = tpu.matmul %42, %43, %cst_32 {dimension_numbers = #tpu.dot_dimension_numbers<[1], [0], [0], [1], [0, 0, 1, 1], [], []>} : vector<128x128xbf16>, vector<128x128xbf16>, vector<128x128xf32> -> vector<128x128xf32>
    %c0_33 = arith.constant 0 : index
    %c0_34 = arith.constant 0 : index
    %45 = vector.load %arg20[%c0_33, %c0_34] : memref<1x128xf32, #tpu.memory_space<vmem>>, vector<1x128xf32>
    %46 = vector.broadcast %45 : vector<1x128xf32> to vector<128x128xf32>
    %47 = arith.addf %44, %46 : vector<128x128xf32>
    %48 = arith.addf %47, %33 : vector<128x128xf32>
    %cst_35 = arith.constant 0.000000e+00 : f32
    %49 = vector.broadcast %cst_35 : f32 to vector<128x128xf32>
    %50 = arith.maximumf %48, %49 : vector<128x128xf32>
    %51 = arith.truncf %50 : vector<128x128xf32> to vector<128x128xbf16>
    %c0_36 = arith.constant 0 : index
    %c0_37 = arith.constant 0 : index
    %52 = vector.load %arg8[%c0_36, %c0_37] : memref<128x256xbf16, #tpu.memory_space<vmem>>, vector<128x256xbf16>
    %cst_38 = arith.constant dense<0.000000e+00> : vector<128x256xf32>
    %53 = tpu.matmul %51, %52, %cst_38 {dimension_numbers = #tpu.dot_dimension_numbers<[1], [0], [0], [1], [0, 0, 1, 1], [], []>} : vector<128x128xbf16>, vector<128x256xbf16>, vector<128x256xf32> -> vector<128x256xf32>
    %c0_39 = arith.constant 0 : index
    %c0_40 = arith.constant 0 : index
    %54 = vector.load %arg21[%c0_39, %c0_40] : memref<1x256xf32, #tpu.memory_space<vmem>>, vector<1x256xf32>
    %55 = vector.broadcast %54 : vector<1x256xf32> to vector<128x256xf32>
    %56 = arith.addf %53, %55 : vector<128x256xf32>
    %cst_41 = arith.constant 0.000000e+00 : f32
    %57 = vector.broadcast %cst_41 : f32 to vector<128x256xf32>
    %58 = arith.maximumf %56, %57 : vector<128x256xf32>
    %59 = arith.truncf %58 : vector<128x256xf32> to vector<128x256xbf16>
    %c0_42 = arith.constant 0 : index
    %c0_43 = arith.constant 0 : index
    %60 = vector.load %arg9[%c0_42, %c0_43] : memref<256x256xbf16, #tpu.memory_space<vmem>>, vector<256x256xbf16>
    %cst_44 = arith.constant dense<0.000000e+00> : vector<128x256xf32>
    %61 = tpu.matmul %59, %60, %cst_44 {dimension_numbers = #tpu.dot_dimension_numbers<[1], [0], [0], [1], [0, 0, 1, 1], [], []>} : vector<128x256xbf16>, vector<256x256xbf16>, vector<128x256xf32> -> vector<128x256xf32>
    %c0_45 = arith.constant 0 : index
    %c0_46 = arith.constant 0 : index
    %62 = vector.load %arg22[%c0_45, %c0_46] : memref<1x256xf32, #tpu.memory_space<vmem>>, vector<1x256xf32>
    %63 = vector.broadcast %62 : vector<1x256xf32> to vector<128x256xf32>
    %64 = arith.addf %61, %63 : vector<128x256xf32>
    %cst_47 = arith.constant 0.000000e+00 : f32
    %65 = vector.broadcast %cst_47 : f32 to vector<128x256xf32>
    %66 = arith.maximumf %64, %65 : vector<128x256xf32>
    %67 = arith.truncf %66 : vector<128x256xf32> to vector<128x256xbf16>
    %c0_48 = arith.constant 0 : index
    %c0_49 = arith.constant 0 : index
    %68 = vector.load %arg10[%c0_48, %c0_49] : memref<256x256xbf16, #tpu.memory_space<vmem>>, vector<256x256xbf16>
    %cst_50 = arith.constant dense<0.000000e+00> : vector<128x256xf32>
    %69 = tpu.matmul %67, %68, %cst_50 {dimension_numbers = #tpu.dot_dimension_numbers<[1], [0], [0], [1], [0, 0, 1, 1], [], []>} : vector<128x256xbf16>, vector<256x256xbf16>, vector<128x256xf32> -> vector<128x256xf32>
    %c0_51 = arith.constant 0 : index
    %c0_52 = arith.constant 0 : index
    %70 = vector.load %arg23[%c0_51, %c0_52] : memref<1x256xf32, #tpu.memory_space<vmem>>, vector<1x256xf32>
    %71 = vector.broadcast %70 : vector<1x256xf32> to vector<128x256xf32>
    %72 = arith.addf %69, %71 : vector<128x256xf32>
    %73 = arith.addf %72, %58 : vector<128x256xf32>
    %cst_53 = arith.constant 0.000000e+00 : f32
    %74 = vector.broadcast %cst_53 : f32 to vector<128x256xf32>
    %75 = arith.maximumf %73, %74 : vector<128x256xf32>
    %76 = arith.truncf %75 : vector<128x256xf32> to vector<128x256xbf16>
    %c0_54 = arith.constant 0 : index
    %c0_55 = arith.constant 0 : index
    %77 = vector.load %arg11[%c0_54, %c0_55] : memref<256x256xbf16, #tpu.memory_space<vmem>>, vector<256x256xbf16>
    %cst_56 = arith.constant dense<0.000000e+00> : vector<128x256xf32>
    %78 = tpu.matmul %76, %77, %cst_56 {dimension_numbers = #tpu.dot_dimension_numbers<[1], [0], [0], [1], [0, 0, 1, 1], [], []>} : vector<128x256xbf16>, vector<256x256xbf16>, vector<128x256xf32> -> vector<128x256xf32>
    %c0_57 = arith.constant 0 : index
    %c0_58 = arith.constant 0 : index
    %79 = vector.load %arg24[%c0_57, %c0_58] : memref<1x256xf32, #tpu.memory_space<vmem>>, vector<1x256xf32>
    %80 = vector.broadcast %79 : vector<1x256xf32> to vector<128x256xf32>
    %81 = arith.addf %78, %80 : vector<128x256xf32>
    %cst_59 = arith.constant 0.000000e+00 : f32
    %82 = vector.broadcast %cst_59 : f32 to vector<128x256xf32>
    %83 = arith.maximumf %81, %82 : vector<128x256xf32>
    %84 = arith.truncf %83 : vector<128x256xf32> to vector<128x256xbf16>
    %c0_60 = arith.constant 0 : index
    %c0_61 = arith.constant 0 : index
    %85 = vector.load %arg12[%c0_60, %c0_61] : memref<256x128xbf16, #tpu.memory_space<vmem>>, vector<256x128xbf16>
    %cst_62 = arith.constant dense<0.000000e+00> : vector<128x128xf32>
    %86 = tpu.matmul %84, %85, %cst_62 {dimension_numbers = #tpu.dot_dimension_numbers<[1], [0], [0], [1], [0, 0, 1, 1], [], []>} : vector<128x256xbf16>, vector<256x128xbf16>, vector<128x128xf32> -> vector<128x128xf32>
    %c0_63 = arith.constant 0 : index
    %c0_64 = arith.constant 0 : index
    %87 = vector.load %arg25[%c0_63, %c0_64] : memref<1x128xf32, #tpu.memory_space<vmem>>, vector<1x128xf32>
    %88 = vector.broadcast %87 : vector<1x128xf32> to vector<128x128xf32>
    %89 = arith.addf %86, %88 : vector<128x128xf32>
    %cst_65 = arith.constant 0.000000e+00 : f32
    %90 = vector.broadcast %cst_65 : f32 to vector<128x128xf32>
    %91 = arith.maximumf %89, %90 : vector<128x128xf32>
    %92 = arith.truncf %91 : vector<128x128xf32> to vector<128x128xbf16>
    %c0_66 = arith.constant 0 : index
    %c0_67 = arith.constant 0 : index
    %93 = vector.load %arg13[%c0_66, %c0_67] : memref<128x64xbf16, #tpu.memory_space<vmem>>, vector<128x64xbf16>
    %cst_68 = arith.constant dense<0.000000e+00> : vector<128x64xf32>
    %94 = tpu.matmul %92, %93, %cst_68 {dimension_numbers = #tpu.dot_dimension_numbers<[1], [0], [0], [1], [0, 0, 1, 1], [], []>} : vector<128x128xbf16>, vector<128x64xbf16>, vector<128x64xf32> -> vector<128x64xf32>
    %c0_69 = arith.constant 0 : index
    %c0_70 = arith.constant 0 : index
    %95 = vector.load %arg26[%c0_69, %c0_70] : memref<1x64xf32, #tpu.memory_space<vmem>>, vector<1x64xf32>
    %96 = vector.broadcast %95 : vector<1x64xf32> to vector<128x64xf32>
    %97 = arith.addf %94, %96 : vector<128x64xf32>
    %cst_71 = arith.constant 0.000000e+00 : f32
    %98 = vector.broadcast %cst_71 : f32 to vector<128x64xf32>
    %99 = arith.maximumf %97, %98 : vector<128x64xf32>
    %100 = vector.shape_cast %99 : vector<128x64xf32> to vector<1x128x64xf32>
    %c0_72 = arith.constant 0 : index
    %c0_73 = arith.constant 0 : index
    %101 = vector.load %arg14[%c0_72, %c0_73] : memref<1x64xf32, #tpu.memory_space<vmem>>, vector<1x64xf32>
    %102 = vector.shape_cast %101 : vector<1x64xf32> to vector<1x1x64xf32>
    %103 = vector.broadcast %102 : vector<1x1x64xf32> to vector<1x128x64xf32>
    %104 = arith.mulf %100, %103 : vector<1x128x64xf32>
    %cst_74 = arith.constant dense<0.000000e+00> : vector<1x128xf32>
    %105 = vector.multi_reduction <add>, %104, %cst_74 [2] : vector<1x128x64xf32> to vector<1x128xf32>
    %c0_75 = arith.constant 0 : index
    %c0_76 = arith.constant 0 : index
    %106 = vector.load %arg27[%c0_75, %c0_76] : memref<1x1xf32, #tpu.memory_space<vmem>>, vector<1x1xf32>
    %107 = vector.broadcast %106 : vector<1x1xf32> to vector<1x128xf32>
    %108 = arith.addf %105, %107 : vector<1x128xf32>
    %109 = vector.shape_cast %108 : vector<1x128xf32> to vector<1x1x128xf32>
    %c0_77 = arith.constant 0 : index
    %c0_78 = arith.constant 0 : index
    %c0_79 = arith.constant 0 : index
    %110 = vector.load %arg28[%c0_77, %c0_78, %c0_79] : memref<1x1x128xf32, #tpu.memory_space<vmem>>, vector<1x1x128xf32>
    tpu.vector_store %arg28[%c0_77, %c0_78, %c0_79], %109 {strides = array<i32>} : memref<1x1x128xf32, #tpu.memory_space<vmem>>, vector<1x1x128xf32>,
    return
  }
  func.func @transform_0(%arg0: i32) -> (i32, i32) {
    %c0_i32 = arith.constant 0 : i32
    %c0_i32_0 = arith.constant 0 : i32
    return %arg0, %c0_i32 : i32, i32
  }
  func.func @transform_1(%arg0: i32) -> (i32, i32) {
    %c0_i32 = arith.constant 0 : i32
    %c0_i32_0 = arith.constant 0 : i32
    %c0_i32_1 = arith.constant 0 : i32
    return %c0_i32, %c0_i32_0 : i32, i32
  }
  func.func @transform_2(%arg0: i32) -> (i32, i32) {
    %c0_i32 = arith.constant 0 : i32
    %c0_i32_0 = arith.constant 0 : i32
    %c0_i32_1 = arith.constant 0 : i32
    return %c0_i32, %c0_i32_0 : i32, i32
  }
  func.func @transform_3(%arg0: i32) -> (i32, i32) {
    %c0_i32 = arith.constant 0 : i32
    %c0_i32_0 = arith.constant 0 : i32
    %c0_i32_1 = arith.constant 0 : i32
    return %c0_i32, %c0_i32_0 : i32, i32
  }
  func.func @transform_4(%arg0: i32) -> (i32, i32) {
    %c0_i32 = arith.constant 0 : i32
    %c0_i32_0 = arith.constant 0 : i32
    %c0_i32_1 = arith.constant 0 : i32
    return %c0_i32, %c0_i32_0 : i32, i32
  }
  func.func @transform_5(%arg0: i32) -> (i32, i32) {
    %c0_i32 = arith.constant 0 : i32
    %c0_i32_0 = arith.constant 0 : i32
    %c0_i32_1 = arith.constant 0 : i32
    return %c0_i32, %c0_i32_0 : i32, i32
  }
  func.func @transform_6(%arg0: i32) -> (i32, i32) {
    %c0_i32 = arith.constant 0 : i32
    %c0_i32_0 = arith.constant 0 : i32
    %c0_i32_1 = arith.constant 0 : i32
    return %c0_i32, %c0_i32_0 : i32, i32
  }
  func.func @transform_7(%arg0: i32) -> (i32, i32) {
    %c0_i32 = arith.constant 0 : i32
    %c0_i32_0 = arith.constant 0 : i32
    %c0_i32_1 = arith.constant 0 : i32
    return %c0_i32, %c0_i32_0 : i32, i32
  }
  func.func @transform_8(%arg0: i32) -> (i32, i32) {
    %c0_i32 = arith.constant 0 : i32
    %c0_i32_0 = arith.constant 0 : i32
    %c0_i32_1 = arith.constant 0 : i32
    return %c0_i32, %c0_i32_0 : i32, i32
  }
  func.func @transform_9(%arg0: i32) -> (i32, i32) {
    %c0_i32 = arith.constant 0 : i32
    %c0_i32_0 = arith.constant 0 : i32
    %c0_i32_1 = arith.constant 0 : i32
    return %c0_i32, %c0_i32_0 : i32, i32
  }
  func.func @transform_10(%arg0: i32) -> (i32, i32) {
    %c0_i32 = arith.constant 0 : i32
    %c0_i32_0 = arith.constant 0 : i32
    %c0_i32_1 = arith.constant 0 : i32
    return %c0_i32, %c0_i32_0 : i32, i32
  }
  func.func @transform_11(%arg0: i32) -> (i32, i32) {
    %c0_i32 = arith.constant 0 : i32
    %c0_i32_0 = arith.constant 0 : i32
    %c0_i32_1 = arith.constant 0 : i32
    return %c0_i32, %c0_i32_0 : i32, i32
  }
  func.func @transform_12(%arg0: i32) -> (i32, i32) {
    %c0_i32 = arith.constant 0 : i32
    %c0_i32_0 = arith.constant 0 : i32
    %c0_i32_1 = arith.constant 0 : i32
    return %c0_i32, %c0_i32_0 : i32, i32
  }
  func.func @transform_13(%arg0: i32) -> (i32, i32) {
    %c0_i32 = arith.constant 0 : i32
    %c0_i32_0 = arith.constant 0 : i32
    %c0_i32_1 = arith.constant 0 : i32
    return %c0_i32, %c0_i32_0 : i32, i32
  }
  func.func @transform_14(%arg0: i32) -> (i32, i32) {
    %c0_i32 = arith.constant 0 : i32
    %c0_i32_0 = arith.constant 0 : i32
    %c0_i32_1 = arith.constant 0 : i32
    return %c0_i32, %c0_i32_0 : i32, i32
  }
  func.func @transform_15(%arg0: i32) -> (i32, i32) {
    %c0_i32 = arith.constant 0 : i32
    %c0_i32_0 = arith.constant 0 : i32
    %c0_i32_1 = arith.constant 0 : i32
    return %c0_i32, %c0_i32_0 : i32, i32
  }
  func.func @transform_16(%arg0: i32) -> (i32, i32) {
    %c0_i32 = arith.constant 0 : i32
    %c0_i32_0 = arith.constant 0 : i32
    %c0_i32_1 = arith.constant 0 : i32
    return %c0_i32, %c0_i32_0 : i32, i32
  }
  func.func @transform_17(%arg0: i32) -> (i32, i32) {
    %c0_i32 = arith.constant 0 : i32
    %c0_i32_0 = arith.constant 0 : i32
    %c0_i32_1 = arith.constant 0 : i32
    return %c0_i32, %c0_i32_0 : i32, i32
  }
  func.func @transform_18(%arg0: i32) -> (i32, i32) {
    %c0_i32 = arith.constant 0 : i32
    %c0_i32_0 = arith.constant 0 : i32
    %c0_i32_1 = arith.constant 0 : i32
    return %c0_i32, %c0_i32_0 : i32, i32
  }
  func.func @transform_19(%arg0: i32) -> (i32, i32) {
    %c0_i32 = arith.constant 0 : i32
    %c0_i32_0 = arith.constant 0 : i32
    %c0_i32_1 = arith.constant 0 : i32
    return %c0_i32, %c0_i32_0 : i32, i32
  }
  func.func @transform_20(%arg0: i32) -> (i32, i32) {
    %c0_i32 = arith.constant 0 : i32
    %c0_i32_0 = arith.constant 0 : i32
    %c0_i32_1 = arith.constant 0 : i32
    return %c0_i32, %c0_i32_0 : i32, i32
  }
  func.func @transform_21(%arg0: i32) -> (i32, i32) {
    %c0_i32 = arith.constant 0 : i32
    %c0_i32_0 = arith.constant 0 : i32
    %c0_i32_1 = arith.constant 0 : i32
    return %c0_i32, %c0_i32_0 : i32, i32
  }
  func.func @transform_22(%arg0: i32) -> (i32, i32) {
    %c0_i32 = arith.constant 0 : i32
    %c0_i32_0 = arith.constant 0 : i32
    %c0_i32_1 = arith.constant 0 : i32
    return %c0_i32, %c0_i32_0 : i32, i32
  }
  func.func @transform_23(%arg0: i32) -> (i32, i32) {
    %c0_i32 = arith.constant 0 : i32
    %c0_i32_0 = arith.constant 0 : i32
    %c0_i32_1 = arith.constant 0 : i32
    return %c0_i32, %c0_i32_0 : i32, i32
  }
  func.func @transform_24(%arg0: i32) -> (i32, i32) {
    %c0_i32 = arith.constant 0 : i32
    %c0_i32_0 = arith.constant 0 : i32
    %c0_i32_1 = arith.constant 0 : i32
    return %c0_i32, %c0_i32_0 : i32, i32
  }
  func.func @transform_25(%arg0: i32) -> (i32, i32) {
    %c0_i32 = arith.constant 0 : i32
    %c0_i32_0 = arith.constant 0 : i32
    %c0_i32_1 = arith.constant 0 : i32
    return %c0_i32, %c0_i32_0 : i32, i32
  }
  func.func @transform_26(%arg0: i32) -> (i32, i32) {
    %c0_i32 = arith.constant 0 : i32
    %c0_i32_0 = arith.constant 0 : i32
    %c0_i32_1 = arith.constant 0 : i32
    return %c0_i32, %c0_i32_0 : i32, i32
  }
  func.func @transform_27(%arg0: i32) -> (i32, i32, i32) {
    %c0_i32 = arith.constant 0 : i32
    %c0_i32_0 = arith.constant 0 : i32
    %c0_i32_1 = arith.constant 0 : i32
    return %arg0, %c0_i32, %c0_i32_0 : i32, i32, i32
  }
}

</mosaic_0001>

<bundles_post_ra>
// kernel: tpu_custom_call.1
= control target key start
LH: loop header
LB: loop body
LE: loop exit
PB: predicated region body
PF: predicated region fallthrough
CT: control target
= control target key end

     0   :  { %s6147_s0 = inlined_call_operand.vmem [shape: f32[128,216], index: 0, kind: input, shape index: {}]   ;;  %s6148_s1 = inlined_call_operand.vmem [shape: bf16[216,64], index: 1, kind: input, shape index: {}]   ;;  %s6149_s2 = inlined_call_operand.hbm [shape: bf16[64,64], index: 2, kind: input, shape index: {}]   ;;  %s6150_s3 = inlined_call_operand.hbm [shape: bf16[64,64], index: 3, kind: input, shape index: {}]   ;;  %s6151_s4 = inlined_call_operand.hbm [shape: bf16[64,128], index: 4, kind: input, shape index: {}]   ;;  %s6152_s5 = inlined_call_operand.hbm [shape: bf16[128,128], index: 5, kind: input, shape index: {}]   ;;  %s6153_s6 = inlined_call_operand.hbm [shape: bf16[128,128], index: 6, kind: input, shape index: {}]   ;;  %s6154_s7 = inlined_call_operand.hbm [shape: bf16[128,256], index: 7, kind: input, shape index: {}]   ;;  %s6155_s8 = inlined_call_operand.vmem [shape: bf16[256,256], index: 8, kind: input, shape index: {}]   ;;  %s6156_s9 = inlined_call_operand.vmem [shape: bf16[256,256], index: 9, kind: input, shape index: {}]   ;;  %s6157_s10 = inlined_call_operand.vmem [shape: bf16[256,256], index: 10, kind: input, shape index: {}]   ;;  %s6158_s11 = inlined_call_operand.hbm [shape: bf16[256,128], index: 11, kind: input, shape index: {}]   ;;  %s6159_s12 = inlined_call_operand.vmem [shape: bf16[128,64], index: 12, kind: input, shape index: {}]   ;;  %s6160_s13 = inlined_call_operand.vmem [shape: f32[1,64], index: 13, kind: input, shape index: {}]   ;;  %s6161_s14 = inlined_call_operand.vmem [shape: f32[1,64], index: 14, kind: input, shape index: {}]   ;;  %s6162_s15 = inlined_call_operand.vmem [shape: f32[1,64], index: 15, kind: input, shape index: {}]   ;;  %s6163_s16 = inlined_call_operand.vmem [shape: f32[1,64], index: 16, kind: input, shape index: {}]   ;;  %s6164_s17 = inlined_call_operand.vmem [shape: f32[1,128], index: 17, kind: input, shape index: {}]   ;;  %s6165_s18 = inlined_call_operand.vmem [shape: f32[1,128], index: 18, kind: input, shape index: {}]   ;;  %s6166_s19 = inlined_call_operand.vmem [shape: f32[1,128], index: 19, kind: input, shape index: {}]   ;;  %s6167_s20 = inlined_call_operand.vmem [shape: f32[1,256], index: 20, kind: input, shape index: {}]   ;;  %s6168_s21 = inlined_call_operand.vmem [shape: f32[1,256], index: 21, kind: input, shape index: {}]   ;;  %s6169_s22 = inlined_call_operand.vmem [shape: f32[1,256], index: 22, kind: input, shape index: {}]   ;;  %s6170_s23 = inlined_call_operand.vmem [shape: f32[1,256], index: 23, kind: input, shape index: {}]   ;;  %s6171_s24 = inlined_call_operand.vmem [shape: f32[1,128], index: 24, kind: input, shape index: {}]   ;;  %s6172_s25 = inlined_call_operand.vmem [shape: f32[1,64], index: 25, kind: input, shape index: {}]   ;;  %s6173_s26 = inlined_call_operand.<no memory space> [shape: f32[1,1], index: 26, kind: input, shape index: {}]   ;;  %s6174_s27 = inlined_call_operand.hbm [shape: f32[1,1,128], index: 27, kind: output, shape index: {}]  }
   0x1   :  { %6217 = sst [smem:[#allocation21_spill]] %s6147_s0  ;;  %v32_v0 = vstv %s6173_s26 }
   0x2   :  { %6218 = sst [smem:[#allocation22_spill]] %s6148_s1  ;;  %33 = vst [vmem:[#allocation2] sm:$0x1] %v32_v0 }
   0x3   :  { %6219 = sst [smem:[#allocation23_spill]] %s6149_s2 }
   0x4   :  { %6220 = sst [smem:[#allocation24_spill]] %s6150_s3 }
   0x5   :  { %6221 = sst [smem:[#allocation25_spill]] %s6151_s4 }
   0x6   :  { %6222 = sst [smem:[#allocation26_spill]] %s6152_s5 }
   0x7   :  { %6223 = sst [smem:[#allocation27_spill]] %s6153_s6 }
   0x8   :  { %6224 = sst [smem:[#allocation28_spill]] %s6154_s7 }
   0x9   :  { %6225 = sst [smem:[#allocation29_spill]] %s6155_s8 }
   0xa   :  { %6226 = sst [smem:[#allocation30_spill]] %s6156_s9 }
   0xb   :  { %6227 = sst [smem:[#allocation31_spill]] %s6157_s10 }
   0xc   :  { %6228 = sst [smem:[#allocation32_spill]] %s6158_s11 }
   0xd   :  { %6229 = sst [smem:[#allocation33_spill]] %s6160_s13 }
   0xe   :  { %6230 = sst [smem:[#allocation34_spill]] %s6174_s27 }
   0xf   :  { %34 = vsyncpa [#allocation4], 0 }
  0x10   :  { %35 = vsyncpa [#allocation7], 0 }
  0x11   :  { %36 = vsyncpa [#allocation10], 0 }
  0x12   :  { %37 = vsyncpa [#allocation13], 0 }
  0x13   :  { %38 = vsyncpa [#allocation5], 0  ;;  %s4517_s8 = smov [#allocation6]   ;;  %s4518_s9 = smov [#allocation9]  }
  0x14   :  { %s60_s30 = sshll.u32 %s4517_s8, 4  ;;  %s84_s5 = sshll.u32 %s4518_s9, 4  ;;  %s61_s30 = int_to_ptr.vmem [resolvable:$true] %s60_s30  ;;  %s4673_s5 = int_to_ptr.vmem [resolvable:$true] %s84_s5 }
  0x15   :  { %s6231_s10 = sld [smem:[#allocation24_spill]] }
  0x1b   :  { %s4331_s29 = scalar_lea.hbm %s6231_s10, 512 }
  0x1c   :  { %p4332_p0 = scmp.ne.s32.totalorder %s6231_s10, %s4331_s29  ;;  %p4335_p1 = scmp.lt.u32.totalorder %s4331_s29, %s6231_s10 }
  0x1e   :  { %p4337_p2 = pnand %p4335_p1, %p4332_p0 }
  0x20   :  { %4340 = shalt.err (!%p4337_p2)
}
  0x21   :  { %s4341_s2 = scalar_lea.vmem %s61_s30, 512  ;;  %p4346_p4 = scmp.lt.s32.totalorder %s61_s30, %s61_s30 }
  0x22   :  { %p4342_p3 = scmp.ne.s32.totalorder %s61_s30, %s4341_s2  ;;  %p4347_p5 = scmp.lt.s32.totalorder %s4341_s2, %s4341_s2 }
  0x24   :  { %p4348_p6 = por %p4347_p5, %p4346_p4 }
  0x26   :  { %p4349_p7 = pnand %p4348_p6, %p4342_p3 }
  0x28   :  { %4352 = shalt.err (!%p4349_p7)
}
  0x29   :  { %s6188_s3 = smov 64   ;;  %s6190_s7 = smov 4  }
  0x2a   :  { %66 = dma.hbm_to_vmem [thread:$0]  %s6231_s10, 512, %s61_s30, [#allocation7], %s6188_s3, %s6188_s3, %s6190_s7  }
  0x2b   :  { %s6232_s0 = sld [smem:[#allocation26_spill]] }
  0x31   :  { %s4353_s29 = scalar_lea.hbm %s6232_s0, 1024 }
  0x32   :  { %p4354_p8 = scmp.ne.s32.totalorder %s6232_s0, %s4353_s29  ;;  %p4357_p9 = scmp.lt.u32.totalorder %s4353_s29, %s6232_s0 }
  0x34   :  { %p4359_p10 = pnand %p4357_p9, %p4354_p8 }
  0x36   :  { %4362 = shalt.err (!%p4359_p10)
}
  0x37   :  { %s4363_s2 = scalar_lea.vmem %s4673_s5, 1024  ;;  %p4368_p12 = scmp.lt.s32.totalorder %s4673_s5, %s4673_s5 }
  0x38   :  { %p4364_p11 = scmp.ne.s32.totalorder %s4673_s5, %s4363_s2  ;;  %p4369_p13 = scmp.lt.s32.totalorder %s4363_s2, %s4363_s2 }
  0x3a   :  { %p4370_p0 = por %p4369_p13, %p4368_p12 }
  0x3c   :  { %p4371_p1 = pnand %p4370_p0, %p4364_p11 }
  0x3e   :  { %4374 = shalt.err (!%p4371_p1)
}
  0x3f   :  { %90 = dma.hbm_to_vmem [thread:$0]  %s6232_s0, 1024, %s4673_s5, [#allocation10], %s6188_s3, %s6188_s3, %s6190_s7  }
  0x40   :  { %s4521_s4 = smov [#allocation12]   ;;  %s6233_s29 = sld [smem:[#allocation28_spill]] }
  0x41   :  { %s108_s8 = sshll.u32 %s4521_s4, 4  ;;  %s109_s8 = int_to_ptr.vmem [resolvable:$true] %s108_s8 }
  0x46   :  { %s4375_s1 = scalar_lea.hbm %s6233_s29, 2048 }
  0x47   :  { %p4376_p2 = scmp.ne.s32.totalorder %s6233_s29, %s4375_s1  ;;  %p4379_p3 = scmp.lt.u32.totalorder %s4375_s1, %s6233_s29 }
  0x49   :  { %p4381_p4 = pnand %p4379_p3, %p4376_p2 }
  0x4b   :  { %4384 = shalt.err (!%p4381_p4)
}
  0x4c   :  { %s4385_s27 = scalar_lea.vmem %s109_s8, 2048  ;;  %p4390_p6 = scmp.lt.s32.totalorder %s109_s8, %s109_s8 }
  0x4d   :  { %p4386_p5 = scmp.ne.s32.totalorder %s109_s8, %s4385_s27  ;;  %p4391_p7 = scmp.lt.s32.totalorder %s4385_s27, %s4385_s27 }
  0x4f   :  { %p4392_p8 = por %p4391_p7, %p4390_p6 }
  0x51   :  { %p4393_p9 = pnand %p4392_p8, %p4386_p5 }
  0x53   :  { %4396 = shalt.err (!%p4393_p9)
}
  0x54   :  { %s4522_s5 = smov 128   ;;  %s4523_s0 = smov 8  }
  0x55   :  { %114 = dma.hbm_to_vmem [thread:$0]  %s6233_s29, 2048, %s109_s8, [#allocation13], %s4522_s5, %s4522_s5, %s4523_s0  }
  0x56   :  { %s4524_s4 = smov [#allocation3]   ;;  %s4525_s28 = smov [#allocation8]  }
  0x57   :  { %s48_s9 = sshll.u32 %s4524_s4, 4  ;;  %s72_s1 = sshll.u32 %s4525_s28, 4  ;;  %s49_s9 = int_to_ptr.vmem [resolvable:$true] %s48_s9  ;;  %s73_s1 = int_to_ptr.vmem [resolvable:$true] %s72_s1 }
  0x58   :  { %s6234_s11 = sld [smem:[#allocation23_spill]] }
  0x5e   :  { %s4397_s2 = scalar_lea.hbm %s6234_s11, 512 }
  0x5f   :  { %p4398_p10 = scmp.ne.s32.totalorder %s6234_s11, %s4397_s2  ;;  %p4401_p11 = scmp.lt.u32.totalorder %s4397_s2, %s6234_s11 }
  0x61   :  { %p4403_p12 = pnand %p4401_p11, %p4398_p10 }
  0x63   :  { %4406 = shalt.err (!%p4403_p12)
}
  0x64   :  { %s4407_s8 = scalar_lea.vmem %s49_s9, 512  ;;  %p4412_p0 = scmp.lt.s32.totalorder %s49_s9, %s49_s9 }
  0x65   :  { %p4408_p13 = scmp.ne.s32.totalorder %s49_s9, %s4407_s8  ;;  %p4413_p1 = scmp.lt.s32.totalorder %s4407_s8, %s4407_s8 }
  0x67   :  { %p4414_p2 = por %p4413_p1, %p4412_p0 }
  0x69   :  { %p4415_p3 = pnand %p4414_p2, %p4408_p13 }
  0x6b   :  { %4418 = shalt.err (!%p4415_p3)
}
  0x6c   :  { %s6235_s29 = smov 4   ;;  %s6236_s5 = smov 64  }
  0x6d   :  { %54 = dma.hbm_to_vmem [thread:$0]  %s6234_s11, 512, %s49_s9, [#allocation4], %s6236_s5, %s6236_s5, %s6235_s29  }
  0x6e   :  { %s6237_s7 = sld [smem:[#allocation25_spill]] }
  0x74   :  { %s4419_s10 = scalar_lea.hbm %s6237_s7, 512 }
  0x75   :  { %p4420_p4 = scmp.ne.s32.totalorder %s6237_s7, %s4419_s10  ;;  %p4423_p5 = scmp.lt.u32.totalorder %s4419_s10, %s6237_s7 }
  0x77   :  { %p4425_p6 = pnand %p4423_p5, %p4420_p4 }
  0x79   :  { %4428 = shalt.err (!%p4425_p6)
}
  0x7a   :  { %s4429_s2 = scalar_lea.vmem %s73_s1, 512  ;;  %p4434_p8 = scmp.lt.s32.totalorder %s73_s1, %s73_s1 }
  0x7b   :  { %p4430_p7 = scmp.ne.s32.totalorder %s73_s1, %s4429_s2  ;;  %p4435_p9 = scmp.lt.s32.totalorder %s4429_s2, %s4429_s2 }
  0x7d   :  { %p4436_p10 = por %p4435_p9, %p4434_p8 }
  0x7f   :  { %p4437_p11 = pnand %p4436_p10, %p4430_p7 }
  0x81   :  { %4440 = shalt.err (!%p4437_p11)
}
  0x82   :  { %78 = dma.hbm_to_vmem [thread:$0]  %s6237_s7, 512, %s73_s1, [#allocation7], %s6236_s5, %s6236_s5, %s6235_s29  }
  0x83   :  { %s4526_s27 = smov [#allocation11]   ;;  %s4527_s0 = smov [#allocation14]  }
  0x84   :  { %s96_s8 = sshll.u32 %s4526_s27, 4  ;;  %s126_s30 = sshll.u32 %s4527_s0, 4  ;;  %s97_s8 = int_to_ptr.vmem [resolvable:$true] %s96_s8  ;;  %s127_s30 = int_to_ptr.vmem [resolvable:$true] %s126_s30 }
  0x85   :  { %s6238_s10 = sld [smem:[#allocation27_spill]] }
  0x8b   :  { %s4441_s4 = scalar_lea.hbm %s6238_s10, 1024 }
  0x8c   :  { %p4442_p12 = scmp.ne.s32.totalorder %s6238_s10, %s4441_s4  ;;  %p4445_p13 = scmp.lt.u32.totalorder %s4441_s4, %s6238_s10 }
  0x8e   :  { %p4447_p0 = pnand %p4445_p13, %p4442_p12 }
  0x90   :  { %4450 = shalt.err (!%p4447_p0)
}
  0x91   :  { %s4451_s1 = scalar_lea.vmem %s97_s8, 1024  ;;  %p4456_p2 = scmp.lt.s32.totalorder %s97_s8, %s97_s8 }
  0x92   :  { %p4452_p1 = scmp.ne.s32.totalorder %s97_s8, %s4451_s1  ;;  %p4457_p3 = scmp.lt.s32.totalorder %s4451_s1, %s4451_s1 }
  0x94   :  { %p4458_p4 = por %p4457_p3, %p4456_p2 }
  0x96   :  { %p4459_p5 = pnand %p4458_p4, %p4452_p1 }
  0x98   :  { %4462 = shalt.err (!%p4459_p5)
}
  0x99   :  { %102 = dma.hbm_to_vmem [thread:$0]  %s6238_s10, 1024, %s97_s8, [#allocation10], %s6236_s5, %s6236_s5, %s6235_s29  }
  0x9a   :  { %s6239_s0 = sld [smem:[#allocation32_spill]] }
  0xa0   :  { %s4463_s3 = scalar_lea.hbm %s6239_s0, 2048 }
  0xa1   :  { %p4464_p6 = scmp.ne.s32.totalorder %s6239_s0, %s4463_s3  ;;  %p4467_p7 = scmp.lt.u32.totalorder %s4463_s3, %s6239_s0 }
  0xa3   :  { %p4469_p8 = pnand %p4467_p7, %p4464_p6 }
  0xa5   :  { %4472 = shalt.err (!%p4469_p8)
}
  0xa6   :  { %s4473_s26 = scalar_lea.vmem %s127_s30, 2048  ;;  %p4478_p10 = scmp.lt.s32.totalorder %s127_s30, %s127_s30 }
  0xa7   :  { %p4474_p9 = scmp.ne.s32.totalorder %s127_s30, %s4473_s26  ;;  %p4479_p11 = scmp.lt.s32.totalorder %s4473_s26, %s4473_s26 }
  0xa9   :  { %p4480_p12 = por %p4479_p11, %p4478_p10 }
  0xab   :  { %p4481_p13 = pnand %p4480_p12, %p4474_p9 }
  0xad   :  { %4484 = shalt.err (!%p4481_p13)
}
  0xae   :  { %132 = dma.hbm_to_vmem [thread:$0]  %s6239_s0, 2048, %s127_s30, [#allocation13], %s6236_s5, %s6236_s5, %s6235_s29  }
  0xaf   :  { %4507 = dma.done.wait [#allocation4], 512  }
  0xb0   :  { %4508 = vsyncadd [#allocation4], 4294966784 }
  0xb1   :  { %4509 = dma.done.wait [#allocation7], 1024  }
  0xb2   :  { %4510 = vsyncadd [#allocation7], 4294966272 }
  0xb3   :  { %4511 = dma.done.wait [#allocation10], 2048  }
  0xb4   :  { %4512 = vsyncadd [#allocation10], 4294965248 }
  0xb5   :  { %4513 = dma.done.wait [#allocation13], 4096  }
  0xb6   :  { %4514 = vsyncadd [#allocation13], 4294963200  ;;  %v4528_v1 = vmov 0   ;;  %s6240_s7 = sld [smem:[#allocation22_spill]]  ;;  %s6241_s13 = sld [smem:[#allocation21_spill]]  ;;  %vm348_vm0 = vcmask 719872  }
  0xb7   :  { %377 = vmatprep.subr.bf16.mxu0 %v4528_v1  ;;  %4095 = vset.pattern.permute.xlu1 %v4528_v1  ;;  %vm373_vm1 = vcmask 1043456   ;;  %vm537_vm2 = vcmask 523264   ;;  %s6242_s8 = sld [smem:[#allocation29_spill]]  ;;  %s6243_s26 = sld [smem:[#allocation30_spill]]  ;;  %vm3427_vm3 = vcmask 130112   ;;  %vm3434_vm4 = vcmask 195712  }
  0xb8   :  { %4096 = vset.pattern.permute.xlu0 %v4528_v1  ;;  %s6244_s28 = sld [smem:[#allocation31_spill]]  ;;  %s6269_s9 = sld [smem:[#allocation33_spill]]  ;;  %vm3441_vm5 = vcmask 261312   ;;  %vm3448_vm6 = vcmask 326912   ;;  %vm3455_vm7 = vcmask 392512   ;;  %vm3462_vm8 = vcmask 458112  }
  0xb9   :  { %vm3469_vm9 = vcmask 523712   ;;  %vm3476_vm10 = vcmask 589312   ;;  %vm3483_vm11 = vcmask 654912   ;;  %vm3490_vm12 = vcmask 720512  }
  0xba   :  { %vm3497_vm13 = vcmask 786112   ;;  %vm3504_vm14 = vcmask 851712   ;;  %vm3511_vm15 = vcmask 917312  }
  0xbc   :  { %v4097_v2 = vld [vmem:[%s6240_s7] sm:$0xff]   ;;  %v4098_v3 = vld [vmem:[%s6240_s7 + $0x8] sm:$0xff]   ;;  %v4099_v4 = vld [vmem:[%s6240_s7 + $0x10] sm:$0xff]  }
  0xbd   :  { %378 = vmatpush1.bf16.msra.mxu0 %v4097_v2  ;;  %v4100_v5 = vld [vmem:[%s6240_s7 + $0x18] sm:$0xff]   ;;  %v186_v6 = vld [vmem:[%s6241_s13 + $0x8] sm:$0xff]  ;;  %v4101_v7 = vld [vmem:[%s6240_s7 + $0x20] sm:$0xff]  }
  0xbe   :  { %379 = vmatprep.subr.bf16.mxu0 %v4528_v1  ;;  %v188_v8 = vld [vmem:[%s6241_s13 + $0x18] sm:$0xff]  ;;  %v4102_v10 = vld [vmem:[%s6240_s7 + $0x28] sm:$0xff]   ;;  %v4103_v11 = vld [vmem:[%s6240_s7 + $0x30] sm:$0xff]  }
  0xbf   :  { %v218_v9 = vpack.c.bf16 %v188_v8, %v186_v6  ;;  %v4104_v12 = vld [vmem:[%s6240_s7 + $0x38] sm:$0xff]   ;;  %v4105_v13 = vld [vmem:[%s6240_s7 + $0x40] sm:$0xff]   ;;  %v4106_v14 = vld [vmem:[%s6240_s7 + $0x48] sm:$0xff]  }
  0xc0   :  { %v4107_v15 = vld [vmem:[%s6240_s7 + $0x50] sm:$0xff]   ;;  %v4108_v16 = vld [vmem:[%s6240_s7 + $0x58] sm:$0xff]   ;;  %v4109_v17 = vld [vmem:[%s6240_s7 + $0x60] sm:$0xff]  }
  0xc1   :  { %380 = vmatpush1.bf16.msra.mxu0 %v4098_v3  ;;  %3562 = vmatprep.mubr.msk.bf16.mxu0 %vm348_vm0, %v218_v9  ;;  %v4110_v18 = vld [vmem:[%s6240_s7 + $0x68] ss:$0 sps:$4 sm:$0xff]   ;;  %v185_v19 = vld [vmem:[%s6241_s13] sm:$0xff]  ;;  %v187_v20 = vld [vmem:[%s6241_s13 + $0x10] sm:$0xff] }
  0xc2   :  { %381 = vmatprep.subr.bf16.mxu0 %v4528_v1  ;;  %v190_v21 = vld [vmem:[%s6241_s13 + $0x28] sm:$0xff]  ;;  %v192_v22 = vld [vmem:[%s6241_s13 + $0x38] sm:$0xff]  ;;  %v375_v23 = vsel %vm373_vm1, %v4110_v18, 0  ;;  %v217_v24 = vpack.c.bf16 %v187_v20, %v185_v19  ;;  %v189_v26 = vld [vmem:[%s6241_s13 + $0x20] sm:$0xff]  ;;  %vm3525_vm1 = vcmask 1048512  }
  0xc3   :  { %v220_v25 = vpack.c.bf16 %v192_v22, %v190_v21  ;;  %v191_v27 = vld [vmem:[%s6241_s13 + $0x30] sm:$0xff]  ;;  %v194_v28 = vld [vmem:[%s6241_s13 + $0x48] sm:$0xff]  ;;  %v196_v29 = vld [vmem:[%s6241_s13 + $0x58] sm:$0xff] }
  0xc4   :  { %v219_v30 = vpack.c.bf16 %v191_v27, %v189_v26  ;;  %v222_v31 = vpack.c.bf16 %v196_v29, %v194_v28  ;;  %v193_v32 = vld [vmem:[%s6241_s13 + $0x40] sm:$0xff]  ;;  %v195_v33 = vld [vmem:[%s6241_s13 + $0x50] sm:$0xff]  ;;  %v198_v34 = vld [vmem:[%s6241_s13 + $0x68] sm:$0xff] }
  0xc5   :  { %382 = vmatpush1.bf16.msra.mxu0 %v4099_v4  ;;  %v200_v35 = vld [vmem:[%s6241_s13 + $0x78] sm:$0xff]  ;;  %v221_v36 = vpack.c.bf16 %v195_v33, %v193_v32  ;;  %v197_v38 = vld [vmem:[%s6241_s13 + $0x60] sm:$0xff]  ;;  %v199_v39 = vld [vmem:[%s6241_s13 + $0x70] sm:$0xff] }
  0xc6   :  { %383 = vmatprep.subr.bf16.mxu0 %v4528_v1  ;;  %v224_v37 = vpack.c.bf16 %v200_v35, %v198_v34  ;;  %v202_v40 = vld [vmem:[%s6241_s13 + $0x88] sm:$0xff]  ;;  %v204_v41 = vld [vmem:[%s6241_s13 + $0x98] sm:$0xff]  ;;  %v223_v42 = vpack.c.bf16 %v199_v39, %v197_v38  ;;  %v201_v44 = vld [vmem:[%s6241_s13 + $0x80] sm:$0xff] }
  0xc7   :  { %v226_v43 = vpack.c.bf16 %v204_v41, %v202_v40  ;;  %v203_v45 = vld [vmem:[%s6241_s13 + $0x90] sm:$0xff]  ;;  %v206_v46 = vld [vmem:[%s6241_s13 + $0xa8] sm:$0xff]  ;;  %v208_v47 = vld [vmem:[%s6241_s13 + $0xb8] sm:$0xff] }
  0xc8   :  { %v225_v48 = vpack.c.bf16 %v203_v45, %v201_v44  ;;  %v228_v49 = vpack.c.bf16 %v208_v47, %v206_v46  ;;  %v205_v50 = vld [vmem:[%s6241_s13 + $0xa0] sm:$0xff]  ;;  %v207_v51 = vld [vmem:[%s6241_s13 + $0xb0] sm:$0xff]  ;;  %v210_v52 = vld [vmem:[%s6241_s13 + $0xc8] sm:$0xff] }
  0xc9   :  { %384 = vmatpush1.bf16.msra.mxu0 %v4100_v5  ;;  %v212_v53 = vld [vmem:[%s6241_s13 + $0xd8] sm:$0xff]  ;;  %v227_v54 = vpack.c.bf16 %v207_v51, %v205_v50  ;;  %v209_v56 = vld [vmem:[%s6241_s13 + $0xc0] sm:$0xff]  ;;  %v211_v57 = vld [vmem:[%s6241_s13 + $0xd0] sm:$0xff] }
  0xca   :  { %385 = vmatprep.subr.bf16.mxu0 %v4528_v1  ;;  %v230_v55 = vpack.c.bf16 %v212_v53, %v210_v52  ;;  %v214_v58 = vld [vmem:[%s6241_s13 + $0xe8] sm:$0xff]  ;;  %v216_v59 = vld [vmem:[%s6241_s13 + $0xf8] sm:$0xff]  ;;  %v229_v60 = vpack.c.bf16 %v211_v57, %v209_v56  ;;  %v213_v62 = vld [vmem:[%s6241_s13 + $0xe0] sm:$0xff] }
  0xcb   :  { %v232_v61 = vpack.c.bf16 %v216_v59, %v214_v58  ;;  %v215_v63 = vld [vmem:[%s6241_s13 + $0xf0] sm:$0xff]  ;;  %v4111_v2 = vld [vmem:[#allocation3] sm:$0xff]   ;;  %v4114_v5 = vld [vmem:[#allocation3 + $0x18] sm:$0xff]  }
  0xcc   :  { %v231_v0 = vpack.c.bf16 %v215_v63, %v213_v62  ;;  %3914 = vmatprep.subr.bf16.mxu1 %v4111_v2  ;;  %v4112_v3 = vld [vmem:[#allocation3 + $0x8] sm:$0xff]   ;;  %v4113_v4 = vld [vmem:[#allocation3 + $0x10] sm:$0xff]   ;;  %v4115_v6 = vld [vmem:[#allocation6] sm:$0xff]  }
  0xcd   :  { %386 = vmatpush1.bf16.msra.mxu0 %v4101_v7  ;;  %3915 = vmatpush3.bf16.msra.mxu1 %v4111_v2  ;;  %v4947_v7 = vld [vmem:[%s6161_s14] ss:$0 sm:$0xff]  ;;  %v4116_v26 = vld [vmem:[#allocation6 + $0x8] sm:$0xff]   ;;  %v4117_v33 = vld [vmem:[#allocation6 + $0x10] sm:$0xff]  }
  0xce   :  { %387 = vmatprep.subr.bf16.mxu0 %v4528_v1  ;;  %3916 = vmatprep.subr.bf16.mxu1 %v4112_v3 }
  0xd1   :  { %388 = vmatpush1.bf16.msra.mxu0 %v4102_v10  ;;  %3917 = vmatpush3.bf16.msra.mxu1 %v4112_v3 }
  0xd2   :  { %389 = vmatprep.subr.bf16.mxu0 %v4528_v1  ;;  %3918 = vmatprep.subr.bf16.mxu1 %v4113_v4 }
  0xd5   :  { %390 = vmatpush1.bf16.msra.mxu0 %v4103_v11  ;;  %3919 = vmatpush3.bf16.msra.mxu1 %v4113_v4 }
  0xd6   :  { %391 = vmatprep.subr.bf16.mxu0 %v4528_v1  ;;  %3920 = vmatprep.subr.bf16.mxu1 %v4114_v5 }
  0xd9   :  { %392 = vmatpush1.bf16.msra.mxu0 %v4104_v12  ;;  %3921 = vmatpush3.bf16.msra.mxu1 %v4114_v5 }
  0xda   :  { %393 = vmatprep.subr.bf16.mxu0 %v4528_v1  ;;  %3938 = vmatprep.subr.bf16.mxu1 %v4115_v6 }
  0xdd   :  { %394 = vmatpush1.bf16.msra.mxu0 %v4105_v13 }
  0xde   :  { %395 = vmatprep.subr.bf16.mxu0 %v4528_v1 }
  0xe1   :  { %396 = vmatpush1.bf16.msra.mxu0 %v4106_v14 }
  0xe2   :  { %397 = vmatprep.subr.bf16.mxu0 %v4528_v1 }
  0xe5   :  { %398 = vmatpush1.bf16.msra.mxu0 %v4107_v15 }
  0xe6   :  { %399 = vmatprep.subr.bf16.mxu0 %v4528_v1 }
  0xe9   :  { %400 = vmatpush1.bf16.msra.mxu0 %v4108_v16 }
  0xea   :  { %401 = vmatprep.subr.bf16.mxu0 %v4528_v1 }
  0xed   :  { %402 = vmatpush1.bf16.msra.mxu0 %v4109_v17 }
  0xee   :  { %403 = vmatprep.subr.bf16.mxu0 %v4528_v1 }
  0xf1   :  { %404 = vmatpush1.bf16.msra.mxu0 %v375_v23 }
  0xf4   :  { %410 = vmatmul.mubr.bf16.vlgmr.msra.gmra.mrb[0].mxu0 %v217_v24 }
  0xf5   :  { %3563 = vmatprep.mubr.msk.bf16.mxu0 %vm348_vm0, %v220_v25 }
  0xfc   :  { %418 = vmatmul.mubr.bf16.gmra.mrb[4].mxu0 %v219_v30 }
  0xfd   :  { %3564 = vmatprep.mubr.msk.bf16.mxu0 %vm348_vm0, %v222_v31 }
 0x104   :  { %426 = vmatmul.mubr.bf16.gmra.mrb[8].mxu0 %v221_v36 }
 0x105   :  { %3565 = vmatprep.mubr.msk.bf16.mxu0 %vm348_vm0, %v224_v37 }
 0x10c   :  { %434 = vmatmul.mubr.bf16.gmra.mrb[12].mxu0 %v223_v42 }
 0x10d   :  { %3566 = vmatprep.mubr.msk.bf16.mxu0 %vm348_vm0, %v226_v43 }
 0x114   :  { %442 = vmatmul.mubr.bf16.gmra.mrb[16].mxu0 %v225_v48 }
 0x115   :  { %3567 = vmatprep.mubr.msk.bf16.mxu0 %vm348_vm0, %v228_v49 }
 0x11c   :  { %450 = vmatmul.mubr.bf16.gmra.mrb[20].mxu0 %v227_v54 }
 0x11d   :  { %3568 = vmatprep.mubr.msk.bf16.mxu0 %vm348_vm0, %v230_v55 }
 0x124   :  { %458 = vmatmul.mubr.bf16.gmra.mrb[24].mxu0 %v229_v60 }
 0x125   :  { %3569 = vmatprep.mubr.msk.bf16.mxu0 %vm348_vm0, %v232_v61  ;;  %vm3518_vm0 = vcmask 982912  }
 0x12c   :  { %466 = vmatmul.mubr.bf16.gmra.mrb[28].mxu0 %v231_v0 }
 0x1c7   :  { %v411_v8 = vpop.f32.mrb[0].mxu0 }
 0x1c8   :  { %v4950_v9 = vadd.f32 %v4947_v7, %v411_v8  ;;  %v413_v10 = vpop.f32.mrb[1].mxu0 }
 0x1c9   :  { %v414_v11 = vpop.f32.mrb[2].mxu0 }
 0x1ca   :  { %v4953_v12 = vadd.f32 %v4947_v7, %v414_v11  ;;  %v416_v13 = vpop.f32.mrb[3].mxu0  ;;  %v474_v14 = vmax.f32 %v4950_v9, 0.0  ;;  %v4125_v9 = vld [vmem:[#allocation9 + $0x10] sm:$0xff]  }
 0x1cc   :  { %v475_v15 = vmax.f32 %v4953_v12, 0.0 }
 0x1ce   :  { %v490_v16 = vpack.c.bf16 %v475_v15, %v474_v14 }
 0x1cf   :  { %v419_v17 = vpop.f32.mrb[4].mxu0 }
 0x1d0   :  { %v4962_v18 = vadd.f32 %v4947_v7, %v419_v17  ;;  %v421_v19 = vpop.f32.mrb[5].mxu0  ;;  %3922 = vmatprep.mubr.msk.bf16.mxu1 %vm537_vm2, %v490_v16 }
 0x1d1   :  { %v422_v20 = vpop.f32.mrb[6].mxu0 }
 0x1d2   :  { %v4966_v21 = vadd.f32 %v4947_v7, %v422_v20  ;;  %v424_v22 = vpop.f32.mrb[7].mxu0  ;;  %v476_v23 = vmax.f32 %v4962_v18, 0.0 }
 0x1d4   :  { %v477_v24 = vmax.f32 %v4966_v21, 0.0 }
 0x1d6   :  { %v491_v25 = vpack.c.bf16 %v477_v24, %v476_v23 }
 0x1d7   :  { %v427_v27 = vpop.f32.mrb[8].mxu0 }
 0x1d8   :  { %v4975_v28 = vadd.f32 %v4947_v7, %v427_v27  ;;  %v429_v29 = vpop.f32.mrb[9].mxu0  ;;  %3923 = vmatmul.mubr.msk.bf16.vlgmr.msra.gmra.mrb[0].mxu1 %vm537_vm2, %v491_v25 }
 0x1d9   :  { %v430_v30 = vpop.f32.mrb[10].mxu0  ;;  %3939 = vmatpush3.bf16.msra.mxu1 %v4115_v6  ;;  %v4118_v29 = vld [vmem:[#allocation6 + $0x18] sm:$0xff]  }
 0x1da   :  { %v4979_v31 = vadd.f32 %v4947_v7, %v430_v30  ;;  %v432_v32 = vpop.f32.mrb[11].mxu0  ;;  %3940 = vmatprep.subr.bf16.mxu1 %v4116_v26  ;;  %v478_v34 = vmax.f32 %v4975_v28, 0.0  ;;  %v4119_v30 = vld [vmem:[#allocation8] sm:$0xff]   ;;  %v4128_v28 = vld [vmem:[#allocation9 + $0x28] sm:$0xff]  }
 0x1dc   :  { %v479_v35 = vmax.f32 %v4979_v31, 0.0 }
 0x1dd   :  { %3941 = vmatpush3.bf16.msra.mxu1 %v4116_v26 }
 0x1de   :  { %v492_v36 = vpack.c.bf16 %v479_v35, %v478_v34  ;;  %3942 = vmatprep.subr.bf16.mxu1 %v4117_v33 }
 0x1df   :  { %v435_v37 = vpop.f32.mrb[12].mxu0 }
 0x1e0   :  { %v4988_v38 = vadd.f32 %v4947_v7, %v435_v37  ;;  %v437_v39 = vpop.f32.mrb[13].mxu0  ;;  %3926 = vmatprep.mubr.msk.bf16.mxu1 %vm537_vm2, %v492_v36 }
 0x1e1   :  { %v438_v40 = vpop.f32.mrb[14].mxu0  ;;  %3943 = vmatpush3.bf16.msra.mxu1 %v4117_v33 }
 0x1e2   :  { %v4992_v41 = vadd.f32 %v4947_v7, %v438_v40  ;;  %v440_v42 = vpop.f32.mrb[15].mxu0  ;;  %v480_v43 = vmax.f32 %v4988_v38, 0.0  ;;  %3944 = vmatprep.subr.bf16.mxu1 %v4118_v29 }
 0x1e4   :  { %v481_v44 = vmax.f32 %v4992_v41, 0.0 }
 0x1e5   :  { %3945 = vmatpush3.bf16.msra.mxu1 %v4118_v29 }
 0x1e6   :  { %v493_v45 = vpack.c.bf16 %v481_v44, %v480_v43  ;;  %3962 = vmatprep.subr.bf16.mxu1 %v4119_v30 }
 0x1e7   :  { %v443_v46 = vpop.f32.mrb[16].mxu0 }
 0x1e8   :  { %3927 = vmatmul.mubr.msk.bf16.gmra.mrb[4].mxu1 %vm537_vm2, %v493_v45  ;;  %v5002_v47 = vadd.f32 %v4947_v7, %v443_v46  ;;  %v445_v48 = vpop.f32.mrb[17].mxu0 }
 0x1e9   :  { %v446_v49 = vpop.f32.mrb[18].mxu0 }
 0x1ea   :  { %v482_v50 = vmax.f32 %v5002_v47, 0.0  ;;  %v5006_v51 = vadd.f32 %v4947_v7, %v446_v49  ;;  %v448_v52 = vpop.f32.mrb[19].mxu0 }
 0x1ec   :  { %v483_v53 = vmax.f32 %v5006_v51, 0.0 }
 0x1ee   :  { %v494_v54 = vpack.c.bf16 %v483_v53, %v482_v50 }
 0x1ef   :  { %v451_v55 = vpop.f32.mrb[20].mxu0 }
 0x1f0   :  { %v5014_v56 = vadd.f32 %v4947_v7, %v451_v55  ;;  %v453_v57 = vpop.f32.mrb[21].mxu0  ;;  %3930 = vmatprep.mubr.msk.bf16.mxu1 %vm537_vm2, %v494_v54 }
 0x1f1   :  { %v454_v58 = vpop.f32.mrb[22].mxu0  ;;  %v4120_v57 = vld [vmem:[#allocation8 + $0x8] sm:$0xff]  }
 0x1f2   :  { %v484_v59 = vmax.f32 %v5014_v56, 0.0  ;;  %v5019_v60 = vadd.f32 %v4947_v7, %v454_v58  ;;  %v456_v61 = vpop.f32.mrb[23].mxu0  ;;  %v4121_v58 = vld [vmem:[#allocation8 + $0x10] sm:$0xff]  }
 0x1f4   :  { %v485_v62 = vmax.f32 %v5019_v60, 0.0 }
 0x1f6   :  { %v495_v63 = vpack.c.bf16 %v485_v62, %v484_v59 }
 0x1f7   :  { %v459_v0 = vpop.f32.mrb[24].mxu0 }
 0x1f8   :  { %3931 = vmatmul.mubr.msk.bf16.gmra.mrb[8].mxu1 %vm537_vm2, %v495_v63  ;;  %v5028_v2 = vadd.f32 %v4947_v7, %v459_v0  ;;  %v461_v3 = vpop.f32.mrb[25].mxu0 }
 0x1f9   :  { %v462_v4 = vpop.f32.mrb[26].mxu0 }
 0x1fa   :  { %v486_v5 = vmax.f32 %v5028_v2, 0.0  ;;  %v5032_v6 = vadd.f32 %v4947_v7, %v462_v4  ;;  %v464_v8 = vpop.f32.mrb[27].mxu0  ;;  %v4129_v2 = vld [vmem:[#allocation9 + $0x30] sm:$0xff]  }
 0x1fc   :  { %v487_v10 = vmax.f32 %v5032_v6, 0.0  ;;  %v4133_v6 = vld [vmem:[#allocation11 + $0x10] sm:$0xff]  }
 0x1fe   :  { %v496_v11 = vpack.c.bf16 %v487_v10, %v486_v5 }
 0x1ff   :  { %v467_v13 = vpop.f32.mrb[28].mxu0 }
 0x200   :  { %v5040_v16 = vadd.f32 %v4947_v7, %v467_v13  ;;  %v469_v17 = vpop.f32.mrb[29].mxu0  ;;  %3934 = vmatprep.mubr.msk.bf16.mxu1 %vm537_vm2, %v496_v11 }
 0x201   :  { %v470_v19 = vpop.f32.mrb[30].mxu0 }
 0x202   :  { %v488_v20 = vmax.f32 %v5040_v16, 0.0  ;;  %v5045_v22 = vadd.f32 %v4947_v7, %v470_v19  ;;  %v472_v25 = vpop.f32.mrb[31].mxu0  ;;  %v5056_v7 = vld [vmem:[%s6162_s15] ss:$0 sm:$0xff] }
 0x204   :  { %v489_v26 = vmax.f32 %v5045_v22, 0.0  ;;  %v4131_v22 = vld [vmem:[#allocation11] sm:$0xff]  }
 0x205   :  { %4018 = vmatprep.subr.bf16.mxu0 %v4131_v22 }
 0x206   :  { %v497_v27 = vpack.c.bf16 %v489_v26, %v488_v20  ;;  %4019 = vmatpush3.bf16.msra.mxu0 %v4131_v22 }
 0x208   :  { %3935 = vmatmul.mubr.msk.bf16.gmra.mrb[12].mxu1 %vm537_vm2, %v497_v27 }
 0x2ab   :  { %v3924_v32 = vpop.f32.mrb[0].mxu1 }
 0x2ac   :  { %v605_v33 = vadd.f32 %v3924_v32, %v5056_v7  ;;  %v596_v36 = vpop.f32.mrb[1].mxu1 }
 0x2ad   :  { %v597_v37 = vadd.f32 %v5056_v7, %v596_v36  ;;  %v3925_v39 = vpop.f32.mrb[2].mxu1 }
 0x2ae   :  { %v608_v40 = vadd.f32 %v3925_v39, %v5056_v7  ;;  %v599_v42 = vpop.f32.mrb[3].mxu1  ;;  %v661_v46 = vmax.f32 %v605_v33, 0.0 }
 0x2af   :  { %v600_v45 = vadd.f32 %v5056_v7, %v599_v42  ;;  %v659_v49 = vmax.f32 %v597_v37, 0.0 }
 0x2b0   :  { %v662_v48 = vmax.f32 %v608_v40, 0.0 }
 0x2b1   :  { %v660_v52 = vmax.f32 %v600_v45, 0.0 }
 0x2b2   :  { %v676_v54 = vpack.c.bf16 %v662_v48, %v661_v46 }
 0x2b3   :  { %v675_v55 = vpack.c.bf16 %v660_v52, %v659_v49 }
 0x2b5   :  { %3946 = vmatprep.mubr.msk.bf16.mxu1 %vm537_vm2, %v675_v55 }
 0x2b6   :  { %3947 = vmatmul.mubr.msk.bf16.vlgmr.msra.gmra.mrb[16].mxu1 %vm537_vm2, %v676_v54 }
 0x2b7   :  { %3963 = vmatpush3.bf16.msra.mxu1 %v4119_v30 }
 0x2b8   :  { %3964 = vmatprep.subr.bf16.mxu1 %v4120_v57 }
 0x2bb   :  { %v3928_v61 = vpop.f32.mrb[4].mxu1  ;;  %3965 = vmatpush3.bf16.msra.mxu1 %v4120_v57 }
 0x2bc   :  { %v621_v63 = vadd.f32 %v3928_v61, %v5056_v7  ;;  %v612_v0 = vpop.f32.mrb[5].mxu1  ;;  %3966 = vmatprep.subr.bf16.mxu1 %v4121_v58 }
 0x2bd   :  { %v613_v3 = vadd.f32 %v5056_v7, %v612_v0  ;;  %v3929_v4 = vpop.f32.mrb[6].mxu1 }
 0x2be   :  { %v624_v8 = vadd.f32 %v3929_v4, %v5056_v7  ;;  %v615_v11 = vpop.f32.mrb[7].mxu1  ;;  %v665_v17 = vmax.f32 %v621_v63, 0.0 }
 0x2bf   :  { %v616_v13 = vadd.f32 %v5056_v7, %v615_v11  ;;  %3967 = vmatpush3.bf16.msra.mxu1 %v4121_v58  ;;  %v663_v25 = vmax.f32 %v613_v3, 0.0 }
 0x2c0   :  { %v666_v19 = vmax.f32 %v624_v8, 0.0 }
 0x2c1   :  { %v664_v27 = vmax.f32 %v616_v13, 0.0 }
 0x2c2   :  { %v678_v29 = vpack.c.bf16 %v666_v19, %v665_v17 }
 0x2c3   :  { %v677_v30 = vpack.c.bf16 %v664_v27, %v663_v25 }
 0x2c5   :  { %3950 = vmatprep.mubr.msk.bf16.mxu1 %vm537_vm2, %v677_v30  ;;  %v4123_v30 = vld [vmem:[#allocation9] sm:$0xff]  }
 0x2c6   :  { %3951 = vmatmul.mubr.msk.bf16.gmra.mrb[20].mxu1 %vm537_vm2, %v678_v29  ;;  %v4122_v29 = vld [vmem:[#allocation8 + $0x18] sm:$0xff]  }
 0x2c7   :  { %3968 = vmatprep.subr.bf16.mxu1 %v4122_v29 }
 0x2c8   :  { %3969 = vmatpush3.bf16.msra.mxu1 %v4122_v29 }
 0x2c9   :  { %3986 = vmatprep.subr.bf16.mxu1 %v4123_v30 }
 0x2cb   :  { %v3932_v32 = vpop.f32.mrb[8].mxu1 }
 0x2cc   :  { %v637_v33 = vadd.f32 %v3932_v32, %v5056_v7  ;;  %v628_v36 = vpop.f32.mrb[9].mxu1  ;;  %v5085_v32 = vld [vmem:[%s6163_s16] ss:$0 sm:$0xff] }
 0x2cd   :  { %v629_v37 = vadd.f32 %v5056_v7, %v628_v36  ;;  %v3933_v39 = vpop.f32.mrb[10].mxu1 }
 0x2ce   :  { %v669_v40 = vmax.f32 %v637_v33, 0.0  ;;  %v640_v42 = vadd.f32 %v3933_v39, %v5056_v7  ;;  %v631_v45 = vpop.f32.mrb[11].mxu1 }
 0x2cf   :  { %v667_v46 = vmax.f32 %v629_v37, 0.0  ;;  %v632_v48 = vadd.f32 %v5056_v7, %v631_v45 }
 0x2d0   :  { %v670_v49 = vmax.f32 %v640_v42, 0.0 }
 0x2d1   :  { %v668_v52 = vmax.f32 %v632_v48, 0.0 }
 0x2d2   :  { %v680_v54 = vpack.c.bf16 %v670_v49, %v669_v40 }
 0x2d3   :  { %v679_v55 = vpack.c.bf16 %v668_v52, %v667_v46 }
 0x2d5   :  { %3954 = vmatprep.mubr.msk.bf16.mxu1 %vm537_vm2, %v679_v55 }
 0x2d6   :  { %3955 = vmatmul.mubr.msk.bf16.gmra.mrb[24].mxu1 %vm537_vm2, %v680_v54 }
 0x2db   :  { %v3936_v57 = vpop.f32.mrb[12].mxu1 }
 0x2dc   :  { %v653_v58 = vadd.f32 %v3936_v57, %v5056_v7  ;;  %v644_v61 = vpop.f32.mrb[13].mxu1 }
 0x2dd   :  { %v645_v63 = vadd.f32 %v5056_v7, %v644_v61  ;;  %v3937_v0 = vpop.f32.mrb[14].mxu1  ;;  %v4124_v61 = vld [vmem:[#allocation9 + $0x8] sm:$0xff]  }
 0x2de   :  { %v673_v3 = vmax.f32 %v653_v58, 0.0  ;;  %v656_v4 = vadd.f32 %v3937_v0, %v5056_v7  ;;  %v647_v8 = vpop.f32.mrb[15].mxu1 }
 0x2df   :  { %v671_v11 = vmax.f32 %v645_v63, 0.0  ;;  %v648_v13 = vadd.f32 %v5056_v7, %v647_v8 }
 0x2e0   :  { %v674_v17 = vmax.f32 %v656_v4, 0.0  ;;  %v4126_v4 = vld [vmem:[#allocation9 + $0x18] sm:$0xff]  }
 0x2e1   :  { %v672_v19 = vmax.f32 %v648_v13, 0.0 }
 0x2e2   :  { %v682_v25 = vpack.c.bf16 %v674_v17, %v673_v3 }
 0x2e3   :  { %v681_v27 = vpack.c.bf16 %v672_v19, %v671_v11 }
 0x2e5   :  { %3958 = vmatprep.mubr.msk.bf16.mxu1 %vm537_vm2, %v681_v27 }
 0x2e6   :  { %3959 = vmatmul.mubr.msk.bf16.gmra.mrb[28].mxu1 %vm537_vm2, %v682_v25 }
 0x389   :  { %v3948_v33 = vpop.f32.mrb[16].mxu1 }
 0x38a   :  { %v789_v7 = vadd.f32 %v3948_v33, %v5085_v32  ;;  %v780_v36 = vpop.f32.mrb[17].mxu1 }
 0x38b   :  { %v781_v37 = vadd.f32 %v5085_v32, %v780_v36  ;;  %v3949_v39 = vpop.f32.mrb[18].mxu1 }
 0x38c   :  { %v845_v40 = vadd.f32 %v789_v7, %v476_v23  ;;  %v792_v42 = vadd.f32 %v3949_v39, %v5085_v32  ;;  %v783_v45 = vpop.f32.mrb[19].mxu1 }
 0x38d   :  { %v843_v46 = vadd.f32 %v781_v37, %v474_v14  ;;  %v784_v48 = vadd.f32 %v5085_v32, %v783_v45 }
 0x38e   :  { %v846_v49 = vadd.f32 %v792_v42, %v477_v24  ;;  %v861_v54 = vmax.f32 %v845_v40, 0.0 }
 0x38f   :  { %v844_v52 = vadd.f32 %v784_v48, %v475_v15  ;;  %v859_v57 = vmax.f32 %v843_v46, 0.0 }
 0x390   :  { %v862_v55 = vmax.f32 %v846_v49, 0.0 }
 0x391   :  { %v860_v58 = vmax.f32 %v844_v52, 0.0 }
 0x392   :  { %v876_v18 = vpack.c.bf16 %v862_v55, %v861_v54 }
 0x393   :  { %v875_v23 = vpack.c.bf16 %v860_v58, %v859_v57 }
 0x395   :  { %3970 = vmatprep.mubr.msk.bf16.mxu1 %vm537_vm2, %v875_v23 }
 0x396   :  { %3971 = vmatmul.mubr.msk.bf16.vlgmr.msra.gmra.mrb[32].mxu1 %vm537_vm2, %v876_v18 }
 0x397   :  { %3987 = vmatpush3.bf16.msra.mxu1 %v4123_v30 }
 0x398   :  { %3988 = vmatprep.subr.bf16.mxu1 %v4124_v61 }
 0x399   :  { %v3952_v14 = vpop.f32.mrb[20].mxu1 }
 0x39a   :  { %v805_v21 = vadd.f32 %v3952_v14, %v5085_v32  ;;  %v796_v24 = vpop.f32.mrb[21].mxu1 }
 0x39b   :  { %v797_v12 = vadd.f32 %v5085_v32, %v796_v24  ;;  %v3953_v15 = vpop.f32.mrb[22].mxu1  ;;  %3989 = vmatpush3.bf16.msra.mxu1 %v4124_v61  ;;  %v4137_v24 = vld [vmem:[#allocation11 + $0x30] sm:$0xff]  }
 0x39c   :  { %v849_v63 = vadd.f32 %v805_v21, %v480_v43  ;;  %v808_v0 = vadd.f32 %v3953_v15, %v5085_v32  ;;  %v799_v3 = vpop.f32.mrb[23].mxu1  ;;  %3990 = vmatprep.subr.bf16.mxu1 %v4125_v9  ;;  %v4127_v43 = vld [vmem:[#allocation9 + $0x20] sm:$0xff]   ;;  %v4136_v21 = vld [vmem:[#allocation11 + $0x28] sm:$0xff]  }
 0x39d   :  { %v847_v8 = vadd.f32 %v797_v12, %v478_v34  ;;  %v800_v11 = vadd.f32 %v5085_v32, %v799_v3  ;;  %v3596_v12 = vld [vmem:[%s6164_s17] ss:$0 sm:$0xff] }
 0x39e   :  { %v850_v13 = vadd.f32 %v808_v0, %v481_v44  ;;  %v865_v19 = vmax.f32 %v849_v63, 0.0 }
 0x39f   :  { %v848_v17 = vadd.f32 %v800_v11, %v479_v35  ;;  %3991 = vmatpush3.bf16.msra.mxu1 %v4125_v9  ;;  %v863_v25 = vmax.f32 %v847_v8, 0.0 }
 0x3a0   :  { %v866_v38 = vmax.f32 %v850_v13, 0.0  ;;  %3992 = vmatprep.subr.bf16.mxu1 %v4126_v4 }
 0x3a1   :  { %v864_v27 = vmax.f32 %v848_v17, 0.0 }
 0x3a2   :  { %v878_v29 = vpack.c.bf16 %v866_v38, %v865_v19 }
 0x3a3   :  { %v877_v30 = vpack.c.bf16 %v864_v27, %v863_v25  ;;  %3993 = vmatpush3.bf16.msra.mxu1 %v4126_v4 }
 0x3a4   :  { %3994 = vmatprep.subr.bf16.mxu1 %v4127_v43 }
 0x3a5   :  { %3974 = vmatprep.mubr.msk.bf16.mxu1 %vm537_vm2, %v877_v30 }
 0x3a6   :  { %3975 = vmatmul.mubr.msk.bf16.gmra.mrb[36].mxu1 %vm537_vm2, %v878_v29 }
 0x3a7   :  { %3995 = vmatpush3.bf16.msra.mxu1 %v4127_v43 }
 0x3a8   :  { %3996 = vmatprep.subr.bf16.mxu1 %v4128_v28 }
 0x3a9   :  { %v3956_v31 = vpop.f32.mrb[24].mxu1 }
 0x3aa   :  { %v821_v34 = vadd.f32 %v3956_v31, %v5085_v32  ;;  %v812_v35 = vpop.f32.mrb[25].mxu1 }
 0x3ab   :  { %v813_v41 = vadd.f32 %v5085_v32, %v812_v35  ;;  %v3957_v44 = vpop.f32.mrb[26].mxu1  ;;  %3997 = vmatpush3.bf16.msra.mxu1 %v4128_v28 }
 0x3ac   :  { %v853_v33 = vadd.f32 %v821_v34, %v484_v59  ;;  %v824_v7 = vadd.f32 %v3957_v44, %v5085_v32  ;;  %v815_v36 = vpop.f32.mrb[27].mxu1  ;;  %3998 = vmatprep.subr.bf16.mxu1 %v4129_v2 }
 0x3ad   :  { %v851_v37 = vadd.f32 %v813_v41, %v482_v50  ;;  %v816_v39 = vadd.f32 %v5085_v32, %v815_v36 }
 0x3ae   :  { %v854_v40 = vadd.f32 %v824_v7, %v485_v62  ;;  %v869_v45 = vmax.f32 %v853_v33, 0.0 }
 0x3af   :  { %v852_v42 = vadd.f32 %v816_v39, %v483_v53  ;;  %v867_v48 = vmax.f32 %v851_v37, 0.0  ;;  %3999 = vmatpush3.bf16.msra.mxu1 %v4129_v2 }
 0x3b0   :  { %v870_v46 = vmax.f32 %v854_v40, 0.0 }
 0x3b1   :  { %v868_v49 = vmax.f32 %v852_v42, 0.0 }
 0x3b2   :  { %v880_v56 = vpack.c.bf16 %v870_v46, %v869_v45 }
 0x3b3   :  { %v879_v59 = vpack.c.bf16 %v868_v49, %v867_v48 }
 0x3b5   :  { %3978 = vmatprep.mubr.msk.bf16.mxu1 %vm537_vm2, %v879_v59 }
 0x3b6   :  { %3979 = vmatmul.mubr.msk.bf16.gmra.mrb[40].mxu1 %vm537_vm2, %v880_v56 }
 0x3b9   :  { %v3960_v47 = vpop.f32.mrb[28].mxu1 }
 0x3ba   :  { %v837_v50 = vadd.f32 %v3960_v47, %v5085_v32  ;;  %v828_v52 = vpop.f32.mrb[29].mxu1 }
 0x3bb   :  { %v829_v60 = vadd.f32 %v5085_v32, %v828_v52  ;;  %v3961_v62 = vpop.f32.mrb[30].mxu1 }
 0x3bc   :  { %v857_v51 = vadd.f32 %v837_v50, %v488_v20  ;;  %v840_v53 = vadd.f32 %v3961_v62, %v5085_v32  ;;  %v831_v54 = vpop.f32.mrb[31].mxu1 }
 0x3bd   :  { %v855_v55 = vadd.f32 %v829_v60, %v486_v5  ;;  %v832_v57 = vadd.f32 %v5085_v32, %v831_v54  ;;  %v4130_v5 = vld [vmem:[#allocation9 + $0x38] sm:$0xff]   ;;  %v4135_v32 = vld [vmem:[#allocation11 + $0x20] sm:$0xff]  }
 0x3be   :  { %v858_v58 = vadd.f32 %v840_v53, %v489_v26  ;;  %v873_v23 = vmax.f32 %v857_v51, 0.0  ;;  %4000 = vmatprep.subr.bf16.mxu1 %v4130_v5  ;;  %v4132_v26 = vld [vmem:[#allocation11 + $0x8] sm:$0xff]  }
 0x3bf   :  { %v856_v18 = vadd.f32 %v832_v57, %v487_v10  ;;  %v871_v9 = vmax.f32 %v855_v55, 0.0  ;;  %4001 = vmatpush3.bf16.msra.mxu1 %v4130_v5  ;;  %4020 = vmatprep.subr.bf16.mxu0 %v4132_v26  ;;  %v4134_v10 = vld [vmem:[#allocation11 + $0x18] sm:$0xff]  }
 0x3c0   :  { %v874_v61 = vmax.f32 %v858_v58, 0.0  ;;  %4021 = vmatpush3.bf16.msra.mxu0 %v4132_v26  ;;  %v4138_v26 = vld [vmem:[#allocation11 + $0x38] sm:$0xff]  }
 0x3c1   :  { %v872_v14 = vmax.f32 %v856_v18, 0.0  ;;  %4022 = vmatprep.subr.bf16.mxu0 %v4133_v6 }
 0x3c2   :  { %v882_v16 = vpack.c.bf16 %v874_v61, %v873_v23 }
 0x3c3   :  { %v881_v20 = vpack.c.bf16 %v872_v14, %v871_v9 }
 0x3c4   :  { %4023 = vmatpush3.bf16.msra.mxu0 %v4133_v6  ;;  %v4139_v6 = vld [vmem:[#allocation12] ss:$8 sps:$4 sm:$0xff]  }
 0x3c5   :  { %3982 = vmatprep.mubr.msk.bf16.mxu1 %vm537_vm2, %v881_v20  ;;  %4024 = vmatprep.subr.bf16.mxu0 %v4134_v10 }
 0x3c6   :  { %3983 = vmatmul.mubr.msk.bf16.gmra.mrb[44].mxu1 %vm537_vm2, %v882_v16 }
 0x3c8   :  { %4025 = vmatpush3.bf16.msra.mxu0 %v4134_v10  ;;  %v4141_v10 = vld [vmem:[#allocation12 + $0x4] ss:$8 sps:$4 sm:$0xff]  }
 0x3c9   :  { %4026 = vmatprep.subr.bf16.mxu0 %v4135_v32  ;;  %1575 = vmatprep.subr.bf16.mxu1 %v4141_v10 }
 0x3cc   :  { %4027 = vmatpush3.bf16.msra.mxu0 %v4135_v32  ;;  %v4144_v32 = vld [vmem:[#allocation12 + $0x14] ss:$8 sps:$4 sm:$0xff]  }
 0x3cd   :  { %4028 = vmatprep.subr.bf16.mxu0 %v4136_v21 }
 0x3d0   :  { %4029 = vmatpush3.bf16.msra.mxu0 %v4136_v21  ;;  %v4142_v21 = vld [vmem:[#allocation12 + $0x10] ss:$8 sps:$4 sm:$0xff]  }
 0x3d1   :  { %4030 = vmatprep.subr.bf16.mxu0 %v4137_v24 }
 0x3d4   :  { %4031 = vmatpush3.bf16.msra.mxu0 %v4137_v24  ;;  %v4147_v24 = vld [vmem:[#allocation12 + $0x24] ss:$8 sps:$4 sm:$0xff]  }
 0x3d5   :  { %4032 = vmatprep.subr.bf16.mxu0 %v4138_v26 }
 0x3d8   :  { %4033 = vmatpush3.bf16.msra.mxu0 %v4138_v26 }
 0x469   :  { %v3972_v15 = vpop.f32.mrb[32].mxu1 }
 0x46a   :  { %v980_v63 = vpop.f32.mrb[33].mxu1  ;;  %v5148_v4 = vadd.f32 %v3972_v15, %v3596_v12  ;;  %v4150_v15 = vld [vmem:[#allocation12 + $0x34] ss:$8 sps:$4 sm:$0xff]  }
 0x46b   :  { %v5146_v0 = vadd.f32 %v3596_v12, %v980_v63  ;;  %v3973_v3 = vpop.f32.mrb[34].mxu1  ;;  %v4148_v63 = vld [vmem:[#allocation12 + $0x30] ss:$8 sps:$4 sm:$0xff]  }
 0x46c   :  { %v5150_v8 = vadd.f32 %v3973_v3, %v3596_v12  ;;  %v983_v11 = vpop.f32.mrb[35].mxu1  ;;  %v1045_v43 = vmax.f32 %v5148_v4, 0.0  ;;  %v4153_v3 = vld [vmem:[#allocation12 + $0x44] ss:$8 sps:$4 sm:$0xff]  }
 0x46d   :  { %v5152_v13 = vadd.f32 %v3596_v12, %v983_v11  ;;  %v1043_v19 = vmax.f32 %v5146_v0, 0.0  ;;  %v4151_v11 = vld [vmem:[#allocation12 + $0x40] ss:$8 sps:$4 sm:$0xff]  }
 0x46e   :  { %v1046_v17 = vmax.f32 %v5150_v8, 0.0 }
 0x46f   :  { %v1044_v38 = vmax.f32 %v5152_v13, 0.0 }
 0x470   :  { %v1060_v27 = vpack.c.bf16 %v1046_v17, %v1045_v43 }
 0x471   :  { %v1059_v25 = vpack.c.bf16 %v1044_v38, %v1043_v19 }
 0x473   :  { %4002 = vmatprep.mubr.bf16.mxu1 %v1059_v25  ;;  %v4156_v25 = vld [vmem:[#allocation12 + $0x54] ss:$8 sps:$4 sm:$0xff]  }
 0x474   :  { %4003 = vmatmul.mubr.bf16.vlgmr.msra.gmra.mrb[48].mxu1 %v1060_v27  ;;  %v4154_v27 = vld [vmem:[#allocation12 + $0x50] ss:$8 sps:$4 sm:$0xff]  }
 0x475   :  { %1576 = vmatpush1.bf16.msra.mxu1 %v4139_v6 }
 0x476   :  { %1577 = vmatprep.subr.bf16.mxu1 %v4144_v32 }
 0x479   :  { %v3976_v29 = vpop.f32.mrb[36].mxu1  ;;  %1578 = vmatpush1.bf16.msra.mxu1 %v4142_v21 }
 0x47a   :  { %v996_v30 = vpop.f32.mrb[37].mxu1  ;;  %v5168_v34 = vadd.f32 %v3976_v29, %v3596_v12  ;;  %1579 = vmatprep.subr.bf16.mxu1 %v4147_v24  ;;  %v3609_v29 = vld [vmem:[%s6165_s18] ss:$0 sm:$0xff] }
 0x47b   :  { %v5166_v28 = vadd.f32 %v3596_v12, %v996_v30  ;;  %v3977_v31 = vpop.f32.mrb[38].mxu1 }
 0x47c   :  { %v5170_v35 = vadd.f32 %v3977_v31, %v3596_v12  ;;  %v999_v41 = vpop.f32.mrb[39].mxu1  ;;  %v1049_v37 = vmax.f32 %v5168_v34, 0.0 }
 0x47d   :  { %v5172_v44 = vadd.f32 %v3596_v12, %v999_v41  ;;  %v1047_v7 = vmax.f32 %v5166_v28, 0.0 }
 0x47e   :  { %v1050_v33 = vmax.f32 %v5170_v35, 0.0 }
 0x47f   :  { %v1048_v36 = vmax.f32 %v5172_v44, 0.0 }
 0x480   :  { %v1062_v40 = vpack.c.bf16 %v1050_v33, %v1049_v37 }
 0x481   :  { %v1061_v39 = vpack.c.bf16 %v1048_v36, %v1047_v7 }
 0x483   :  { %4006 = vmatprep.mubr.bf16.mxu1 %v1061_v39 }
 0x484   :  { %4007 = vmatmul.mubr.bf16.gmra.mrb[52].mxu1 %v1062_v40 }
 0x489   :  { %v3980_v42 = vpop.f32.mrb[40].mxu1 }
 0x48a   :  { %v1012_v45 = vpop.f32.mrb[41].mxu1  ;;  %v5188_v49 = vadd.f32 %v3980_v42, %v3596_v12 }
 0x48b   :  { %v5186_v46 = vadd.f32 %v3596_v12, %v1012_v45  ;;  %v3981_v48 = vpop.f32.mrb[42].mxu1 }
 0x48c   :  { %v5190_v56 = vadd.f32 %v3981_v48, %v3596_v12  ;;  %v1015_v59 = vpop.f32.mrb[43].mxu1  ;;  %v1053_v62 = vmax.f32 %v5188_v49, 0.0 }
 0x48d   :  { %v5192_v47 = vadd.f32 %v3596_v12, %v1015_v59  ;;  %v1051_v52 = vmax.f32 %v5186_v46, 0.0 }
 0x48e   :  { %v1054_v50 = vmax.f32 %v5190_v56, 0.0 }
 0x48f   :  { %v1052_v60 = vmax.f32 %v5192_v47, 0.0 }
 0x490   :  { %v1064_v53 = vpack.c.bf16 %v1054_v50, %v1053_v62 }
 0x491   :  { %v1063_v51 = vpack.c.bf16 %v1052_v60, %v1051_v52 }
 0x493   :  { %4010 = vmatprep.mubr.bf16.mxu1 %v1063_v51 }
 0x494   :  { %4011 = vmatmul.mubr.bf16.gmra.mrb[56].mxu1 %v1064_v53 }
 0x499   :  { %v3984_v54 = vpop.f32.mrb[44].mxu1 }
 0x49a   :  { %v1028_v55 = vpop.f32.mrb[45].mxu1  ;;  %v5208_v18 = vadd.f32 %v3984_v54, %v3596_v12 }
 0x49b   :  { %v5206_v57 = vadd.f32 %v3596_v12, %v1028_v55  ;;  %v3985_v58 = vpop.f32.mrb[46].mxu1 }
 0x49c   :  { %v5210_v23 = vadd.f32 %v3985_v58, %v3596_v12  ;;  %v1031_v61 = vpop.f32.mrb[47].mxu1  ;;  %v1057_v2 = vmax.f32 %v5208_v18, 0.0 }
 0x49d   :  { %v5212_v9 = vadd.f32 %v3596_v12, %v1031_v61  ;;  %v1055_v16 = vmax.f32 %v5206_v57, 0.0  ;;  %v4145_v12 = vld [vmem:[#allocation12 + $0x20] ss:$8 sps:$4 sm:$0xff]  }
 0x49e   :  { %v1058_v14 = vmax.f32 %v5210_v23, 0.0  ;;  %1580 = vmatpush1.bf16.msra.mxu1 %v4145_v12  ;;  %v4207_v57 = vld [vmem:[%s6242_s8 + $0xe4] ss:$8 sps:$4 sm:$0xff]   ;;  %v4205_v23 = vld [vmem:[%s6242_s8 + $0xe0] ss:$8 sps:$4 sm:$0xff]  }
 0x49f   :  { %v1056_v20 = vmax.f32 %v5212_v9, 0.0  ;;  %1581 = vmatprep.subr.bf16.mxu1 %v4150_v15  ;;  %v4210_v9 = vld [vmem:[%s6242_s8 + $0xf4] ss:$8 sps:$4 sm:$0xff]  }
 0x4a0   :  { %v1066_v22 = vpack.c.bf16 %v1058_v14, %v1057_v2 }
 0x4a1   :  { %v1065_v5 = vpack.c.bf16 %v1056_v20, %v1055_v16 }
 0x4a2   :  { %1582 = vmatpush1.bf16.msra.mxu1 %v4148_v63 }
 0x4a3   :  { %4014 = vmatprep.mubr.bf16.mxu1 %v1065_v5  ;;  %1583 = vmatprep.subr.bf16.mxu1 %v4153_v3 }
 0x4a4   :  { %4015 = vmatmul.mubr.bf16.gmra.mrb[60].mxu1 %v1066_v22 }
 0x4a5   :  { %1607 = vmatprep.mubr.bf16.mxu1 %v4528_v1 }
 0x4a6   :  { %1584 = vmatpush1.bf16.msra.mxu1 %v4151_v11 }
 0x4a7   :  { %1585 = vmatprep.subr.bf16.mxu1 %v4156_v25 }
 0x4aa   :  { %1586 = vmatpush1.bf16.msra.mxu1 %v4154_v27 }
 0x547   :  { %v4004_v30 = vpop.f32.mrb[48].mxu1 }
 0x548   :  { %v1181_v31 = vadd.f32 %v4004_v30, %v3609_v29  ;;  %v1172_v41 = vpop.f32.mrb[49].mxu1 }
 0x549   :  { %v1173_v39 = vadd.f32 %v3609_v29, %v1172_v41  ;;  %v4005_v40 = vpop.f32.mrb[50].mxu1 }
 0x54a   :  { %v1184_v42 = vadd.f32 %v4005_v40, %v3609_v29  ;;  %v1175_v45 = vpop.f32.mrb[51].mxu1  ;;  %v1237_v59 = vmax.f32 %v1181_v31, 0.0 }
 0x54b   :  { %v1176_v48 = vadd.f32 %v3609_v29, %v1175_v45  ;;  %v1235_v53 = vmax.f32 %v1173_v39, 0.0 }
 0x54c   :  { %v1238_v51 = vmax.f32 %v1184_v42, 0.0 }
 0x54d   :  { %v1236_v54 = vmax.f32 %v1176_v48, 0.0 }
 0x54e   :  { %v1252_v55 = vpack.c.bf16 %v1238_v51, %v1237_v59 }
 0x54f   :  { %v1251_v58 = vpack.c.bf16 %v1236_v54, %v1235_v53 }
 0x551   :  { %4034 = vmatprep.mubr.bf16.mxu0 %v1251_v58 }
 0x552   :  { %4035 = vmatmul.mubr.bf16.vlgmr.msra.gmra.mrb[32].mxu0 %v1252_v55 }
 0x557   :  { %v4008_v61 = vpop.f32.mrb[52].mxu1 }
 0x558   :  { %v1197_v5 = vadd.f32 %v4008_v61, %v3609_v29  ;;  %v1188_v22 = vpop.f32.mrb[53].mxu1 }
 0x559   :  { %v1189_v26 = vadd.f32 %v3609_v29, %v1188_v22  ;;  %v4009_v6 = vpop.f32.mrb[54].mxu1 }
 0x55a   :  { %v1200_v10 = vadd.f32 %v4009_v6, %v3609_v29  ;;  %v1191_v32 = vpop.f32.mrb[55].mxu1  ;;  %v1241_v24 = vmax.f32 %v1197_v5, 0.0 }
 0x55b   :  { %v1192_v21 = vadd.f32 %v3609_v29, %v1191_v32  ;;  %v1239_v15 = vmax.f32 %v1189_v26, 0.0 }
 0x55c   :  { %v1242_v12 = vmax.f32 %v1200_v10, 0.0 }
 0x55d   :  { %v1240_v63 = vmax.f32 %v1192_v21, 0.0 }
 0x55e   :  { %v1254_v3 = vpack.c.bf16 %v1242_v12, %v1241_v24 }
 0x55f   :  { %v1253_v11 = vpack.c.bf16 %v1240_v63, %v1239_v15 }
 0x561   :  { %4038 = vmatprep.mubr.bf16.mxu0 %v1253_v11  ;;  %v4157_v11 = vld [vmem:[#allocation12 + $0x60] ss:$8 sps:$4 sm:$0xff]  }
 0x562   :  { %4039 = vmatmul.mubr.bf16.gmra.mrb[36].mxu0 %v1254_v3  ;;  %v4159_v3 = vld [vmem:[#allocation12 + $0x64] ss:$8 sps:$4 sm:$0xff]  }
 0x563   :  { %1587 = vmatprep.subr.bf16.mxu1 %v4159_v3  ;;  %v4202_v3 = vld [vmem:[%s6242_s8 + $0xd0] ss:$8 sps:$4 sm:$0xff]  }
 0x564   :  { %1588 = vmatpush1.bf16.msra.mxu1 %v4157_v11  ;;  %v5317_v11 = vld [vmem:[%s6166_s19] ss:$0 sm:$0xff] }
 0x567   :  { %v4012_v25 = vpop.f32.mrb[56].mxu1 }
 0x568   :  { %v1213_v27 = vadd.f32 %v4012_v25, %v3609_v29  ;;  %v1204_v30 = vpop.f32.mrb[57].mxu1  ;;  %v4162_v25 = vld [vmem:[#allocation12 + $0x74] ss:$8 sps:$4 sm:$0xff]  }
 0x569   :  { %v1205_v31 = vadd.f32 %v3609_v29, %v1204_v30  ;;  %v4013_v41 = vpop.f32.mrb[58].mxu1  ;;  %1589 = vmatprep.subr.bf16.mxu1 %v4162_v25  ;;  %v4165_v30 = vld [vmem:[%s6242_s8 + $0x4] ss:$8 sps:$4 sm:$0xff]  }
 0x56a   :  { %v1216_v39 = vadd.f32 %v4013_v41, %v3609_v29  ;;  %v1207_v40 = vpop.f32.mrb[59].mxu1  ;;  %v1245_v45 = vmax.f32 %v1213_v27, 0.0  ;;  %v4160_v27 = vld [vmem:[#allocation12 + $0x70] ss:$8 sps:$4 sm:$0xff]   ;;  %1940 = vmatprep.subr.bf16.mxu0 %v4165_v30 }
 0x56b   :  { %v1208_v42 = vadd.f32 %v3609_v29, %v1207_v40  ;;  %v1243_v59 = vmax.f32 %v1205_v31, 0.0  ;;  %1590 = vmatpush1.bf16.msra.mxu1 %v4160_v27  ;;  %v4168_v31 = vld [vmem:[%s6242_s8 + $0x14] ss:$8 sps:$4 sm:$0xff]   ;;  %v4166_v41 = vld [vmem:[%s6242_s8 + $0x10] ss:$8 sps:$4 sm:$0xff]  }
 0x56c   :  { %v1246_v48 = vmax.f32 %v1216_v39, 0.0  ;;  %v4171_v39 = vld [vmem:[%s6242_s8 + $0x24] ss:$8 sps:$4 sm:$0xff]   ;;  %v4169_v40 = vld [vmem:[%s6242_s8 + $0x20] ss:$8 sps:$4 sm:$0xff]  }
 0x56d   :  { %v1244_v51 = vmax.f32 %v1208_v42, 0.0  ;;  %v4174_v42 = vld [vmem:[%s6242_s8 + $0x34] ss:$8 sps:$4 sm:$0xff]  }
 0x56e   :  { %v1256_v53 = vpack.c.bf16 %v1246_v48, %v1245_v45  ;;  %v4172_v45 = vld [vmem:[%s6242_s8 + $0x30] ss:$8 sps:$4 sm:$0xff]   ;;  %v4177_v48 = vld [vmem:[%s6242_s8 + $0x44] ss:$8 sps:$4 sm:$0xff]  }
 0x56f   :  { %v1255_v54 = vpack.c.bf16 %v1244_v51, %v1243_v59  ;;  %v4175_v59 = vld [vmem:[%s6242_s8 + $0x40] ss:$8 sps:$4 sm:$0xff]   ;;  %v4180_v51 = vld [vmem:[%s6242_s8 + $0x54] ss:$8 sps:$4 sm:$0xff]  }
 0x571   :  { %4042 = vmatprep.mubr.bf16.mxu0 %v1255_v54  ;;  %v4183_v54 = vld [vmem:[%s6242_s8 + $0x64] ss:$8 sps:$4 sm:$0xff]  }
 0x572   :  { %4043 = vmatmul.mubr.bf16.gmra.mrb[40].mxu0 %v1256_v53  ;;  %v4178_v53 = vld [vmem:[%s6242_s8 + $0x50] ss:$8 sps:$4 sm:$0xff]  }
 0x577   :  { %v4016_v55 = vpop.f32.mrb[60].mxu1 }
 0x578   :  { %v1229_v58 = vadd.f32 %v4016_v55, %v3609_v29  ;;  %v1220_v61 = vpop.f32.mrb[61].mxu1  ;;  %v4181_v55 = vld [vmem:[%s6242_s8 + $0x60] ss:$8 sps:$4 sm:$0xff]  }
 0x579   :  { %v1221_v5 = vadd.f32 %v3609_v29, %v1220_v61  ;;  %v4017_v22 = vpop.f32.mrb[62].mxu1  ;;  %v4184_v61 = vld [vmem:[%s6242_s8 + $0x70] ss:$8 sps:$4 sm:$0xff]  }
 0x57a   :  { %v1232_v26 = vadd.f32 %v4017_v22, %v3609_v29  ;;  %v1223_v6 = vpop.f32.mrb[63].mxu1  ;;  %v1249_v32 = vmax.f32 %v1229_v58, 0.0  ;;  %v4186_v58 = vld [vmem:[%s6242_s8 + $0x74] ss:$8 sps:$4 sm:$0xff]   ;;  %v4187_v22 = vld [vmem:[%s6242_s8 + $0x80] ss:$8 sps:$4 sm:$0xff]  }
 0x57b   :  { %v1224_v10 = vadd.f32 %v3609_v29, %v1223_v6  ;;  %v1247_v24 = vmax.f32 %v1221_v5, 0.0  ;;  %v4163_v29 = vld [vmem:[%s6242_s8] ss:$8 sps:$4 sm:$0xff]   ;;  %v4189_v5 = vld [vmem:[%s6242_s8 + $0x84] ss:$8 sps:$4 sm:$0xff]  }
 0x57c   :  { %v1250_v21 = vmax.f32 %v1232_v26, 0.0  ;;  %1941 = vmatpush1.bf16.msra.mxu0 %v4163_v29  ;;  %v4192_v26 = vld [vmem:[%s6242_s8 + $0x94] ss:$8 sps:$4 sm:$0xff]   ;;  %v4190_v6 = vld [vmem:[%s6242_s8 + $0x90] ss:$8 sps:$4 sm:$0xff]  }
 0x57d   :  { %v1248_v12 = vmax.f32 %v1224_v10, 0.0  ;;  %1942 = vmatprep.subr.bf16.mxu0 %v4168_v31  ;;  %v4195_v10 = vld [vmem:[%s6242_s8 + $0xa4] ss:$8 sps:$4 sm:$0xff]  }
 0x57e   :  { %v1258_v15 = vpack.c.bf16 %v1250_v21, %v1249_v32  ;;  %v4193_v32 = vld [vmem:[%s6242_s8 + $0xa0] ss:$8 sps:$4 sm:$0xff]   ;;  %v4198_v21 = vld [vmem:[%s6242_s8 + $0xb4] ss:$8 sps:$4 sm:$0xff]  }
 0x57f   :  { %v1257_v63 = vpack.c.bf16 %v1248_v12, %v1247_v24  ;;  %v4196_v24 = vld [vmem:[%s6242_s8 + $0xb0] ss:$8 sps:$4 sm:$0xff]   ;;  %v4201_v12 = vld [vmem:[%s6242_s8 + $0xc4] ss:$8 sps:$4 sm:$0xff]  }
 0x580   :  { %1943 = vmatpush1.bf16.msra.mxu0 %v4166_v41 }
 0x581   :  { %4046 = vmatprep.mubr.bf16.mxu0 %v1257_v63  ;;  %1944 = vmatprep.subr.bf16.mxu0 %v4171_v39  ;;  %v4204_v63 = vld [vmem:[%s6242_s8 + $0xd4] ss:$8 sps:$4 sm:$0xff]  }
 0x582   :  { %4047 = vmatmul.mubr.bf16.gmra.mrb[44].mxu0 %v1258_v15  ;;  %v4199_v15 = vld [vmem:[%s6242_s8 + $0xc0] ss:$8 sps:$4 sm:$0xff]  }
 0x584   :  { %1945 = vmatpush1.bf16.msra.mxu0 %v4169_v40 }
 0x585   :  { %1946 = vmatprep.subr.bf16.mxu0 %v4174_v42 }
 0x588   :  { %1947 = vmatpush1.bf16.msra.mxu0 %v4172_v45 }
 0x589   :  { %1948 = vmatprep.subr.bf16.mxu0 %v4177_v48 }
 0x58c   :  { %1949 = vmatpush1.bf16.msra.mxu0 %v4175_v59 }
 0x58d   :  { %1950 = vmatprep.subr.bf16.mxu0 %v4180_v51 }
 0x590   :  { %1951 = vmatpush1.bf16.msra.mxu0 %v4178_v53 }
 0x591   :  { %1952 = vmatprep.subr.bf16.mxu0 %v4183_v54 }
 0x594   :  { %1953 = vmatpush1.bf16.msra.mxu0 %v4181_v55 }
 0x595   :  { %1954 = vmatprep.subr.bf16.mxu0 %v4186_v58 }
 0x598   :  { %1955 = vmatpush1.bf16.msra.mxu0 %v4184_v61 }
 0x599   :  { %1956 = vmatprep.subr.bf16.mxu0 %v4189_v5 }
 0x59c   :  { %1957 = vmatpush1.bf16.msra.mxu0 %v4187_v22 }
 0x59d   :  { %1958 = vmatprep.subr.bf16.mxu0 %v4192_v26 }
 0x5a0   :  { %1959 = vmatpush1.bf16.msra.mxu0 %v4190_v6 }
 0x5a1   :  { %1960 = vmatprep.subr.bf16.mxu0 %v4195_v10 }
 0x5a4   :  { %1961 = vmatpush1.bf16.msra.mxu0 %v4193_v32 }
 0x5a5   :  { %1962 = vmatprep.subr.bf16.mxu0 %v4198_v21 }
 0x5a8   :  { %1963 = vmatpush1.bf16.msra.mxu0 %v4196_v24 }
 0x5a9   :  { %1964 = vmatprep.subr.bf16.mxu0 %v4201_v12 }
 0x5ac   :  { %1965 = vmatpush1.bf16.msra.mxu0 %v4199_v15 }
 0x5ad   :  { %1966 = vmatprep.subr.bf16.mxu0 %v4204_v63 }
 0x5b0   :  { %1967 = vmatpush1.bf16.msra.mxu0 %v4202_v3 }
 0x5b1   :  { %1968 = vmatprep.subr.bf16.mxu0 %v4207_v57 }
 0x5b4   :  { %1969 = vmatpush1.bf16.msra.mxu0 %v4205_v23 }
 0x5b5   :  { %1970 = vmatprep.subr.bf16.mxu0 %v4210_v9 }
 0x625   :  { %v4036_v25 = vpop.f32.mrb[32].mxu0 }
 0x626   :  { %v1373_v27 = vadd.f32 %v4036_v25, %v5317_v11  ;;  %v1364_v29 = vpop.f32.mrb[33].mxu0 }
 0x627   :  { %v1365_v30 = vadd.f32 %v5317_v11, %v1364_v29  ;;  %v4037_v31 = vpop.f32.mrb[34].mxu0 }
 0x628   :  { %v1429_v41 = vadd.f32 %v1373_v27, %v1045_v43  ;;  %v1376_v39 = vadd.f32 %v4037_v31, %v5317_v11  ;;  %v1367_v40 = vpop.f32.mrb[35].mxu0 }
 0x629   :  { %v1427_v42 = vadd.f32 %v1365_v30, %v1043_v19  ;;  %v1368_v45 = vadd.f32 %v5317_v11, %v1367_v40 }
 0x62a   :  { %v1430_v48 = vadd.f32 %v1376_v39, %v1046_v17  ;;  %v1445_v51 = vmax.f32 %v1429_v41, 0.0 }
 0x62b   :  { %v1428_v59 = vadd.f32 %v1368_v45, %v1044_v38  ;;  %v1443_v54 = vmax.f32 %v1427_v42, 0.0 }
 0x62c   :  { %v1446_v53 = vmax.f32 %v1430_v48, 0.0 }
 0x62d   :  { %v1444_v55 = vmax.f32 %v1428_v59, 0.0 }
 0x62e   :  { %v1460_v4 = vpack.c.bf16 %v1446_v53, %v1445_v51 }
 0x62f   :  { %v1459_v43 = vpack.c.bf16 %v1444_v55, %v1443_v54 }
 0x631   :  { %1608 = vmatmul.mubr.bf16.vlgmr.msra.gmra.mrb[64].mxu1 %v1459_v43  ;;  %v4217_v43 = vld [vmem:[%s6243_s26 + $0x20] ss:$8 sps:$4 sm:$0xff]  }
 0x632   :  { %1617 = vmatprep.mubr.bf16.mxu1 %v4528_v1 }
 0x635   :  { %v4040_v58 = vpop.f32.mrb[36].mxu0 }
 0x636   :  { %v1389_v0 = vadd.f32 %v4040_v58, %v5317_v11  ;;  %v1380_v19 = vpop.f32.mrb[37].mxu0  ;;  %v4222_v58 = vld [vmem:[%s6243_s26 + $0x34] ss:$8 sps:$4 sm:$0xff]  }
 0x637   :  { %v1381_v61 = vadd.f32 %v5317_v11, %v1380_v19  ;;  %v4041_v8 = vpop.f32.mrb[38].mxu0  ;;  %v4225_v19 = vld [vmem:[%s6243_s26 + $0x44] ss:$8 sps:$4 sm:$0xff]  }
 0x638   :  { %v1433_v13 = vadd.f32 %v1389_v0, %v1049_v37  ;;  %v1392_v17 = vadd.f32 %v4041_v8, %v5317_v11  ;;  %v1383_v38 = vpop.f32.mrb[39].mxu0  ;;  %v4220_v0 = vld [vmem:[%s6243_s26 + $0x30] ss:$8 sps:$4 sm:$0xff]   ;;  %v4228_v8 = vld [vmem:[%s6243_s26 + $0x54] ss:$8 sps:$4 sm:$0xff]  }
 0x639   :  { %v1431_v5 = vadd.f32 %v1381_v61, %v1047_v7  ;;  %v1384_v22 = vadd.f32 %v5317_v11, %v1383_v38  ;;  %1618 = vmatmul.mubr.bf16.gmra.mrb[68].mxu1 %v1460_v4  ;;  %v4219_v4 = vld [vmem:[%s6243_s26 + $0x24] ss:$8 sps:$4 sm:$0xff]   ;;  %v4223_v61 = vld [vmem:[%s6243_s26 + $0x40] ss:$8 sps:$4 sm:$0xff]  }
 0x63a   :  { %v1434_v26 = vadd.f32 %v1392_v17, %v1050_v33  ;;  %1627 = vmatprep.mubr.bf16.mxu1 %v4528_v1  ;;  %v1449_v10 = vmax.f32 %v1433_v13, 0.0  ;;  %v4226_v13 = vld [vmem:[%s6243_s26 + $0x50] ss:$8 sps:$4 sm:$0xff]   ;;  %v4231_v17 = vld [vmem:[%s6243_s26 + $0x64] ss:$8 sps:$4 sm:$0xff]  }
 0x63b   :  { %v1432_v6 = vadd.f32 %v1384_v22, %v1048_v36  ;;  %v1447_v37 = vmax.f32 %v1431_v5, 0.0  ;;  %v4229_v38 = vld [vmem:[%s6243_s26 + $0x60] ss:$8 sps:$4 sm:$0xff]   ;;  %v4234_v5 = vld [vmem:[%s6243_s26 + $0x74] ss:$8 sps:$4 sm:$0xff]  }
 0x63c   :  { %v1450_v34 = vmax.f32 %v1434_v26, 0.0  ;;  %v4232_v22 = vld [vmem:[%s6243_s26 + $0x70] ss:$8 sps:$4 sm:$0xff]   ;;  %v4237_v26 = vld [vmem:[%s6243_s26 + $0x84] ss:$8 sps:$4 sm:$0xff]  }
 0x63d   :  { %v1448_v32 = vmax.f32 %v1432_v6, 0.0  ;;  %v4235_v6 = vld [vmem:[%s6243_s26 + $0x80] ss:$8 sps:$4 sm:$0xff]  }
 0x63e   :  { %v1462_v21 = vpack.c.bf16 %v1450_v34, %v1449_v10  ;;  %v4240_v10 = vld [vmem:[%s6243_s26 + $0x94] ss:$8 sps:$4 sm:$0xff]   ;;  %v4238_v34 = vld [vmem:[%s6243_s26 + $0x90] ss:$8 sps:$4 sm:$0xff]  }
 0x63f   :  { %v1461_v24 = vpack.c.bf16 %v1448_v32, %v1447_v37  ;;  %v4243_v37 = vld [vmem:[%s6243_s26 + $0xa4] ss:$8 sps:$4 sm:$0xff]   ;;  %v4241_v32 = vld [vmem:[%s6243_s26 + $0xa0] ss:$8 sps:$4 sm:$0xff]  }
 0x641   :  { %1628 = vmatmul.mubr.bf16.gmra.mrb[72].mxu1 %v1461_v24  ;;  %v4244_v24 = vld [vmem:[%s6243_s26 + $0xb0] ss:$8 sps:$4 sm:$0xff]  }
 0x642   :  { %1637 = vmatprep.mubr.bf16.mxu1 %v4528_v1 }
 0x645   :  { %v4044_v28 = vpop.f32.mrb[40].mxu0 }
 0x646   :  { %v1405_v7 = vadd.f32 %v4044_v28, %v5317_v11  ;;  %v1396_v12 = vpop.f32.mrb[41].mxu0  ;;  %v4249_v28 = vld [vmem:[%s6243_s26 + $0xc4] ss:$8 sps:$4 sm:$0xff]  }
 0x647   :  { %v1397_v35 = vadd.f32 %v5317_v11, %v1396_v12  ;;  %v4045_v33 = vpop.f32.mrb[42].mxu0  ;;  %v4247_v12 = vld [vmem:[%s6243_s26 + $0xc0] ss:$8 sps:$4 sm:$0xff]  }
 0x648   :  { %v1437_v44 = vadd.f32 %v1405_v7, %v1053_v62  ;;  %v1408_v36 = vadd.f32 %v4045_v33, %v5317_v11  ;;  %v1399_v15 = vpop.f32.mrb[43].mxu0  ;;  %v6192_v7 = vlaneseq }
 0x649   :  { %v1435_v63 = vadd.f32 %v1397_v35, %v1051_v52  ;;  %v1400_v3 = vadd.f32 %v5317_v11, %v1399_v15  ;;  %1638 = vmatmul.mubr.bf16.gmra.mrb[76].mxu1 %v1462_v21  ;;  %v4246_v21 = vld [vmem:[%s6243_s26 + $0xb4] ss:$8 sps:$4 sm:$0xff]   ;;  %v1483_v15 = vld [vmem:[%s6167_s20] sm:$0x3] }
 0x64a   :  { %v1438_v25 = vadd.f32 %v1408_v36, %v1054_v50  ;;  %1647 = vmatprep.mubr.bf16.mxu1 %v4528_v1  ;;  %v1453_v29 = vmax.f32 %v1437_v44, 0.0  ;;  %v4252_v35 = vld [vmem:[%s6243_s26 + $0xd4] ss:$8 sps:$4 sm:$0xff]   ;;  %v5468_v33 = vshrl.u32 %v6192_v7, 7  ;;  %v4250_v44 = vld [vmem:[%s6243_s26 + $0xd0] ss:$8 sps:$4 sm:$0xff]  }
 0x64b   :  { %v1436_v27 = vadd.f32 %v1400_v3, %v1052_v60  ;;  %v1451_v62 = vmax.f32 %v1435_v63, 0.0 }
 0x64c   :  { %v1454_v49 = vmax.f32 %v1438_v25, 0.0  ;;  %v5474_v36 = vsub.s32 1, %v5468_v33  ;;  %v5480_v63 = vsub.s32 0, %v5468_v33 }
 0x64d   :  { %v1452_v30 = vmax.f32 %v1436_v27, 0.0 }
 0x64e   :  { %v1464_v31 = vpack.c.bf16 %v1454_v49, %v1453_v29  ;;  %v5483_v3 = vrot.slane %v1483_v15, %v5474_v36  ;;  %v5486_v25 = vrot.slane %v1483_v15, %v5480_v63 }
 0x64f   :  { %v1463_v41 = vpack.c.bf16 %v1452_v30, %v1451_v62 }
 0x651   :  { %1648 = vmatmul.mubr.bf16.gmra.mrb[80].mxu1 %v1463_v41 }
 0x652   :  { %1657 = vmatprep.mubr.bf16.mxu1 %v4528_v1 }
 0x655   :  { %v4048_v46 = vpop.f32.mrb[44].mxu0 }
 0x656   :  { %v1421_v52 = vadd.f32 %v4048_v46, %v5317_v11  ;;  %v1412_v39 = vpop.f32.mrb[45].mxu0 }
 0x657   :  { %v1413_v56 = vadd.f32 %v5317_v11, %v1412_v39  ;;  %v4049_v50 = vpop.f32.mrb[46].mxu0 }
 0x658   :  { %v1441_v47 = vadd.f32 %v1421_v52, %v1057_v2  ;;  %v1424_v60 = vadd.f32 %v4049_v50, %v5317_v11  ;;  %v1415_v40 = vpop.f32.mrb[47].mxu0 }
 0x659   :  { %v1439_v42 = vadd.f32 %v1413_v56, %v1055_v16  ;;  %v1416_v45 = vadd.f32 %v5317_v11, %v1415_v40  ;;  %1658 = vmatmul.mubr.bf16.gmra.mrb[84].mxu1 %v1464_v31  ;;  %v4213_v16 = vld [vmem:[%s6243_s26 + $0x4] ss:$8 sps:$4 sm:$0xff]   ;;  %v4214_v11 = vld [vmem:[%s6243_s26 + $0x10] ss:$8 sps:$4 sm:$0xff]  }
 0x65a   :  { %v1442_v48 = vadd.f32 %v1424_v60, %v1058_v14  ;;  %1667 = vmatprep.mubr.bf16.mxu1 %v4528_v1  ;;  %v1457_v51 = vmax.f32 %v1441_v47, 0.0  ;;  %v4208_v14 = vld [vmem:[%s6242_s8 + $0xf0] ss:$8 sps:$4 sm:$0xff]   ;;  %2305 = vmatprep.subr.bf16.mxu1 %v4213_v16 }
 0x65b   :  { %v1440_v59 = vadd.f32 %v1416_v45, %v1056_v20  ;;  %v1455_v2 = vmax.f32 %v1439_v42, 0.0  ;;  %1971 = vmatpush1.bf16.msra.mxu0 %v4208_v14  ;;  %v4216_v20 = vld [vmem:[%s6243_s26 + $0x14] ss:$8 sps:$4 sm:$0xff]  }
 0x65c   :  { %v1458_v18 = vmax.f32 %v1442_v48, 0.0 }
 0x65d   :  { %v1456_v53 = vmax.f32 %v1440_v59, 0.0 }
 0x65e   :  { %v1466_v54 = vpack.c.bf16 %v1458_v18, %v1457_v51 }
 0x65f   :  { %v1465_v55 = vpack.c.bf16 %v1456_v53, %v1455_v2 }
 0x661   :  { %1668 = vmatmul.mubr.bf16.gmra.mrb[88].mxu1 %v1465_v55 }
 0x662   :  { %1677 = vmatprep.mubr.bf16.mxu1 %v4528_v1  ;;  %v4211_v1 = vld [vmem:[%s6243_s26] ss:$8 sps:$4 sm:$0xff]  }
 0x663   :  { %2306 = vmatpush1.bf16.msra.mxu1 %v4211_v1 }
 0x664   :  { %2307 = vmatprep.subr.bf16.mxu1 %v4216_v20 }
 0x667   :  { %2308 = vmatpush1.bf16.msra.mxu1 %v4214_v11 }
 0x668   :  { %2309 = vmatprep.subr.bf16.mxu1 %v4219_v4 }
 0x669   :  { %1678 = vmatmul.mubr.bf16.gmra.mrb[92].mxu1 %v1466_v54 }
 0x66b   :  { %2310 = vmatpush1.bf16.msra.mxu1 %v4217_v43 }
 0x66c   :  { %2311 = vmatprep.subr.bf16.mxu1 %v4222_v58 }
 0x66f   :  { %2312 = vmatpush1.bf16.msra.mxu1 %v4220_v0 }
 0x670   :  { %2313 = vmatprep.subr.bf16.mxu1 %v4225_v19 }
 0x673   :  { %2314 = vmatpush1.bf16.msra.mxu1 %v4223_v61 }
 0x674   :  { %2315 = vmatprep.subr.bf16.mxu1 %v4228_v8 }
 0x677   :  { %2316 = vmatpush1.bf16.msra.mxu1 %v4226_v13 }
 0x678   :  { %2317 = vmatprep.subr.bf16.mxu1 %v4231_v17 }
 0x67b   :  { %2318 = vmatpush1.bf16.msra.mxu1 %v4229_v38 }
 0x67c   :  { %2319 = vmatprep.subr.bf16.mxu1 %v4234_v5 }
 0x67f   :  { %2320 = vmatpush1.bf16.msra.mxu1 %v4232_v22 }
 0x680   :  { %2321 = vmatprep.subr.bf16.mxu1 %v4237_v26 }
 0x683   :  { %2322 = vmatpush1.bf16.msra.mxu1 %v4235_v6 }
 0x684   :  { %2323 = vmatprep.subr.bf16.mxu1 %v4240_v10 }
 0x687   :  { %2324 = vmatpush1.bf16.msra.mxu1 %v4238_v34 }
 0x688   :  { %2325 = vmatprep.subr.bf16.mxu1 %v4243_v37 }
 0x68b   :  { %2326 = vmatpush1.bf16.msra.mxu1 %v4241_v32 }
 0x68c   :  { %2327 = vmatprep.subr.bf16.mxu1 %v4246_v21 }
 0x68f   :  { %2328 = vmatpush1.bf16.msra.mxu1 %v4244_v24 }
 0x690   :  { %2329 = vmatprep.subr.bf16.mxu1 %v4249_v28 }
 0x693   :  { %2330 = vmatpush1.bf16.msra.mxu1 %v4247_v12 }
 0x694   :  { %2331 = vmatprep.subr.bf16.mxu1 %v4252_v35 }
 0x697   :  { %2332 = vmatpush1.bf16.msra.mxu1 %v4250_v44 }
 0x704   :  { %v1609_v27 = vpop.f32.mrb[64].mxu1 }
 0x705   :  { %v1611_v29 = vpop.f32.mrb[65].mxu1  ;;  %v5492_v30 = vadd.f32 %v1609_v27, %v5486_v25 }
 0x706   :  { %v5489_v49 = vadd.f32 %v1611_v29, %v5483_v3  ;;  %v1613_v62 = vpop.f32.mrb[66].mxu1 }
 0x707   :  { %v5495_v31 = vadd.f32 %v1613_v62, %v5486_v25  ;;  %v1615_v41 = vpop.f32.mrb[67].mxu1  ;;  %v1688_v50 = vmax.f32 %v5492_v30, 0.0 }
 0x708   :  { %v5498_v46 = vadd.f32 %v1615_v41, %v5483_v3  ;;  %v1689_v39 = vmax.f32 %v5489_v49, 0.0 }
 0x709   :  { %v1690_v52 = vmax.f32 %v5495_v31, 0.0 }
 0x70a   :  { %v1691_v56 = vmax.f32 %v5498_v46, 0.0 }
 0x70b   :  { %v1720_v40 = vpack.c.bf16 %v1690_v52, %v1688_v50 }
 0x70c   :  { %v1721_v47 = vpack.c.bf16 %v1691_v56, %v1689_v39  ;;  %v1619_v60 = vpop.f32.mrb[68].mxu1 }
 0x70d   :  { %v1621_v42 = vpop.f32.mrb[69].mxu1  ;;  %v5516_v59 = vadd.f32 %v1619_v60, %v5486_v25 }
 0x70e   :  { %v5513_v45 = vadd.f32 %v1621_v42, %v5483_v3  ;;  %v1623_v48 = vpop.f32.mrb[70].mxu1  ;;  %1972 = vmatprep.mubr.bf16.mxu0 %v1721_v47 }
 0x70f   :  { %v5519_v51 = vadd.f32 %v1623_v48, %v5486_v25  ;;  %v1625_v18 = vpop.f32.mrb[71].mxu1  ;;  %1973 = vmatmul.mubr.bf16.vlgmr.msra.gmra.mrb[48].mxu0 %v1720_v40  ;;  %v1692_v57 = vmax.f32 %v5516_v59, 0.0 }
 0x710   :  { %v5522_v2 = vadd.f32 %v1625_v18, %v5483_v3  ;;  %v1693_v54 = vmax.f32 %v5513_v45, 0.0 }
 0x711   :  { %v1694_v53 = vmax.f32 %v5519_v51, 0.0 }
 0x712   :  { %v1695_v55 = vmax.f32 %v5522_v2, 0.0 }
 0x713   :  { %v1722_v14 = vpack.c.bf16 %v1694_v53, %v1692_v57 }
 0x714   :  { %v1723_v23 = vpack.c.bf16 %v1695_v55, %v1693_v54  ;;  %v1629_v9 = vpop.f32.mrb[72].mxu1 }
 0x715   :  { %v1631_v1 = vpop.f32.mrb[73].mxu1  ;;  %v5540_v11 = vadd.f32 %v1629_v9, %v5486_v25 }
 0x716   :  { %v5537_v16 = vadd.f32 %v1631_v1, %v5483_v3  ;;  %v1633_v20 = vpop.f32.mrb[74].mxu1  ;;  %1982 = vmatprep.mubr.bf16.mxu0 %v1723_v23 }
 0x717   :  { %v5543_v4 = vadd.f32 %v1633_v20, %v5486_v25  ;;  %v1635_v43 = vpop.f32.mrb[75].mxu1  ;;  %1983 = vmatmul.mubr.bf16.gmra.mrb[52].mxu0 %v1722_v14  ;;  %v6216_v8 = vmax.f32 %v5540_v11, 0.0  ;;  %v6245_v51 = vmax.f32 %v5540_v11, 0.0 }
 0x718   :  { %v5546_v58 = vadd.f32 %v1635_v43, %v5483_v3  ;;  %v6215_v19 = vmax.f32 %v5537_v16, 0.0 }
 0x719   :  { %v6214_v0 = vmax.f32 %v5543_v4, 0.0 }
 0x71a   :  { %v6213_v61 = vmax.f32 %v5546_v58, 0.0 }
 0x71b   :  { %v1724_v38 = vpack.c.bf16 %v6214_v0, %v6216_v8 }
 0x71c   :  { %v1725_v13 = vpack.c.bf16 %v6213_v61, %v6215_v19  ;;  %v1639_v17 = vpop.f32.mrb[76].mxu1 }
 0x71d   :  { %v1641_v5 = vpop.f32.mrb[77].mxu1  ;;  %v5564_v6 = vadd.f32 %v1639_v17, %v5486_v25 }
 0x71e   :  { %v5561_v22 = vadd.f32 %v1641_v5, %v5483_v3  ;;  %v1643_v26 = vpop.f32.mrb[78].mxu1  ;;  %1992 = vmatprep.mubr.bf16.mxu0 %v1725_v13 }
 0x71f   :  { %v5567_v10 = vadd.f32 %v1643_v26, %v5486_v25  ;;  %v1645_v34 = vpop.f32.mrb[79].mxu1  ;;  %1993 = vmatmul.mubr.bf16.gmra.mrb[56].mxu0 %v1724_v38  ;;  %v6212_v28 = vmax.f32 %v5564_v6, 0.0 }
 0x720   :  { %v5570_v37 = vadd.f32 %v1645_v34, %v5483_v3  ;;  %v6211_v21 = vmax.f32 %v5561_v22, 0.0 }
 0x721   :  { %v6210_v32 = vmax.f32 %v5567_v10, 0.0 }
 0x722   :  { %v6209_v24 = vmax.f32 %v5570_v37, 0.0 }
 0x723   :  { %v1726_v44 = vpack.c.bf16 %v6210_v32, %v6212_v28 }
 0x724   :  { %v1727_v12 = vpack.c.bf16 %v6209_v24, %v6211_v21  ;;  %v1649_v35 = vpop.f32.mrb[80].mxu1 }
 0x725   :  { %v1651_v15 = vpop.f32.mrb[81].mxu1  ;;  %v5588_v62 = vadd.f32 %v1649_v35, %v5486_v25 }
 0x726   :  { %v5585_v27 = vadd.f32 %v1651_v15, %v5483_v3  ;;  %v1653_v29 = vpop.f32.mrb[82].mxu1  ;;  %2002 = vmatprep.mubr.bf16.mxu0 %v1727_v12 }
 0x727   :  { %v5591_v41 = vadd.f32 %v1653_v29, %v5486_v25  ;;  %v1655_v47 = vpop.f32.mrb[83].mxu1  ;;  %2003 = vmatmul.mubr.bf16.gmra.mrb[60].mxu0 %v1726_v44  ;;  %v6208_v18 = vmax.f32 %v5588_v62, 0.0 }
 0x728   :  { %v5594_v60 = vadd.f32 %v1655_v47, %v5483_v3  ;;  %v6207_v42 = vmax.f32 %v5585_v27, 0.0 }
 0x729   :  { %v6198_v40 = vmax.f32 %v5591_v41, 0.0 }
 0x72a   :  { %v6197_v48 = vmax.f32 %v5594_v60, 0.0 }
 0x72b   :  { %v1728_v14 = vpack.c.bf16 %v6198_v40, %v6208_v18 }
 0x72c   :  { %v1729_v23 = vpack.c.bf16 %v6197_v48, %v6207_v42  ;;  %v1659_v9 = vpop.f32.mrb[84].mxu1 }
 0x72d   :  { %v1661_v1 = vpop.f32.mrb[85].mxu1  ;;  %v5612_v13 = vadd.f32 %v1659_v9, %v5486_v25 }
 0x72e   :  { %v5609_v20 = vadd.f32 %v1661_v1, %v5483_v3  ;;  %v1663_v43 = vpop.f32.mrb[86].mxu1  ;;  %2012 = vmatprep.mubr.bf16.mxu0 %v1729_v23 }
 0x72f   :  { %v5615_v17 = vadd.f32 %v1663_v43, %v5486_v25  ;;  %v1665_v38 = vpop.f32.mrb[87].mxu1  ;;  %2013 = vmatmul.mubr.bf16.gmra.mrb[64].mxu0 %v1728_v14  ;;  %v6196_v35 = vmax.f32 %v5612_v13, 0.0 }
 0x730   :  { %v5618_v5 = vadd.f32 %v1665_v38, %v5483_v3  ;;  %v6195_v34 = vmax.f32 %v5609_v20, 0.0 }
 0x731   :  { %v6194_v26 = vmax.f32 %v5615_v17, 0.0 }
 0x732   :  { %v6193_v12 = vmax.f32 %v5618_v5, 0.0 }
 0x733   :  { %v1730_v29 = vpack.c.bf16 %v6194_v26, %v6196_v35 }
 0x734   :  { %v1731_v44 = vpack.c.bf16 %v6193_v12, %v6195_v34  ;;  %v1669_v15 = vpop.f32.mrb[88].mxu1 }
 0x735   :  { %v1671_v47 = vpop.f32.mrb[89].mxu1  ;;  %v5636_v14 = vadd.f32 %v1669_v15, %v5486_v25 }
 0x736   :  { %v5633_v23 = vadd.f32 %v1671_v47, %v5483_v3  ;;  %v1673_v9 = vpop.f32.mrb[90].mxu1  ;;  %2022 = vmatprep.mubr.bf16.mxu0 %v1731_v44 }
 0x737   :  { %v5639_v1 = vadd.f32 %v1673_v9, %v5486_v25  ;;  %v1675_v43 = vpop.f32.mrb[91].mxu1  ;;  %2023 = vmatmul.mubr.bf16.gmra.mrb[68].mxu0 %v1730_v29  ;;  %v6202_v26 = vmax.f32 %v5636_v14, 0.0 }
 0x738   :  { %v5642_v38 = vadd.f32 %v1675_v43, %v5483_v3  ;;  %v6200_v12 = vmax.f32 %v5633_v23, 0.0 }
 0x739   :  { %v6201_v7 = vmax.f32 %v5639_v1, 0.0 }
 0x73a   :  { %v6199_v47 = vmax.f32 %v5642_v38, 0.0 }
 0x73b   :  { %v1732_v29 = vpack.c.bf16 %v6201_v7, %v6202_v26 }
 0x73c   :  { %v1733_v44 = vpack.c.bf16 %v6199_v47, %v6200_v12  ;;  %v1679_v15 = vpop.f32.mrb[92].mxu1 }
 0x73d   :  { %v1681_v9 = vpop.f32.mrb[93].mxu1  ;;  %v5660_v35 = vadd.f32 %v1679_v15, %v5486_v25  ;;  %v4256_v15 = vld [vmem:[%s6243_s26 + $0xf0] ss:$8 sps:$4 sm:$0xff]  }
 0x73e   :  { %v5657_v43 = vadd.f32 %v1681_v9, %v5483_v3  ;;  %v1683_v34 = vpop.f32.mrb[94].mxu1  ;;  %2032 = vmatprep.mubr.bf16.mxu0 %v1733_v44 }
 0x73f   :  { %v5663_v48 = vadd.f32 %v1683_v34, %v5486_v25  ;;  %v1685_v40 = vpop.f32.mrb[95].mxu1  ;;  %2033 = vmatmul.mubr.bf16.gmra.mrb[72].mxu0 %v1732_v29  ;;  %v6206_v26 = vmax.f32 %v5660_v35, 0.0  ;;  %v4258_v34 = vld [vmem:[%s6243_s26 + $0xf4] ss:$8 sps:$4 sm:$0xff]   ;;  %v4259_v29 = vld [vmem:[%s6244_s28] ss:$8 sps:$4 sm:$0xff]  }
 0x740   :  { %v5666_v47 = vadd.f32 %v1685_v40, %v5483_v3  ;;  %v6205_v7 = vmax.f32 %v5657_v43, 0.0  ;;  %v4255_v3 = vld [vmem:[%s6243_s26 + $0xe4] ss:$8 sps:$4 sm:$0xff]   ;;  %v4253_v40 = vld [vmem:[%s6243_s26 + $0xe0] ss:$8 sps:$4 sm:$0xff]  }
 0x741   :  { %v6204_v12 = vmax.f32 %v5663_v48, 0.0  ;;  %2333 = vmatprep.subr.bf16.mxu1 %v4255_v3  ;;  %v4262_v3 = vld [vmem:[%s6244_s28 + $0x10] ss:$8 sps:$4 sm:$0xff]  }
 0x742   :  { %v6203_v9 = vmax.f32 %v5666_v47, 0.0  ;;  %2334 = vmatpush1.bf16.msra.mxu1 %v4253_v40  ;;  %v4267_v40 = vld [vmem:[%s6244_s28 + $0x24] ss:$8 sps:$4 sm:$0xff]  }
 0x743   :  { %v1734_v25 = vpack.c.bf16 %v6204_v12, %v6206_v26  ;;  %2335 = vmatprep.subr.bf16.mxu1 %v4258_v34  ;;  %v4265_v34 = vld [vmem:[%s6244_s28 + $0x20] ss:$8 sps:$4 sm:$0xff]  }
 0x744   :  { %v1735_v44 = vpack.c.bf16 %v6203_v9, %v6205_v7 }
 0x746   :  { %2042 = vmatprep.mubr.bf16.mxu0 %v1735_v44  ;;  %2336 = vmatpush1.bf16.msra.mxu1 %v4256_v15  ;;  %v4261_v44 = vld [vmem:[%s6244_s28 + $0x4] ss:$8 sps:$4 sm:$0xff]   ;;  %v4270_v15 = vld [vmem:[%s6244_s28 + $0x34] ss:$8 sps:$4 sm:$0xff]  }
 0x747   :  { %2043 = vmatmul.mubr.bf16.gmra.mrb[76].mxu0 %v1734_v25  ;;  %v4264_v25 = vld [vmem:[%s6244_s28 + $0x14] ss:$8 sps:$4 sm:$0xff]   ;;  %2702 = vmatprep.subr.bf16.mxu0 %v4261_v44  ;;  %v4273_v44 = vld [vmem:[%s6244_s28 + $0x44] ss:$8 sps:$4 sm:$0xff]  }
 0x748   :  { %2703 = vmatpush1.bf16.msra.mxu0 %v4259_v29  ;;  %v4268_v29 = vld [vmem:[%s6244_s28 + $0x30] ss:$8 sps:$4 sm:$0xff]  }
 0x749   :  { %2704 = vmatprep.subr.bf16.mxu0 %v4264_v25  ;;  %v4271_v25 = vld [vmem:[%s6244_s28 + $0x40] ss:$8 sps:$4 sm:$0xff]  }
 0x74c   :  { %2705 = vmatpush1.bf16.msra.mxu0 %v4262_v3  ;;  %v4276_v3 = vld [vmem:[%s6244_s28 + $0x54] ss:$8 sps:$4 sm:$0xff]  }
 0x74d   :  { %2706 = vmatprep.subr.bf16.mxu0 %v4267_v40  ;;  %v4274_v40 = vld [vmem:[%s6244_s28 + $0x50] ss:$8 sps:$4 sm:$0xff]  }
 0x750   :  { %2707 = vmatpush1.bf16.msra.mxu0 %v4265_v34  ;;  %v4279_v34 = vld [vmem:[%s6244_s28 + $0x64] ss:$8 sps:$4 sm:$0xff]  }
 0x751   :  { %2708 = vmatprep.subr.bf16.mxu0 %v4270_v15  ;;  %v4277_v15 = vld [vmem:[%s6244_s28 + $0x60] ss:$8 sps:$4 sm:$0xff]  }
 0x754   :  { %2709 = vmatpush1.bf16.msra.mxu0 %v4268_v29  ;;  %v4282_v29 = vld [vmem:[%s6244_s28 + $0x74] ss:$8 sps:$4 sm:$0xff]  }
 0x755   :  { %2710 = vmatprep.subr.bf16.mxu0 %v4273_v44  ;;  %v4280_v44 = vld [vmem:[%s6244_s28 + $0x70] ss:$8 sps:$4 sm:$0xff]  }
 0x758   :  { %2711 = vmatpush1.bf16.msra.mxu0 %v4271_v25  ;;  %v4285_v25 = vld [vmem:[%s6244_s28 + $0x84] ss:$8 sps:$4 sm:$0xff]  }
 0x759   :  { %2712 = vmatprep.subr.bf16.mxu0 %v4276_v3  ;;  %v4283_v3 = vld [vmem:[%s6244_s28 + $0x80] ss:$8 sps:$4 sm:$0xff]  }
 0x75c   :  { %2713 = vmatpush1.bf16.msra.mxu0 %v4274_v40  ;;  %v4288_v40 = vld [vmem:[%s6244_s28 + $0x94] ss:$8 sps:$4 sm:$0xff]  }
 0x75d   :  { %2714 = vmatprep.subr.bf16.mxu0 %v4279_v34  ;;  %v4286_v34 = vld [vmem:[%s6244_s28 + $0x90] ss:$8 sps:$4 sm:$0xff]  }
 0x760   :  { %2715 = vmatpush1.bf16.msra.mxu0 %v4277_v15  ;;  %v4291_v15 = vld [vmem:[%s6244_s28 + $0xa4] ss:$8 sps:$4 sm:$0xff]  }
 0x761   :  { %2716 = vmatprep.subr.bf16.mxu0 %v4282_v29  ;;  %v4289_v29 = vld [vmem:[%s6244_s28 + $0xa0] ss:$8 sps:$4 sm:$0xff]  }
 0x764   :  { %2717 = vmatpush1.bf16.msra.mxu0 %v4280_v44  ;;  %v4294_v44 = vld [vmem:[%s6244_s28 + $0xb4] ss:$8 sps:$4 sm:$0xff]  }
 0x765   :  { %2718 = vmatprep.subr.bf16.mxu0 %v4285_v25  ;;  %v4292_v25 = vld [vmem:[%s6244_s28 + $0xb0] ss:$8 sps:$4 sm:$0xff]  }
 0x768   :  { %2719 = vmatpush1.bf16.msra.mxu0 %v4283_v3  ;;  %v4297_v3 = vld [vmem:[%s6244_s28 + $0xc4] ss:$8 sps:$4 sm:$0xff]  }
 0x769   :  { %2720 = vmatprep.subr.bf16.mxu0 %v4288_v40  ;;  %v4295_v40 = vld [vmem:[%s6244_s28 + $0xc0] ss:$8 sps:$4 sm:$0xff]  }
 0x76c   :  { %2721 = vmatpush1.bf16.msra.mxu0 %v4286_v34  ;;  %v1768_v34 = vld [vmem:[%s6168_s21] sm:$0x3] }
 0x76d   :  { %2722 = vmatprep.subr.bf16.mxu0 %v4291_v15  ;;  %v5774_v15 = vrot.slane %v1768_v34, %v5480_v63 }
 0x770   :  { %2723 = vmatpush1.bf16.msra.mxu0 %v4289_v29  ;;  %v5777_v29 = vrot.slane %v1768_v34, %v5474_v36 }
 0x771   :  { %2724 = vmatprep.subr.bf16.mxu0 %v4294_v44 }
 0x774   :  { %2725 = vmatpush1.bf16.msra.mxu0 %v4292_v25 }
 0x775   :  { %2726 = vmatprep.subr.bf16.mxu0 %v4297_v3 }
 0x778   :  { %2727 = vmatpush1.bf16.msra.mxu0 %v4295_v40 }
 0x7e2   :  { %v1974_v44 = vpop.f32.mrb[48].mxu0 }
 0x7e3   :  { %v1975_v9 = vadd.f32 %v1974_v44, %v5774_v15  ;;  %v1976_v25 = vpop.f32.mrb[49].mxu0 }
 0x7e4   :  { %v1977_v12 = vadd.f32 %v1976_v25, %v5777_v29  ;;  %v1978_v7 = vpop.f32.mrb[50].mxu0 }
 0x7e5   :  { %v1979_v3 = vadd.f32 %v1978_v7, %v5774_v15  ;;  %v1980_v40 = vpop.f32.mrb[51].mxu0  ;;  %v2053_v42 = vmax.f32 %v1975_v9, 0.0 }
 0x7e6   :  { %v1981_v26 = vadd.f32 %v1980_v40, %v5777_v29  ;;  %v2054_v24 = vmax.f32 %v1977_v12, 0.0 }
 0x7e7   :  { %v2055_v18 = vmax.f32 %v1979_v3, 0.0 }
 0x7e8   :  { %v2056_v32 = vmax.f32 %v1981_v26, 0.0 }
 0x7e9   :  { %v2085_v21 = vpack.c.bf16 %v2055_v18, %v2053_v42 }
 0x7ea   :  { %v2086_v28 = vpack.c.bf16 %v2056_v32, %v2054_v24  ;;  %v1984_v34 = vpop.f32.mrb[52].mxu0 }
 0x7eb   :  { %v1985_v61 = vadd.f32 %v1984_v34, %v5774_v15  ;;  %v1986_v0 = vpop.f32.mrb[53].mxu0 }
 0x7ec   :  { %v1987_v44 = vadd.f32 %v1986_v0, %v5777_v29  ;;  %v1988_v19 = vpop.f32.mrb[54].mxu0  ;;  %2337 = vmatprep.mubr.bf16.mxu1 %v2086_v28 }
 0x7ed   :  { %v1989_v25 = vadd.f32 %v1988_v19, %v5774_v15  ;;  %v1990_v7 = vpop.f32.mrb[55].mxu0  ;;  %2338 = vmatmul.mubr.bf16.vlgmr.msra.gmra.mrb[96].mxu1 %v2085_v21  ;;  %v2057_v9 = vmax.f32 %v1985_v61, 0.0 }
 0x7ee   :  { %v1991_v40 = vadd.f32 %v1990_v7, %v5777_v29  ;;  %v2058_v12 = vmax.f32 %v1987_v44, 0.0 }
 0x7ef   :  { %v2059_v3 = vmax.f32 %v1989_v25, 0.0 }
 0x7f0   :  { %v2060_v26 = vmax.f32 %v1991_v40, 0.0 }
 0x7f1   :  { %v2087_v42 = vpack.c.bf16 %v2059_v3, %v2057_v9 }
 0x7f2   :  { %v2088_v32 = vpack.c.bf16 %v2060_v26, %v2058_v12  ;;  %v1994_v24 = vpop.f32.mrb[56].mxu0 }
 0x7f3   :  { %v1995_v18 = vadd.f32 %v1994_v24, %v5774_v15  ;;  %v1996_v34 = vpop.f32.mrb[57].mxu0 }
 0x7f4   :  { %v1997_v0 = vadd.f32 %v1996_v34, %v5777_v29  ;;  %v1998_v8 = vpop.f32.mrb[58].mxu0  ;;  %2347 = vmatprep.mubr.bf16.mxu1 %v2088_v32 }
 0x7f5   :  { %v1999_v19 = vadd.f32 %v1998_v8, %v5774_v15  ;;  %v2000_v28 = vpop.f32.mrb[59].mxu0  ;;  %2348 = vmatmul.mubr.bf16.gmra.mrb[100].mxu1 %v2087_v42  ;;  %v2061_v61 = vmax.f32 %v1995_v18, 0.0 }
 0x7f6   :  { %v2001_v21 = vadd.f32 %v2000_v28, %v5777_v29  ;;  %v2062_v44 = vmax.f32 %v1997_v0, 0.0 }
 0x7f7   :  { %v2063_v25 = vmax.f32 %v1999_v19, 0.0 }
 0x7f8   :  { %v2064_v7 = vmax.f32 %v2001_v21, 0.0 }
 0x7f9   :  { %v2089_v40 = vpack.c.bf16 %v2063_v25, %v2061_v61 }
 0x7fa   :  { %v2090_v9 = vpack.c.bf16 %v2064_v7, %v2062_v44  ;;  %v2004_v3 = vpop.f32.mrb[60].mxu0 }
 0x7fb   :  { %v2005_v12 = vadd.f32 %v2004_v3, %v5774_v15  ;;  %v2006_v26 = vpop.f32.mrb[61].mxu0 }
 0x7fc   :  { %v2007_v24 = vadd.f32 %v2006_v26, %v5777_v29  ;;  %v2008_v34 = vpop.f32.mrb[62].mxu0  ;;  %2357 = vmatprep.mubr.bf16.mxu1 %v2090_v9 }
 0x7fd   :  { %v2009_v8 = vadd.f32 %v2008_v34, %v5774_v15  ;;  %v2010_v32 = vpop.f32.mrb[63].mxu0  ;;  %2358 = vmatmul.mubr.bf16.gmra.mrb[104].mxu1 %v2089_v40  ;;  %v2065_v18 = vmax.f32 %v2005_v12, 0.0 }
 0x7fe   :  { %v2011_v42 = vadd.f32 %v2010_v32, %v5777_v29  ;;  %v2066_v0 = vmax.f32 %v2007_v24, 0.0 }
 0x7ff   :  { %v2067_v19 = vmax.f32 %v2009_v8, 0.0 }
 0x800   :  { %v2068_v28 = vmax.f32 %v2011_v42, 0.0 }
 0x801   :  { %v2091_v21 = vpack.c.bf16 %v2067_v19, %v2065_v18 }
 0x802   :  { %v2092_v61 = vpack.c.bf16 %v2068_v28, %v2066_v0  ;;  %v2014_v25 = vpop.f32.mrb[64].mxu0 }
 0x803   :  { %v2015_v44 = vadd.f32 %v2014_v25, %v5774_v15  ;;  %v2016_v7 = vpop.f32.mrb[65].mxu0 }
 0x804   :  { %v2017_v3 = vadd.f32 %v2016_v7, %v5777_v29  ;;  %v2018_v26 = vpop.f32.mrb[66].mxu0  ;;  %2367 = vmatprep.mubr.bf16.mxu1 %v2092_v61 }
 0x805   :  { %v2019_v9 = vadd.f32 %v2018_v26, %v5774_v15  ;;  %v2020_v34 = vpop.f32.mrb[67].mxu0  ;;  %2368 = vmatmul.mubr.bf16.gmra.mrb[108].mxu1 %v2091_v21  ;;  %v2069_v12 = vmax.f32 %v2015_v44, 0.0 }
 0x806   :  { %v2021_v40 = vadd.f32 %v2020_v34, %v5777_v29  ;;  %v2070_v24 = vmax.f32 %v2017_v3, 0.0 }
 0x807   :  { %v2071_v8 = vmax.f32 %v2019_v9, 0.0 }
 0x808   :  { %v2072_v32 = vmax.f32 %v2021_v40, 0.0 }
 0x809   :  { %v2093_v42 = vpack.c.bf16 %v2071_v8, %v2069_v12 }
 0x80a   :  { %v2094_v18 = vpack.c.bf16 %v2072_v32, %v2070_v24  ;;  %v2024_v19 = vpop.f32.mrb[68].mxu0 }
 0x80b   :  { %v2025_v0 = vadd.f32 %v2024_v19, %v5774_v15  ;;  %v2026_v28 = vpop.f32.mrb[69].mxu0 }
 0x80c   :  { %v2027_v25 = vadd.f32 %v2026_v28, %v5777_v29  ;;  %v2028_v7 = vpop.f32.mrb[70].mxu0  ;;  %2377 = vmatprep.mubr.bf16.mxu1 %v2094_v18 }
 0x80d   :  { %v2029_v61 = vadd.f32 %v2028_v7, %v5774_v15  ;;  %v2030_v26 = vpop.f32.mrb[71].mxu0  ;;  %2378 = vmatmul.mubr.bf16.gmra.mrb[112].mxu1 %v2093_v42  ;;  %v2073_v44 = vmax.f32 %v2025_v0, 0.0 }
 0x80e   :  { %v2031_v21 = vadd.f32 %v2030_v26, %v5777_v29  ;;  %v2074_v3 = vmax.f32 %v2027_v25, 0.0 }
 0x80f   :  { %v2075_v9 = vmax.f32 %v2029_v61, 0.0 }
 0x810   :  { %v2076_v34 = vmax.f32 %v2031_v21, 0.0 }
 0x811   :  { %v2095_v40 = vpack.c.bf16 %v2075_v9, %v2073_v44 }
 0x812   :  { %v2096_v12 = vpack.c.bf16 %v2076_v34, %v2074_v3  ;;  %v2034_v8 = vpop.f32.mrb[72].mxu0 }
 0x813   :  { %v2035_v24 = vadd.f32 %v2034_v8, %v5774_v15  ;;  %v2036_v32 = vpop.f32.mrb[73].mxu0 }
 0x814   :  { %v2037_v19 = vadd.f32 %v2036_v32, %v5777_v29  ;;  %v2038_v28 = vpop.f32.mrb[74].mxu0  ;;  %2387 = vmatprep.mubr.bf16.mxu1 %v2096_v12 }
 0x815   :  { %v2039_v18 = vadd.f32 %v2038_v28, %v5774_v15  ;;  %v2040_v7 = vpop.f32.mrb[75].mxu0  ;;  %2388 = vmatmul.mubr.bf16.gmra.mrb[116].mxu1 %v2095_v40  ;;  %v2077_v0 = vmax.f32 %v2035_v24, 0.0 }
 0x816   :  { %v2041_v42 = vadd.f32 %v2040_v7, %v5777_v29  ;;  %v2078_v25 = vmax.f32 %v2037_v19, 0.0 }
 0x817   :  { %v2079_v61 = vmax.f32 %v2039_v18, 0.0 }
 0x818   :  { %v2080_v26 = vmax.f32 %v2041_v42, 0.0 }
 0x819   :  { %v2097_v21 = vpack.c.bf16 %v2079_v61, %v2077_v0  ;;  %v4300_v61 = vld [vmem:[%s6244_s28 + $0xd4] ss:$8 sps:$4 sm:$0xff]  }
 0x81a   :  { %v2098_v44 = vpack.c.bf16 %v2080_v26, %v2078_v25  ;;  %v2044_v9 = vpop.f32.mrb[76].mxu0  ;;  %2728 = vmatprep.subr.bf16.mxu0 %v4300_v61  ;;  %v4301_v25 = vld [vmem:[%s6244_s28 + $0xe0] ss:$8 sps:$4 sm:$0xff]   ;;  %v4306_v26 = vld [vmem:[%s6244_s28 + $0xf4] ss:$8 sps:$4 sm:$0xff]  }
 0x81b   :  { %v2045_v3 = vadd.f32 %v2044_v9, %v5774_v15  ;;  %v2046_v34 = vpop.f32.mrb[77].mxu0  ;;  %v4308_v9 = vld [vmem:[#allocation14] sm:$0xff]  }
 0x81c   :  { %v2047_v8 = vadd.f32 %v2046_v34, %v5777_v29  ;;  %v2048_v32 = vpop.f32.mrb[78].mxu0  ;;  %2397 = vmatprep.mubr.bf16.mxu1 %v2098_v44  ;;  %v4307_v44 = vld [vmem:[#allocation14 + $0x40] sm:$0xff]   ;;  %v4310_v34 = vld [vmem:[#allocation14 + $0x8] sm:$0xff]  }
 0x81d   :  { %v2049_v12 = vadd.f32 %v2048_v32, %v5774_v15  ;;  %v2050_v28 = vpop.f32.mrb[79].mxu0  ;;  %2398 = vmatmul.mubr.bf16.gmra.mrb[120].mxu1 %v2097_v21  ;;  %v2081_v24 = vmax.f32 %v2045_v3, 0.0  ;;  %v4298_v15 = vld [vmem:[%s6244_s28 + $0xd0] ss:$8 sps:$4 sm:$0xff]   ;;  %3834 = vmatprep.subr.bf16.mxu1 %v4307_v44 }
 0x81e   :  { %v2051_v40 = vadd.f32 %v2050_v28, %v5777_v29  ;;  %v2082_v19 = vmax.f32 %v2047_v8, 0.0  ;;  %2729 = vmatpush1.bf16.msra.mxu0 %v4298_v15  ;;  %v4303_v29 = vld [vmem:[%s6244_s28 + $0xe4] ss:$8 sps:$4 sm:$0xff]   ;;  %v4304_v21 = vld [vmem:[%s6244_s28 + $0xf0] ss:$8 sps:$4 sm:$0xff]   ;;  %3835 = vmatpush3.bf16.msra.mxu1 %v4308_v9 }
 0x81f   :  { %v2083_v18 = vmax.f32 %v2049_v12, 0.0  ;;  %2730 = vmatprep.subr.bf16.mxu0 %v4303_v29  ;;  %v4309_v3 = vld [vmem:[#allocation14 + $0x48] sm:$0xff]   ;;  %v4311_v8 = vld [vmem:[#allocation14 + $0x50] sm:$0xff]   ;;  %v4313_v12 = vld [vmem:[#allocation14 + $0x58] sm:$0xff]  }
 0x820   :  { %v2084_v7 = vmax.f32 %v2051_v40, 0.0  ;;  %3836 = vmatprep.subr.bf16.mxu1 %v4309_v3  ;;  %v4312_v32 = vld [vmem:[#allocation14 + $0x10] sm:$0xff]   ;;  %v4314_v28 = vld [vmem:[#allocation14 + $0x18] sm:$0xff]   ;;  %v4315_v40 = vld [vmem:[#allocation14 + $0x60] sm:$0xff]  }
 0x821   :  { %v2099_v42 = vpack.c.bf16 %v2083_v18, %v2081_v24  ;;  %v4316_v24 = vld [vmem:[#allocation14 + $0x20] sm:$0xff]   ;;  %v4317_v18 = vld [vmem:[#allocation14 + $0x68] sm:$0xff]  }
 0x822   :  { %v2100_v0 = vpack.c.bf16 %v2084_v7, %v2082_v19  ;;  %2731 = vmatpush1.bf16.msra.mxu0 %v4301_v25  ;;  %3837 = vmatpush3.bf16.msra.mxu1 %v4310_v34  ;;  %v4318_v19 = vld [vmem:[#allocation14 + $0x28] sm:$0xff]   ;;  %v4319_v7 = vld [vmem:[#allocation14 + $0x70] sm:$0xff]  }
 0x823   :  { %2732 = vmatprep.subr.bf16.mxu0 %v4306_v26  ;;  %3838 = vmatprep.subr.bf16.mxu1 %v4311_v8 }
 0x824   :  { %2407 = vmatprep.mubr.bf16.mxu1 %v2100_v0  ;;  %v2133_v0 = vld [vmem:[%s6169_s22] sm:$0x3] }
 0x825   :  { %2408 = vmatmul.mubr.bf16.gmra.mrb[124].mxu1 %v2099_v42  ;;  %v4320_v42 = vld [vmem:[#allocation14 + $0x30] sm:$0xff]   ;;  %v5833_v61 = vrot.slane %v2133_v0, %v5480_v63  ;;  %v5836_v15 = vrot.slane %v2133_v0, %v5474_v36 }
 0x826   :  { %2733 = vmatpush1.bf16.msra.mxu0 %v4304_v21  ;;  %3839 = vmatpush3.bf16.msra.mxu1 %v4312_v32 }
 0x827   :  { %3840 = vmatprep.subr.bf16.mxu1 %v4313_v12 }
 0x82a   :  { %3841 = vmatpush3.bf16.msra.mxu1 %v4314_v28 }
 0x82b   :  { %3842 = vmatprep.subr.bf16.mxu1 %v4315_v40 }
 0x82e   :  { %3843 = vmatpush3.bf16.msra.mxu1 %v4316_v24 }
 0x82f   :  { %3844 = vmatprep.subr.bf16.mxu1 %v4317_v18 }
 0x832   :  { %3845 = vmatpush3.bf16.msra.mxu1 %v4318_v19 }
 0x833   :  { %3846 = vmatprep.subr.bf16.mxu1 %v4319_v7 }
 0x836   :  { %3847 = vmatpush3.bf16.msra.mxu1 %v4320_v42 }
 0x8c0   :  { %v2339_v29 = vpop.f32.mrb[96].mxu1 }
 0x8c1   :  { %v2340_v25 = vadd.f32 %v2339_v29, %v5833_v61  ;;  %v2341_v26 = vpop.f32.mrb[97].mxu1 }
 0x8c2   :  { %v2342_v21 = vadd.f32 %v2341_v26, %v5836_v15  ;;  %v2343_v44 = vpop.f32.mrb[98].mxu1 }
 0x8c3   :  { %v2418_v9 = vadd.f32 %v2340_v25, %v1688_v50  ;;  %v2344_v3 = vadd.f32 %v2343_v44, %v5833_v61  ;;  %v2345_v34 = vpop.f32.mrb[99].mxu1 }
 0x8c4   :  { %v2419_v8 = vadd.f32 %v2342_v21, %v1689_v39  ;;  %v2346_v32 = vadd.f32 %v2345_v34, %v5836_v15 }
 0x8c5   :  { %v2420_v12 = vadd.f32 %v2344_v3, %v1690_v52  ;;  %v2450_v40 = vmax.f32 %v2418_v9, 0.0 }
 0x8c6   :  { %v2421_v28 = vadd.f32 %v2346_v32, %v1691_v56  ;;  %v2451_v18 = vmax.f32 %v2419_v8, 0.0 }
 0x8c7   :  { %v2452_v24 = vmax.f32 %v2420_v12, 0.0 }
 0x8c8   :  { %v2453_v19 = vmax.f32 %v2421_v28, 0.0  ;;  %v2349_v30 = vpop.f32.mrb[100].mxu1 }
 0x8c9   :  { %v2482_v50 = vpack.c.bf16 %v2452_v24, %v2450_v40  ;;  %v2350_v7 = vadd.f32 %v2349_v30, %v5833_v61  ;;  %v2351_v42 = vpop.f32.mrb[101].mxu1  ;;  %v6247_v24 = vmax.f32 %v5543_v4, 0.0  ;;  %v6249_v4 = vmax.f32 %v5564_v6, 0.0 }
 0x8ca   :  { %v2352_v49 = vadd.f32 %v2351_v42, %v5836_v15  ;;  %v2353_v39 = vpop.f32.mrb[102].mxu1  ;;  %v2483_v0 = vpack.c.bf16 %v2453_v19, %v2451_v18  ;;  %v6248_v19 = vmax.f32 %v5546_v58, 0.0 }
 0x8cb   :  { %v2422_v31 = vadd.f32 %v2350_v7, %v1692_v57  ;;  %v2354_v52 = vadd.f32 %v2353_v39, %v5833_v61  ;;  %v2355_v46 = vpop.f32.mrb[103].mxu1 }
 0x8cc   :  { %v2423_v56 = vadd.f32 %v2352_v49, %v1693_v54  ;;  %v2356_v29 = vadd.f32 %v2355_v46, %v5836_v15  ;;  %2734 = vmatprep.mubr.bf16.mxu0 %v2483_v0 }
 0x8cd   :  { %v2424_v25 = vadd.f32 %v2354_v52, %v1694_v53  ;;  %2735 = vmatmul.mubr.bf16.vlgmr.msra.gmra.mrb[80].mxu0 %v2482_v50  ;;  %v2454_v21 = vmax.f32 %v2422_v31, 0.0 }
 0x8ce   :  { %v2425_v26 = vadd.f32 %v2356_v29, %v1695_v55  ;;  %v2455_v59 = vmax.f32 %v2423_v56, 0.0  ;;  %v6246_v55 = vmax.f32 %v5537_v16, 0.0 }
 0x8cf   :  { %v2456_v44 = vmax.f32 %v2424_v25, 0.0  ;;  %v6250_v25 = vmax.f32 %v5561_v22, 0.0 }
 0x8d0   :  { %v2457_v57 = vmax.f32 %v2425_v26, 0.0  ;;  %v2359_v9 = vpop.f32.mrb[104].mxu1 }
 0x8d1   :  { %v2360_v3 = vadd.f32 %v2359_v9, %v5833_v61  ;;  %v2361_v34 = vpop.f32.mrb[105].mxu1  ;;  %v2484_v45 = vpack.c.bf16 %v2456_v44, %v2454_v21  ;;  %v6251_v44 = vmax.f32 %v5567_v10, 0.0  ;;  %v6253_v10 = vmax.f32 %v5588_v62, 0.0 }
 0x8d2   :  { %v2362_v54 = vadd.f32 %v2361_v34, %v5836_v15  ;;  %v2363_v8 = vpop.f32.mrb[106].mxu1  ;;  %v2485_v32 = vpack.c.bf16 %v2457_v57, %v2455_v59  ;;  %v6252_v57 = vmax.f32 %v5570_v37, 0.0 }
 0x8d3   :  { %v2426_v53 = vadd.f32 %v2360_v3, %v6245_v51  ;;  %v2364_v12 = vadd.f32 %v2363_v8, %v5833_v61  ;;  %v2365_v2 = vpop.f32.mrb[107].mxu1 }
 0x8d4   :  { %v2427_v28 = vadd.f32 %v2362_v54, %v6246_v55  ;;  %v2366_v40 = vadd.f32 %v2365_v2, %v5836_v15  ;;  %2744 = vmatprep.mubr.bf16.mxu0 %v2485_v32 }
 0x8d5   :  { %v2428_v18 = vadd.f32 %v2364_v12, %v6247_v24  ;;  %2745 = vmatmul.mubr.bf16.gmra.mrb[84].mxu0 %v2484_v45  ;;  %v2458_v50 = vmax.f32 %v2426_v53, 0.0 }
 0x8d6   :  { %v2429_v30 = vadd.f32 %v2366_v40, %v6248_v19  ;;  %v2459_v11 = vmax.f32 %v2427_v28, 0.0  ;;  %v6254_v28 = vmax.f32 %v5585_v27, 0.0 }
 0x8d7   :  { %v2460_v7 = vmax.f32 %v2428_v18, 0.0  ;;  %v6255_v18 = vmax.f32 %v5591_v41, 0.0  ;;  %v6257_v41 = vmax.f32 %v5612_v13, 0.0 }
 0x8d8   :  { %v2461_v42 = vmax.f32 %v2429_v30, 0.0  ;;  %v2369_v49 = vpop.f32.mrb[108].mxu1  ;;  %v6256_v30 = vmax.f32 %v5594_v60, 0.0 }
 0x8d9   :  { %v2370_v39 = vadd.f32 %v2369_v49, %v5833_v61  ;;  %v2371_v0 = vpop.f32.mrb[109].mxu1  ;;  %v2486_v16 = vpack.c.bf16 %v2460_v7, %v2458_v50 }
 0x8da   :  { %v2372_v31 = vadd.f32 %v2371_v0, %v5836_v15  ;;  %v2373_v52 = vpop.f32.mrb[110].mxu1  ;;  %v2487_v46 = vpack.c.bf16 %v2461_v42, %v2459_v11 }
 0x8db   :  { %v2430_v56 = vadd.f32 %v2370_v39, %v6249_v4  ;;  %v2374_v29 = vadd.f32 %v2373_v52, %v5833_v61  ;;  %v2375_v58 = vpop.f32.mrb[111].mxu1 }
 0x8dc   :  { %v2431_v26 = vadd.f32 %v2372_v31, %v6250_v25  ;;  %v2376_v21 = vadd.f32 %v2375_v58, %v5836_v15  ;;  %2754 = vmatprep.mubr.bf16.mxu0 %v2487_v46  ;;  %v6259_v25 = vmax.f32 %v5615_v17, 0.0  ;;  %v6261_v17 = vmax.f32 %v5636_v14, 0.0 }
 0x8dd   :  { %v2432_v59 = vadd.f32 %v2374_v29, %v6251_v44  ;;  %2755 = vmatmul.mubr.bf16.gmra.mrb[88].mxu0 %v2486_v16  ;;  %v2462_v3 = vmax.f32 %v2430_v56, 0.0  ;;  %v6258_v56 = vmax.f32 %v5609_v20, 0.0 }
 0x8de   :  { %v2433_v9 = vadd.f32 %v2376_v21, %v6252_v57  ;;  %v2463_v6 = vmax.f32 %v2431_v26, 0.0  ;;  %v6260_v21 = vmax.f32 %v5618_v5, 0.0 }
 0x8df   :  { %v2464_v34 = vmax.f32 %v2432_v59, 0.0 }
 0x8e0   :  { %v2465_v45 = vmax.f32 %v2433_v9, 0.0  ;;  %v2379_v54 = vpop.f32.mrb[112].mxu1 }
 0x8e1   :  { %v2380_v8 = vadd.f32 %v2379_v54, %v5833_v61  ;;  %v2381_v32 = vpop.f32.mrb[113].mxu1  ;;  %v2488_v22 = vpack.c.bf16 %v2464_v34, %v2462_v3 }
 0x8e2   :  { %v2382_v51 = vadd.f32 %v2381_v32, %v5836_v15  ;;  %v2383_v53 = vpop.f32.mrb[114].mxu1  ;;  %v2489_v12 = vpack.c.bf16 %v2465_v45, %v2463_v6 }
 0x8e3   :  { %v2434_v2 = vadd.f32 %v2380_v8, %v6253_v10  ;;  %v2384_v55 = vadd.f32 %v2383_v53, %v5833_v61  ;;  %v2385_v37 = vpop.f32.mrb[115].mxu1  ;;  %v6263_v10 = vmax.f32 %v5639_v1, 0.0  ;;  %v6265_v1 = vmax.f32 %v5660_v35, 0.0 }
 0x8e4   :  { %v2435_v40 = vadd.f32 %v2382_v51, %v6254_v28  ;;  %v2386_v24 = vadd.f32 %v2385_v37, %v5836_v15  ;;  %2764 = vmatprep.mubr.bf16.mxu0 %v2489_v12  ;;  %v6262_v51 = vmax.f32 %v5633_v23, 0.0 }
 0x8e5   :  { %v2436_v19 = vadd.f32 %v2384_v55, %v6255_v18  ;;  %2765 = vmatmul.mubr.bf16.gmra.mrb[92].mxu0 %v2488_v22  ;;  %v2466_v7 = vmax.f32 %v2434_v2, 0.0  ;;  %v6264_v55 = vmax.f32 %v5642_v38, 0.0 }
 0x8e6   :  { %v2437_v50 = vadd.f32 %v2386_v24, %v6256_v30  ;;  %v2467_v62 = vmax.f32 %v2435_v40, 0.0 }
 0x8e7   :  { %v2468_v11 = vmax.f32 %v2436_v19, 0.0 }
 0x8e8   :  { %v2469_v42 = vmax.f32 %v2437_v50, 0.0  ;;  %v2389_v49 = vpop.f32.mrb[116].mxu1 }
 0x8e9   :  { %v2390_v39 = vadd.f32 %v2389_v49, %v5833_v61  ;;  %v2391_v0 = vpop.f32.mrb[117].mxu1  ;;  %v2490_v27 = vpack.c.bf16 %v2468_v11, %v2466_v7  ;;  %v6266_v49 = vmax.f32 %v5657_v43, 0.0  ;;  %v4321_v43 = vld [vmem:[#allocation14 + $0x78] sm:$0xff]  }
 0x8ea   :  { %v2392_v16 = vadd.f32 %v2391_v0, %v5836_v15  ;;  %v2393_v31 = vpop.f32.mrb[118].mxu1  ;;  %v2491_v52 = vpack.c.bf16 %v2469_v42, %v2467_v62  ;;  %3848 = vmatprep.subr.bf16.mxu1 %v4321_v43 }
 0x8eb   :  { %v2438_v46 = vadd.f32 %v2390_v39, %v6257_v41  ;;  %v2394_v4 = vadd.f32 %v2393_v31, %v5833_v61  ;;  %v2395_v60 = vpop.f32.mrb[119].mxu1  ;;  %v6268_v31 = vmax.f32 %v5666_v47, 0.0  ;;  %v4324_v47 = vld [vmem:[%s6159_s12 + $0x8] sm:$0xff]  }
 0x8ec   :  { %v2439_v29 = vadd.f32 %v2392_v16, %v6258_v56  ;;  %v2396_v58 = vadd.f32 %v2395_v60, %v5836_v15  ;;  %2774 = vmatprep.mubr.bf16.mxu0 %v2491_v52  ;;  %v4322_v56 = vld [vmem:[#allocation14 + $0x38] sm:$0xff]  }
 0x8ed   :  { %v2440_v26 = vadd.f32 %v2394_v4, %v6259_v25  ;;  %2775 = vmatmul.mubr.bf16.gmra.mrb[96].mxu0 %v2490_v27  ;;  %v2470_v59 = vmax.f32 %v2438_v46, 0.0  ;;  %v6267_v27 = vmax.f32 %v5663_v48, 0.0  ;;  %3849 = vmatpush3.bf16.msra.mxu1 %v4322_v56  ;;  %v4323_v48 = vld [vmem:[%s6159_s12] sm:$0xff]  }
 0x8ee   :  { %v2441_v44 = vadd.f32 %v2396_v58, %v6260_v21  ;;  %v2471_v13 = vmax.f32 %v2439_v29, 0.0  ;;  %4050 = vmatprep.subr.bf16.mxu0 %v4323_v48  ;;  %v4326_v29 = vld [vmem:[%s6159_s12 + $0x18] sm:$0xff]   ;;  %v4327_v58 = vld [vmem:[%s6159_s12 + $0x20] sm:$0xff]  }
 0x8ef   :  { %v2472_v57 = vmax.f32 %v2440_v26, 0.0  ;;  %4051 = vmatpush3.bf16.msra.mxu0 %v4323_v48  ;;  %v2530_v25 = vld [vmem:[%s6170_s23] sm:$0x3] }
 0x8f0   :  { %v2473_v9 = vmax.f32 %v2441_v44, 0.0  ;;  %v2399_v3 = vpop.f32.mrb[120].mxu1  ;;  %4052 = vmatprep.subr.bf16.mxu0 %v4324_v47  ;;  %v5953_v26 = vrot.slane %v2530_v25, %v5480_v63  ;;  %v5956_v21 = vrot.slane %v2530_v25, %v5474_v36 }
 0x8f1   :  { %v2400_v34 = vadd.f32 %v2399_v3, %v5833_v61  ;;  %v2401_v6 = vpop.f32.mrb[121].mxu1  ;;  %v2492_v20 = vpack.c.bf16 %v2472_v57, %v2470_v59 }
 0x8f2   :  { %v2402_v45 = vadd.f32 %v2401_v6, %v5836_v15  ;;  %v2403_v54 = vpop.f32.mrb[122].mxu1  ;;  %v2493_v8 = vpack.c.bf16 %v2473_v9, %v2471_v13 }
 0x8f3   :  { %v2442_v32 = vadd.f32 %v2400_v34, %v6261_v17  ;;  %v2404_v22 = vadd.f32 %v2403_v54, %v5833_v61  ;;  %v2405_v5 = vpop.f32.mrb[123].mxu1  ;;  %4053 = vmatpush3.bf16.msra.mxu0 %v4324_v47 }
 0x8f4   :  { %v2443_v53 = vadd.f32 %v2402_v45, %v6262_v51  ;;  %v2406_v12 = vadd.f32 %v2405_v5, %v5836_v15  ;;  %2784 = vmatprep.mubr.bf16.mxu0 %v2493_v8 }
 0x8f5   :  { %v2444_v2 = vadd.f32 %v2404_v22, %v6263_v10  ;;  %2785 = vmatmul.mubr.bf16.gmra.mrb[100].mxu0 %v2492_v20  ;;  %v2474_v28 = vmax.f32 %v2442_v32, 0.0 }
 0x8f6   :  { %v2445_v37 = vadd.f32 %v2406_v12, %v6264_v55  ;;  %v2475_v14 = vmax.f32 %v2443_v53, 0.0 }
 0x8f7   :  { %v2476_v40 = vmax.f32 %v2444_v2, 0.0 }
 0x8f8   :  { %v2477_v24 = vmax.f32 %v2445_v37, 0.0  ;;  %v2409_v18 = vpop.f32.mrb[124].mxu1 }
 0x8f9   :  { %v2410_v19 = vadd.f32 %v2409_v18, %v5833_v61  ;;  %v2411_v30 = vpop.f32.mrb[125].mxu1  ;;  %v2494_v23 = vpack.c.bf16 %v2476_v40, %v2474_v28 }
 0x8fa   :  { %v2412_v50 = vadd.f32 %v2411_v30, %v5836_v15  ;;  %v2413_v7 = vpop.f32.mrb[126].mxu1  ;;  %v2495_v11 = vpack.c.bf16 %v2477_v24, %v2475_v14 }
 0x8fb   :  { %v2446_v62 = vadd.f32 %v2410_v19, %v6265_v1  ;;  %v2414_v42 = vadd.f32 %v2413_v7, %v5833_v61  ;;  %v2415_v38 = vpop.f32.mrb[127].mxu1 }
 0x8fc   :  { %v2447_v39 = vadd.f32 %v2412_v50, %v6266_v49  ;;  %v2416_v0 = vadd.f32 %v2415_v38, %v5836_v15  ;;  %2794 = vmatprep.mubr.bf16.mxu0 %v2495_v11  ;;  %v4325_v15 = vld [vmem:[%s6159_s12 + $0x10] sm:$0xff]  }
 0x8fd   :  { %v2448_v16 = vadd.f32 %v2414_v42, %v6267_v27  ;;  %2795 = vmatmul.mubr.bf16.gmra.mrb[104].mxu0 %v2494_v23  ;;  %v2478_v41 = vmax.f32 %v2446_v62, 0.0  ;;  %4054 = vmatprep.subr.bf16.mxu0 %v4325_v15 }
 0x8fe   :  { %v2449_v52 = vadd.f32 %v2416_v0, %v6268_v31  ;;  %v2479_v35 = vmax.f32 %v2447_v39, 0.0  ;;  %4055 = vmatpush3.bf16.msra.mxu0 %v4325_v15 }
 0x8ff   :  { %v2480_v46 = vmax.f32 %v2448_v16, 0.0  ;;  %4056 = vmatprep.subr.bf16.mxu0 %v4326_v29 }
 0x900   :  { %v2481_v4 = vmax.f32 %v2449_v52, 0.0 }
 0x901   :  { %v2496_v60 = vpack.c.bf16 %v2480_v46, %v2478_v41 }
 0x902   :  { %v2497_v61 = vpack.c.bf16 %v2481_v4, %v2479_v35  ;;  %4057 = vmatpush3.bf16.msra.mxu0 %v4326_v29 }
 0x903   :  { %4058 = vmatprep.subr.bf16.mxu0 %v4327_v58 }
 0x904   :  { %2804 = vmatprep.mubr.bf16.mxu0 %v2497_v61 }
 0x905   :  { %2805 = vmatmul.mubr.bf16.gmra.mrb[108].mxu0 %v2496_v60 }
 0x906   :  { %4059 = vmatpush3.bf16.msra.mxu0 %v4327_v58 }
 0x9a0   :  { %v2736_v44 = vpop.f32.mrb[80].mxu0 }
 0x9a1   :  { %v2737_v59 = vadd.f32 %v2736_v44, %v5953_v26  ;;  %v2738_v57 = vpop.f32.mrb[81].mxu0 }
 0x9a2   :  { %v2739_v13 = vadd.f32 %v2738_v57, %v5956_v21  ;;  %v2740_v9 = vpop.f32.mrb[82].mxu0 }
 0x9a3   :  { %v2741_v3 = vadd.f32 %v2740_v9, %v5953_v26  ;;  %v2742_v34 = vpop.f32.mrb[83].mxu0  ;;  %v2815_v20 = vmax.f32 %v2737_v59, 0.0 }
 0x9a4   :  { %v2743_v6 = vadd.f32 %v2742_v34, %v5956_v21  ;;  %v2816_v54 = vmax.f32 %v2739_v13, 0.0 }
 0x9a5   :  { %v2817_v45 = vmax.f32 %v2741_v3, 0.0 }
 0x9a6   :  { %v2818_v8 = vmax.f32 %v2743_v6, 0.0 }
 0x9a7   :  { %v2847_v17 = vpack.c.bf16 %v2817_v45, %v2815_v20 }
 0x9a8   :  { %v2848_v32 = vpack.c.bf16 %v2818_v8, %v2816_v54  ;;  %v2746_v36 = vpop.f32.mrb[84].mxu0 }
 0x9a9   :  { %v2747_v22 = vadd.f32 %v2746_v36, %v5953_v26  ;;  %v2748_v5 = vpop.f32.mrb[85].mxu0 }
 0x9aa   :  { %v2749_v51 = vadd.f32 %v2748_v5, %v5956_v21  ;;  %v2750_v53 = vpop.f32.mrb[86].mxu0  ;;  %3030 = vmatprep.mubr.bf16.mxu1 %v2848_v32 }
 0x9ab   :  { %v2751_v12 = vadd.f32 %v2750_v53, %v5953_v26  ;;  %v2752_v10 = vpop.f32.mrb[87].mxu0  ;;  %3031 = vmatmul.mubr.bf16.vlgmr.msra.gmra.mrb[128].mxu1 %v2847_v17  ;;  %v2819_v55 = vmax.f32 %v2747_v22, 0.0 }
 0x9ac   :  { %v2753_v2 = vadd.f32 %v2752_v10, %v5956_v21  ;;  %v2820_v28 = vmax.f32 %v2749_v51, 0.0 }
 0x9ad   :  { %v2821_v37 = vmax.f32 %v2751_v12, 0.0 }
 0x9ae   :  { %v2822_v40 = vmax.f32 %v2753_v2, 0.0 }
 0x9af   :  { %v2849_v14 = vpack.c.bf16 %v2821_v37, %v2819_v55 }
 0x9b0   :  { %v2850_v24 = vpack.c.bf16 %v2822_v40, %v2820_v28  ;;  %v2756_v18 = vpop.f32.mrb[88].mxu0 }
 0x9b1   :  { %v2757_v19 = vadd.f32 %v2756_v18, %v5953_v26  ;;  %v2758_v30 = vpop.f32.mrb[89].mxu0 }
 0x9b2   :  { %v2759_v23 = vadd.f32 %v2758_v30, %v5956_v21  ;;  %v2760_v50 = vpop.f32.mrb[90].mxu0  ;;  %3038 = vmatprep.mubr.bf16.mxu1 %v2850_v24 }
 0x9b3   :  { %v2761_v7 = vadd.f32 %v2760_v50, %v5953_v26  ;;  %v2762_v11 = vpop.f32.mrb[91].mxu0  ;;  %3039 = vmatmul.mubr.bf16.gmra.mrb[132].mxu1 %v2849_v14  ;;  %v2823_v62 = vmax.f32 %v2757_v19, 0.0 }
 0x9b4   :  { %v2763_v1 = vadd.f32 %v2762_v11, %v5956_v21  ;;  %v2824_v38 = vmax.f32 %v2759_v23, 0.0 }
 0x9b5   :  { %v2825_v42 = vmax.f32 %v2761_v7, 0.0 }
 0x9b6   :  { %v2826_v49 = vmax.f32 %v2763_v1, 0.0 }
 0x9b7   :  { %v2851_v39 = vpack.c.bf16 %v2825_v42, %v2823_v62 }
 0x9b8   :  { %v2852_v0 = vpack.c.bf16 %v2826_v49, %v2824_v38  ;;  %v2766_v27 = vpop.f32.mrb[92].mxu0 }
 0x9b9   :  { %v2767_v16 = vadd.f32 %v2766_v27, %v5953_v26  ;;  %v2768_v31 = vpop.f32.mrb[93].mxu0 }
 0x9ba   :  { %v2769_v52 = vadd.f32 %v2768_v31, %v5956_v21  ;;  %v2770_v41 = vpop.f32.mrb[94].mxu0  ;;  %3046 = vmatprep.mubr.bf16.mxu1 %v2852_v0 }
 0x9bb   :  { %v2771_v46 = vadd.f32 %v2770_v41, %v5953_v26  ;;  %v2772_v35 = vpop.f32.mrb[95].mxu0  ;;  %3047 = vmatmul.mubr.bf16.gmra.mrb[136].mxu1 %v2851_v39  ;;  %v2827_v60 = vmax.f32 %v2767_v16, 0.0 }
 0x9bc   :  { %v2773_v4 = vadd.f32 %v2772_v35, %v5956_v21  ;;  %v2828_v43 = vmax.f32 %v2769_v52, 0.0 }
 0x9bd   :  { %v2829_v61 = vmax.f32 %v2771_v46, 0.0 }
 0x9be   :  { %v2830_v56 = vmax.f32 %v2773_v4, 0.0 }
 0x9bf   :  { %v2853_v48 = vpack.c.bf16 %v2829_v61, %v2827_v60 }
 0x9c0   :  { %v2854_v47 = vpack.c.bf16 %v2830_v56, %v2828_v43  ;;  %v2776_v15 = vpop.f32.mrb[96].mxu0  ;;  %v4328_v43 = vld [vmem:[%s6159_s12 + $0x28] sm:$0xff]  }
 0x9c1   :  { %v2777_v29 = vadd.f32 %v2776_v15, %v5953_v26  ;;  %v2778_v58 = vpop.f32.mrb[97].mxu0  ;;  %4060 = vmatprep.subr.bf16.mxu0 %v4328_v43 }
 0x9c2   :  { %v2779_v25 = vadd.f32 %v2778_v58, %v5956_v21  ;;  %v2780_v44 = vpop.f32.mrb[98].mxu0  ;;  %3054 = vmatprep.mubr.bf16.mxu1 %v2854_v47  ;;  %4061 = vmatpush3.bf16.msra.mxu0 %v4328_v43 }
 0x9c3   :  { %v2781_v59 = vadd.f32 %v2780_v44, %v5953_v26  ;;  %v2782_v57 = vpop.f32.mrb[99].mxu0  ;;  %3055 = vmatmul.mubr.bf16.gmra.mrb[140].mxu1 %v2853_v48  ;;  %v2831_v9 = vmax.f32 %v2777_v29, 0.0  ;;  %v6002_v48 = vld [vmem:[%s6171_s24] ss:$0 sm:$0xff] }
 0x9c4   :  { %v2783_v13 = vadd.f32 %v2782_v57, %v5956_v21  ;;  %v2832_v34 = vmax.f32 %v2779_v25, 0.0 }
 0x9c5   :  { %v2833_v3 = vmax.f32 %v2781_v59, 0.0 }
 0x9c6   :  { %v2834_v6 = vmax.f32 %v2783_v13, 0.0 }
 0x9c7   :  { %v2855_v20 = vpack.c.bf16 %v2833_v3, %v2831_v9 }
 0x9c8   :  { %v2856_v45 = vpack.c.bf16 %v2834_v6, %v2832_v34  ;;  %v2786_v54 = vpop.f32.mrb[100].mxu0 }
 0x9c9   :  { %v2787_v8 = vadd.f32 %v2786_v54, %v5953_v26  ;;  %v2788_v17 = vpop.f32.mrb[101].mxu0 }
 0x9ca   :  { %v2789_v32 = vadd.f32 %v2788_v17, %v5956_v21  ;;  %v2790_v36 = vpop.f32.mrb[102].mxu0  ;;  %3062 = vmatprep.mubr.bf16.mxu1 %v2856_v45 }
 0x9cb   :  { %v2791_v22 = vadd.f32 %v2790_v36, %v5953_v26  ;;  %v2792_v5 = vpop.f32.mrb[103].mxu0  ;;  %3063 = vmatmul.mubr.bf16.gmra.mrb[144].mxu1 %v2855_v20  ;;  %v2835_v53 = vmax.f32 %v2787_v8, 0.0 }
 0x9cc   :  { %v2793_v51 = vadd.f32 %v2792_v5, %v5956_v21  ;;  %v2836_v10 = vmax.f32 %v2789_v32, 0.0 }
 0x9cd   :  { %v2837_v12 = vmax.f32 %v2791_v22, 0.0 }
 0x9ce   :  { %v2838_v2 = vmax.f32 %v2793_v51, 0.0 }
 0x9cf   :  { %v2857_v55 = vpack.c.bf16 %v2837_v12, %v2835_v53 }
 0x9d0   :  { %v2858_v37 = vpack.c.bf16 %v2838_v2, %v2836_v10  ;;  %v2796_v28 = vpop.f32.mrb[104].mxu0 }
 0x9d1   :  { %v2797_v40 = vadd.f32 %v2796_v28, %v5953_v26  ;;  %v2798_v14 = vpop.f32.mrb[105].mxu0 }
 0x9d2   :  { %v2799_v24 = vadd.f32 %v2798_v14, %v5956_v21  ;;  %v2800_v18 = vpop.f32.mrb[106].mxu0  ;;  %3070 = vmatprep.mubr.bf16.mxu1 %v2858_v37 }
 0x9d3   :  { %v2801_v19 = vadd.f32 %v2800_v18, %v5953_v26  ;;  %v2802_v30 = vpop.f32.mrb[107].mxu0  ;;  %3071 = vmatmul.mubr.bf16.gmra.mrb[148].mxu1 %v2857_v55  ;;  %v2839_v50 = vmax.f32 %v2797_v40, 0.0 }
 0x9d4   :  { %v2803_v23 = vadd.f32 %v2802_v30, %v5956_v21  ;;  %v2840_v11 = vmax.f32 %v2799_v24, 0.0 }
 0x9d5   :  { %v2841_v7 = vmax.f32 %v2801_v19, 0.0 }
 0x9d6   :  { %v2842_v1 = vmax.f32 %v2803_v23, 0.0 }
 0x9d7   :  { %v2859_v62 = vpack.c.bf16 %v2841_v7, %v2839_v50 }
 0x9d8   :  { %v2860_v42 = vpack.c.bf16 %v2842_v1, %v2840_v11  ;;  %v2806_v38 = vpop.f32.mrb[108].mxu0 }
 0x9d9   :  { %v2807_v49 = vadd.f32 %v2806_v38, %v5953_v26  ;;  %v2808_v39 = vpop.f32.mrb[109].mxu0 }
 0x9da   :  { %v2809_v0 = vadd.f32 %v2808_v39, %v5956_v21  ;;  %v2810_v27 = vpop.f32.mrb[110].mxu0  ;;  %3078 = vmatprep.mubr.bf16.mxu1 %v2860_v42 }
 0x9db   :  { %v2811_v16 = vadd.f32 %v2810_v27, %v5953_v26  ;;  %v2812_v31 = vpop.f32.mrb[111].mxu0  ;;  %3079 = vmatmul.mubr.bf16.gmra.mrb[152].mxu1 %v2859_v62  ;;  %v2843_v41 = vmax.f32 %v2807_v49, 0.0  ;;  %v4329_v26 = vld [vmem:[%s6159_s12 + $0x30] sm:$0xff]  }
 0x9dc   :  { %v2813_v52 = vadd.f32 %v2812_v31, %v5956_v21  ;;  %v2844_v35 = vmax.f32 %v2809_v0, 0.0  ;;  %4062 = vmatprep.subr.bf16.mxu0 %v4329_v26  ;;  %v4330_v21 = vld [vmem:[%s6159_s12 + $0x38] sm:$0xff]  }
 0x9dd   :  { %v2845_v46 = vmax.f32 %v2811_v16, 0.0  ;;  %4063 = vmatpush3.bf16.msra.mxu0 %v4329_v26 }
 0x9de   :  { %v2846_v4 = vmax.f32 %v2813_v52, 0.0  ;;  %4064 = vmatprep.subr.bf16.mxu0 %v4330_v21 }
 0x9df   :  { %v2861_v60 = vpack.c.bf16 %v2845_v46, %v2843_v41 }
 0x9e0   :  { %v2862_v61 = vpack.c.bf16 %v2846_v4, %v2844_v35 }
 0x9e1   :  { %4065 = vmatpush3.bf16.msra.mxu0 %v4330_v21 }
 0x9e2   :  { %3086 = vmatprep.mubr.bf16.mxu1 %v2862_v61 }
 0x9e3   :  { %3087 = vmatmul.mubr.bf16.gmra.mrb[156].mxu1 %v2861_v60 }
 0xa7e   :  { %v3850_v56 = vpop.f32.mrb[128].mxu1 }
 0xa7f   :  { %v3851_v47 = vpop.f32.mrb[129].mxu1 }
 0xa80   :  { %v3852_v15 = vadd.f32 %v3851_v47, %v3850_v56  ;;  %v3853_v29 = vpop.f32.mrb[130].mxu1 }
 0xa81   :  { %v3854_v58 = vpop.f32.mrb[131].mxu1 }
 0xa82   :  { %v3033_v25 = vadd.f32 %v3852_v15, %v6002_v48  ;;  %v3855_v44 = vadd.f32 %v3854_v58, %v3853_v29 }
 0xa84   :  { %v3036_v59 = vadd.f32 %v3855_v44, %v6002_v48  ;;  %v3095_v57 = vmax.f32 %v3033_v25, 0.0 }
 0xa86   :  { %v3096_v13 = vmax.f32 %v3036_v59, 0.0  ;;  %v3856_v9 = vpop.f32.mrb[132].mxu1 }
 0xa87   :  { %v3857_v3 = vpop.f32.mrb[133].mxu1 }
 0xa88   :  { %v3858_v34 = vadd.f32 %v3857_v3, %v3856_v9  ;;  %v3859_v6 = vpop.f32.mrb[134].mxu1  ;;  %v3111_v20 = vpack.c.bf16 %v3096_v13, %v3095_v57 }
 0xa89   :  { %v3860_v45 = vpop.f32.mrb[135].mxu1 }
 0xa8a   :  { %v3041_v54 = vadd.f32 %v3858_v34, %v6002_v48  ;;  %v3861_v8 = vadd.f32 %v3860_v45, %v3859_v6  ;;  %4066 = vmatprep.mubr.bf16.mxu0 %v3111_v20 }
 0xa8c   :  { %v3044_v17 = vadd.f32 %v3861_v8, %v6002_v48  ;;  %v3097_v32 = vmax.f32 %v3041_v54, 0.0 }
 0xa8e   :  { %v3098_v36 = vmax.f32 %v3044_v17, 0.0  ;;  %v3862_v22 = vpop.f32.mrb[136].mxu1 }
 0xa8f   :  { %v3863_v5 = vpop.f32.mrb[137].mxu1 }
 0xa90   :  { %v3112_v51 = vpack.c.bf16 %v3098_v36, %v3097_v32  ;;  %v3864_v53 = vadd.f32 %v3863_v5, %v3862_v22  ;;  %v3865_v12 = vpop.f32.mrb[138].mxu1 }
 0xa91   :  { %v3866_v10 = vpop.f32.mrb[139].mxu1 }
 0xa92   :  { %v3049_v2 = vadd.f32 %v3864_v53, %v6002_v48  ;;  %v3867_v55 = vadd.f32 %v3866_v10, %v3865_v12  ;;  %4067 = vmatmul.mubr.bf16.vlgmr.msra.gmra.mrb[112].mxu0 %v3112_v51 }
 0xa94   :  { %v3052_v37 = vadd.f32 %v3867_v55, %v6002_v48  ;;  %v3099_v28 = vmax.f32 %v3049_v2, 0.0  ;;  %v6023_v2 = vld [vmem:[%s6172_s25] ss:$0 sm:$0xff]  ;;  %s4529_s25 = smov [#allocation15]  }
 0xa95   :  { %s3535_s11 = sshll.u32 %s4529_s25, 4  ;;  %s3536_s11 = int_to_ptr.vmem [resolvable:$true] %s3535_s11 }
 0xa96   :  { %v3100_v40 = vmax.f32 %v3052_v37, 0.0  ;;  %v3868_v14 = vpop.f32.mrb[140].mxu1  ;;  %s4485_s27 = scalar_lea.vmem %s3536_s11, 16  ;;  %s4489_s20 = scalar_lea.vmem %s3536_s11, 32 }
 0xa97   :  { %v3869_v24 = vpop.f32.mrb[141].mxu1  ;;  %p4486_p0 = scmp.ne.s32.totalorder %s3536_s11, %s4485_s27  ;;  %p4490_p1 = scmp.lt.s32.totalorder %s3536_s11, %s3536_s11 }
 0xa98   :  { %v3870_v18 = vadd.f32 %v3869_v24, %v3868_v14  ;;  %v3871_v19 = vpop.f32.mrb[142].mxu1  ;;  %v3113_v30 = vpack.c.bf16 %v3100_v40, %v3099_v28  ;;  %p4491_p2 = scmp.lt.s32.totalorder %s4489_s20, %s4485_s27 }
 0xa99   :  { %v3872_v23 = vpop.f32.mrb[143].mxu1 }
 0xa9a   :  { %v3057_v50 = vadd.f32 %v3870_v18, %v6002_v48  ;;  %v3873_v7 = vadd.f32 %v3872_v23, %v3871_v19  ;;  %4070 = vmatprep.mubr.bf16.mxu0 %v3113_v30  ;;  %p4492_p3 = por %p4491_p2, %p4490_p1 }
 0xa9c   :  { %v3060_v11 = vadd.f32 %v3873_v7, %v6002_v48  ;;  %v3101_v1 = vmax.f32 %v3057_v50, 0.0  ;;  %p4493_p4 = pnand %p4492_p3, %p4486_p0 }
 0xa9e   :  { %v3102_v62 = vmax.f32 %v3060_v11, 0.0  ;;  %v3874_v42 = vpop.f32.mrb[144].mxu1 }
 0xa9f   :  { %v3875_v38 = vpop.f32.mrb[145].mxu1 }
 0xaa0   :  { %v3876_v49 = vadd.f32 %v3875_v38, %v3874_v42  ;;  %v3877_v39 = vpop.f32.mrb[146].mxu1  ;;  %v3114_v0 = vpack.c.bf16 %v3102_v62, %v3101_v1 }
 0xaa1   :  { %v3878_v27 = vpop.f32.mrb[147].mxu1 }
 0xaa2   :  { %v3065_v16 = vadd.f32 %v3876_v49, %v6002_v48  ;;  %v3879_v31 = vadd.f32 %v3878_v27, %v3877_v39  ;;  %4071 = vmatmul.mubr.bf16.gmra.mrb[116].mxu0 %v3114_v0 }
 0xaa4   :  { %v3068_v52 = vadd.f32 %v3879_v31, %v6002_v48  ;;  %v3103_v41 = vmax.f32 %v3065_v16, 0.0 }
 0xaa6   :  { %v3104_v46 = vmax.f32 %v3068_v52, 0.0  ;;  %v3880_v35 = vpop.f32.mrb[148].mxu1 }
 0xaa7   :  { %v3881_v4 = vpop.f32.mrb[149].mxu1 }
 0xaa8   :  { %v3882_v60 = vadd.f32 %v3881_v4, %v3880_v35  ;;  %v3883_v61 = vpop.f32.mrb[150].mxu1  ;;  %v3115_v43 = vpack.c.bf16 %v3104_v46, %v3103_v41 }
 0xaa9   :  { %v3884_v26 = vpop.f32.mrb[151].mxu1 }
 0xaaa   :  { %v3073_v21 = vadd.f32 %v3882_v60, %v6002_v48  ;;  %v3885_v56 = vadd.f32 %v3884_v26, %v3883_v61  ;;  %4074 = vmatprep.mubr.bf16.mxu0 %v3115_v43 }
 0xaac   :  { %v3076_v47 = vadd.f32 %v3885_v56, %v6002_v48  ;;  %v3105_v15 = vmax.f32 %v3073_v21, 0.0 }
 0xaae   :  { %v3106_v29 = vmax.f32 %v3076_v47, 0.0  ;;  %v3886_v58 = vpop.f32.mrb[152].mxu1 }
 0xaaf   :  { %v3887_v25 = vpop.f32.mrb[153].mxu1 }
 0xab0   :  { %v3888_v44 = vadd.f32 %v3887_v25, %v3886_v58  ;;  %v3889_v59 = vpop.f32.mrb[154].mxu1  ;;  %v3116_v57 = vpack.c.bf16 %v3106_v29, %v3105_v15 }
 0xab1   :  { %v3890_v13 = vpop.f32.mrb[155].mxu1 }
 0xab2   :  { %v3081_v9 = vadd.f32 %v3888_v44, %v6002_v48  ;;  %v3891_v3 = vadd.f32 %v3890_v13, %v3889_v59  ;;  %4075 = vmatmul.mubr.bf16.gmra.mrb[120].mxu0 %v3116_v57 }
 0xab4   :  { %v3084_v34 = vadd.f32 %v3891_v3, %v6002_v48  ;;  %v3107_v6 = vmax.f32 %v3081_v9, 0.0 }
 0xab6   :  { %v3108_v20 = vmax.f32 %v3084_v34, 0.0  ;;  %v3892_v45 = vpop.f32.mrb[156].mxu1 }
 0xab7   :  { %v3893_v54 = vpop.f32.mrb[157].mxu1 }
 0xab8   :  { %v3894_v8 = vadd.f32 %v3893_v54, %v3892_v45  ;;  %v3895_v17 = vpop.f32.mrb[158].mxu1  ;;  %v3117_v32 = vpack.c.bf16 %v3108_v20, %v3107_v6 }
 0xab9   :  { %v3896_v36 = vpop.f32.mrb[159].mxu1 }
 0xaba   :  { %v3089_v22 = vadd.f32 %v3894_v8, %v6002_v48  ;;  %v3897_v5 = vadd.f32 %v3896_v36, %v3895_v17  ;;  %4078 = vmatprep.mubr.bf16.mxu0 %v3117_v32 }
 0xabc   :  { %v3092_v51 = vadd.f32 %v3897_v5, %v6002_v48  ;;  %v3109_v53 = vmax.f32 %v3089_v22, 0.0  ;;  %v6030_v48 = vld [vmem:[%s6269_s9] ss:$0 sm:$0xff] }
 0xabe   :  { %v3110_v12 = vmax.f32 %v3092_v51, 0.0  ;;  %v3374_v51 = vld [vmem:[#allocation2] sm:$0x1] }
 0xac0   :  { %v3118_v10 = vpack.c.bf16 %v3110_v12, %v3109_v53 }
 0xac2   :  { %4079 = vmatmul.mubr.bf16.gmra.mrb[124].mxu0 %v3118_v10 }
 0xb65   :  { %v4068_v55 = vpop.f32.mrb[112].mxu0 }
 0xb66   :  { %v3233_v37 = vadd.f32 %v4068_v55, %v6023_v2  ;;  %v3224_v28 = vpop.f32.mrb[113].mxu0 }
 0xb67   :  { %v3225_v40 = vadd.f32 %v6023_v2, %v3224_v28  ;;  %v4069_v14 = vpop.f32.mrb[114].mxu0 }
 0xb68   :  { %v3289_v24 = vmax.f32 %v3233_v37, 0.0  ;;  %v3236_v18 = vadd.f32 %v4069_v14, %v6023_v2  ;;  %v3227_v19 = vpop.f32.mrb[115].mxu0 }
 0xb69   :  { %v3287_v30 = vmax.f32 %v3225_v40, 0.0  ;;  %v3228_v23 = vadd.f32 %v6023_v2, %v3227_v19 }
 0xb6a   :  { %v3290_v50 = vmax.f32 %v3236_v18, 0.0  ;;  %v3312_v7 = vmul.f32 %v6030_v48, %v3289_v24 }
 0xb6b   :  { %v3288_v11 = vmax.f32 %v3228_v23, 0.0  ;;  %v3310_v1 = vmul.f32 %v6030_v48, %v3287_v30 }
 0xb6c   :  { %v3332_v62 = vsel %vm537_vm2, %v3312_v7, 0.0  ;;  %v3313_v42 = vmul.f32 %v6030_v48, %v3290_v50 }
 0xb6d   :  { %3333 = vadd.xlane.f32.xlu1 %v3332_v62  ;;  %v3326_v38 = vsel %vm537_vm2, %v3310_v1, 0.0  ;;  %v3311_v49 = vmul.f32 %v6030_v48, %v3288_v11 }
 0xb6e   :  { %3327 = vadd.xlane.f32.xlu0 %v3326_v38  ;;  %v3335_v39 = vsel %vm537_vm2, %v3313_v42, 0.0 }
 0xb6f   :  { %v3329_v0 = vsel %vm537_vm2, %v3311_v49, 0.0 }
 0xb71   :  { %3336 = vadd.xlane.f32.xlu1 %v3335_v39 }
 0xb72   :  { %3330 = vadd.xlane.f32.xlu0 %v3329_v0 }
 0xb75   :  { %v4072_v27 = vpop.f32.mrb[116].mxu0 }
 0xb76   :  { %v3249_v16 = vadd.f32 %v4072_v27, %v6023_v2  ;;  %v3240_v31 = vpop.f32.mrb[117].mxu0 }
 0xb77   :  { %v3241_v52 = vadd.f32 %v6023_v2, %v3240_v31  ;;  %v4073_v41 = vpop.f32.mrb[118].mxu0 }
 0xb78   :  { %v3293_v46 = vmax.f32 %v3249_v16, 0.0  ;;  %v3252_v35 = vadd.f32 %v4073_v41, %v6023_v2  ;;  %v3243_v4 = vpop.f32.mrb[119].mxu0 }
 0xb79   :  { %v3291_v60 = vmax.f32 %v3241_v52, 0.0  ;;  %v3244_v61 = vadd.f32 %v6023_v2, %v3243_v4 }
 0xb7a   :  { %v3316_v43 = vmul.f32 %v6030_v48, %v3293_v46  ;;  %v3294_v21 = vmax.f32 %v3252_v35, 0.0 }
 0xb7b   :  { %v3292_v26 = vmax.f32 %v3244_v61, 0.0  ;;  %v3314_v47 = vmul.f32 %v6030_v48, %v3291_v60  ;;  %v6270_v60 = vlaneseq }
 0xb7c   :  { %v3344_v56 = vsel %vm537_vm2, %v3316_v43, 0.0  ;;  %v3317_v25 = vmul.f32 %v6030_v48, %v3294_v21 }
 0xb7d   :  { %3345 = vadd.xlane.f32.xlu0 %v3344_v56  ;;  %v3315_v15 = vmul.f32 %v6030_v48, %v3292_v26  ;;  %v3338_v58 = vsel %vm537_vm2, %v3314_v47, 0.0  ;;  %v6079_v61 = vand.u32 127, %v6270_v60 }
 0xb7e   :  { %v3347_v44 = vsel %vm537_vm2, %v3317_v25, 0.0 }
 0xb7f   :  { %v3341_v29 = vsel %vm537_vm2, %v3315_v15, 0.0  ;;  %v3422_v21 = vadd.s32 4294967288, %v6079_v61  ;;  %v3429_v56 = vadd.s32 4294967280, %v6079_v61  ;;  %v3520_v60 = vadd.s32 4294967176, %v6079_v61 }
 0xb80   :  { %3342 = vadd.xlane.f32.xlu1 %v3341_v29 }
 0xb81   :  { %3339 = vadd.xlane.f32.xlu0 %v3338_v58  ;;  %v3420_v58 = vsub.s32 %v6079_v61, %v5468_v33  ;;  %v3425_v25 = vsub.s32 %v3422_v21, %v5468_v33 }
 0xb85   :  { %v4076_v59 = vpop.f32.mrb[120].mxu0  ;;  %3348 = vadd.xlane.f32.xlu0 %v3347_v44 }
 0xb86   :  { %v3265_v57 = vadd.f32 %v4076_v59, %v6023_v2  ;;  %v3256_v13 = vpop.f32.mrb[121].mxu0  ;;  %v3432_v59 = vsub.s32 %v3429_v56, %v5468_v33 }
 0xb87   :  { %v3257_v9 = vadd.f32 %v6023_v2, %v3256_v13  ;;  %v4077_v3 = vpop.f32.mrb[122].mxu0  ;;  %v3436_v13 = vadd.s32 4294967272, %v6079_v61 }
 0xb88   :  { %v3297_v34 = vmax.f32 %v3265_v57, 0.0  ;;  %v3268_v6 = vadd.f32 %v4077_v3, %v6023_v2  ;;  %v3259_v20 = vpop.f32.mrb[123].mxu0 }
 0xb89   :  { %v3295_v45 = vmax.f32 %v3257_v9, 0.0  ;;  %v3260_v54 = vadd.f32 %v6023_v2, %v3259_v20 }
 0xb8a   :  { %v3298_v8 = vmax.f32 %v3268_v6, 0.0  ;;  %v3320_v17 = vmul.f32 %v6030_v48, %v3297_v34  ;;  %v3443_v34 = vadd.s32 4294967264, %v6079_v61 }
 0xb8b   :  { %v3296_v32 = vmax.f32 %v3260_v54, 0.0  ;;  %v3318_v22 = vmul.f32 %v6030_v48, %v3295_v45  ;;  %v3439_v45 = vsub.s32 %v3436_v13, %v5468_v33 }
 0xb8c   :  { %v3356_v36 = vsel %vm537_vm2, %v3320_v17, 0.0  ;;  %v3321_v5 = vmul.f32 %v6030_v48, %v3298_v8  ;;  %v3450_v8 = vadd.s32 4294967256, %v6079_v61 }
 0xb8d   :  { %3357 = vadd.xlane.f32.xlu0 %v3356_v36  ;;  %v3350_v53 = vsel %vm537_vm2, %v3318_v22, 0.0  ;;  %v3319_v12 = vmul.f32 %v6030_v48, %v3296_v32  ;;  %v3446_v36 = vsub.s32 %v3443_v34, %v5468_v33 }
 0xb8f   :  { %v3353_v10 = vsel %vm537_vm2, %v3319_v12, 0.0  ;;  %v3453_v12 = vsub.s32 %v3450_v8, %v5468_v33 }
 0xb91   :  { %3377 = vperm.xlu1 %4095, %v3374_v51   ;;  %3351 = vadd.xlane.f32.xlu0 %v3350_v53 }
 0xb95   :  { %v4080_v55 = vpop.f32.mrb[124].mxu0  ;;  %3354 = vadd.xlane.f32.xlu0 %v3353_v10 }
 0xb96   :  { %v3281_v37 = vadd.f32 %v4080_v55, %v6023_v2  ;;  %v3272_v28 = vpop.f32.mrb[125].mxu0  ;;  %v3464_v55 = vadd.s32 4294967240, %v6079_v61 }
 0xb97   :  { %v3273_v40 = vadd.f32 %v6023_v2, %v3272_v28  ;;  %v4081_v14 = vpop.f32.mrb[126].mxu0 }
 0xb98   :  { %v3301_v24 = vmax.f32 %v3281_v37, 0.0  ;;  %v3275_v18 = vpop.f32.mrb[127].mxu0  ;;  %v3284_v50 = vadd.f32 %v4081_v14, %v6023_v2  ;;  %v3471_v37 = vadd.s32 4294967232, %v6079_v61 }
 0xb99   :  { %v3299_v19 = vmax.f32 %v3273_v40, 0.0  ;;  %v3276_v30 = vadd.f32 %v6023_v2, %v3275_v18  ;;  %v3359_v2 = vsel %vm537_vm2, %v3321_v5, 0.0  ;;  %v3457_v5 = vadd.s32 4294967248, %v6079_v61 }
 0xb9a   :  { %v3324_v23 = vmul.f32 %v6030_v48, %v3301_v24  ;;  %v3302_v62 = vmax.f32 %v3284_v50, 0.0  ;;  %v3478_v40 = vadd.s32 4294967224, %v6079_v61 }
 0xb9b   :  { %v3300_v7 = vmax.f32 %v3276_v30, 0.0  ;;  %v3322_v1 = vmul.f32 %v6030_v48, %v3299_v19  ;;  %v3460_v18 = vsub.s32 %v3457_v5, %v5468_v33  ;;  %v3467_v30 = vsub.s32 %v3464_v55, %v5468_v33 }
 0xb9c   :  { %v3368_v11 = vsel %vm537_vm2, %v3324_v23, 0.0  ;;  %v3325_v39 = vmul.f32 %v6030_v48, %v3302_v62  ;;  %v3474_v23 = vsub.s32 %v3471_v37, %v5468_v33 }
 0xb9d   :  { %3369 = vadd.xlane.f32.xlu0 %v3368_v11  ;;  %v3362_v42 = vsel %vm537_vm2, %v3322_v1, 0.0  ;;  %v3323_v38 = vmul.f32 %v6030_v48, %v3300_v7  ;;  %v3481_v1 = vsub.s32 %v3478_v40, %v5468_v33 }
 0xb9e   :  { %v3371_v0 = vsel %vm537_vm2, %v3325_v39, 0.0  ;;  %v3492_v39 = vadd.s32 4294967208, %v6079_v61 }
 0xb9f   :  { %v3365_v49 = vsel %vm537_vm2, %v3323_v38, 0.0  ;;  %v3485_v38 = vadd.s32 4294967216, %v6079_v61 }
 0xba1   :  { %3363 = vadd.xlane.f32.xlu0 %v3362_v42 }
 0xba5   :  { %3366 = vadd.xlane.f32.xlu0 %v3365_v49 }
 0xba9   :  { %3372 = vadd.xlane.f32.xlu0 %v3371_v0 }
 0xbb5   :  { %3360 = vadd.xlane.f32.xlu1 %v3359_v2 }
 0xbfa   :  { %v3334_v31 = vpop.xlane.xlu1 %3333 }
 0xbfb   :  { %v3328_v27 = vpop.xlane.xlu0 %3327 }
 0xbfe   :  { %v3337_v41 = vpop.xlane.xlu1 %3336 }
 0xbff   :  { %v3331_v16 = vpop.xlane.xlu0 %3330 }
 0xc0a   :  { %v3346_v52 = vpop.xlane.xlu0 %3345 }
 0xc0d   :  { %v3343_v35 = vpop.xlane.xlu1 %3342 }
 0xc0e   :  { %v3340_v46 = vpop.xlane.xlu0 %3339 }
 0xc11   :  { %v3378_v43 = vpop.permute.xlu1 %3377 }
 0xc12   :  { %v3349_v4 = vpop.xlane.xlu0 %3348  ;;  %v6084_v26 = vrot.slane %v3378_v43, %v5480_v63  ;;  %v3495_v43 = vsub.s32 %v3492_v39, %v5468_v33 }
 0xc14   :  { %v3384_v15 = vadd.f32 %v6084_v26, %v3328_v27  ;;  %v3385_v29 = vadd.f32 %v6084_v26, %v3331_v16  ;;  %v3386_v44 = vadd.f32 %v6084_v26, %v3334_v31  ;;  %v3387_v6 = vadd.f32 %v6084_v26, %v3337_v41 }
 0xc15   :  { %v3388_v17 = vadd.f32 %v6084_v26, %v3340_v46  ;;  %v3389_v51 = vadd.f32 %v6084_v26, %v3343_v35  ;;  %v3390_v14 = vadd.f32 %v6084_v26, %v3346_v52  ;;  %v3391_v11 = vadd.f32 %v6084_v26, %v3349_v4 }
 0xc16   :  { %v3421_v63 = vrot.slane %v3384_v15, %v3420_v58  ;;  %v3426_v57 = vrot.slane %v3385_v29, %v3425_v25  ;;  %v3433_v3 = vrot.slane %v3386_v44, %v3432_v59  ;;  %v3440_v22 = vrot.slane %v3387_v6, %v3439_v45 }
 0xc17   :  { %v3447_v10 = vrot.slane %v3388_v17, %v3446_v36  ;;  %v3454_v19 = vrot.slane %v3389_v51, %v3453_v12  ;;  %v3461_v42 = vrot.slane %v3390_v14, %v3460_v18  ;;  %v3499_v27 = vadd.s32 4294967200, %v6079_v61 }
 0xc18   :  { %v3428_v20 = vsel %vm3427_vm3, %v3426_v57, %v3421_v63  ;;  %v3468_v16 = vrot.slane %v3391_v11, %v3467_v30  ;;  %v3506_v52 = vadd.s32 4294967192, %v6079_v61  ;;  %v3488_v41 = vsub.s32 %v3485_v38, %v5468_v33 }
 0xc19   :  { %v3435_v32 = vsel %vm3434_vm4, %v3433_v3, %v3428_v20  ;;  %v3513_v35 = vadd.s32 4294967184, %v6079_v61  ;;  %v3502_v56 = vsub.s32 %v3499_v27, %v5468_v33  ;;  %v3523_v57 = vsub.s32 %v3520_v60, %v5468_v33 }
 0xc1a   :  { %v6081_v48 = vpop.xlane.xlu0 %3357  ;;  %v3442_v53 = vsel %vm3441_vm5, %v3440_v22, %v3435_v32  ;;  %v3509_v25 = vsub.s32 %v3506_v52, %v5468_v33 }
 0xc1b   :  { %v3449_v24 = vsel %vm3448_vm6, %v3447_v10, %v3442_v53  ;;  %v3394_v46 = vadd.f32 %v6084_v26, %v6081_v48  ;;  %v3516_v61 = vsub.s32 %v3513_v35, %v5468_v33 }
 0xc1c   :  { %v3456_v7 = vsel %vm3455_vm7, %v3454_v19, %v3449_v24 }
 0xc1d   :  { %v3463_v0 = vsel %vm3462_vm8, %v3461_v42, %v3456_v7  ;;  %v3489_v59 = vrot.slane %v3394_v46, %v3488_v41 }
 0xc1e   :  { %v3352_v47 = vpop.xlane.xlu0 %3351  ;;  %v3470_v4 = vsel %vm3469_vm9, %v3468_v16, %v3463_v0 }
 0xc1f   :  { %v3392_v50 = vadd.f32 %v6084_v26, %v3352_v47 }
 0xc21   :  { %v3475_v2 = vrot.slane %v3392_v50, %v3474_v23 }
 0xc22   :  { %v3355_v9 = vpop.xlane.xlu0 %3354 }
 0xc23   :  { %v3393_v62 = vadd.f32 %v6084_v26, %v3355_v9  ;;  %v3477_v21 = vsel %vm3476_vm10, %v3475_v2, %v3470_v4 }
 0xc25   :  { %v3482_v31 = vrot.slane %v3393_v62, %v3481_v1 }
 0xc27   :  { %v3484_v58 = vsel %vm3483_vm11, %v3482_v31, %v3477_v21 }
 0xc28   :  { %v3491_v34 = vsel %vm3490_vm12, %v3489_v59, %v3484_v58 }
 0xc2a   :  { %v3370_v54 = vpop.xlane.xlu0 %3369 }
 0xc2b   :  { %v3398_v63 = vadd.f32 %v6084_v26, %v3370_v54 }
 0xc2d   :  { %v3517_v45 = vrot.slane %v3398_v63, %v3516_v61 }
 0xc2e   :  { %v3364_v28 = vpop.xlane.xlu0 %3363 }
 0xc2f   :  { %v3396_v47 = vadd.f32 %v6084_v26, %v3364_v28 }
 0xc31   :  { %v3503_v3 = vrot.slane %v3396_v47, %v3502_v56 }
 0xc32   :  { %v3367_v49 = vpop.xlane.xlu0 %3366 }
 0xc33   :  { %v3397_v48 = vadd.f32 %v6084_v26, %v3367_v49 }
 0xc35   :  { %v3510_v6 = vrot.slane %v3397_v48, %v3509_v25 }
 0xc36   :  { %v3373_v15 = vpop.xlane.xlu0 %3372 }
 0xc37   :  { %v3399_v13 = vadd.f32 %v6084_v26, %v3373_v15 }
 0xc39   :  { %v3524_v17 = vrot.slane %v3399_v13, %v3523_v57 }
 0xc42   :  { %v3361_v29 = vpop.xlane.xlu1 %3360 }
 0xc43   :  { %v3395_v44 = vadd.f32 %v6084_v26, %v3361_v29 }
 0xc45   :  { %v3496_v9 = vrot.slane %v3395_v44, %v3495_v43 }
 0xc47   :  { %v3498_v20 = vsel %vm3497_vm13, %v3496_v9, %v3491_v34 }
 0xc48   :  { %v3505_v8 = vsel %vm3504_vm14, %v3503_v3, %v3498_v20 }
 0xc49   :  { %v3512_v54 = vsel %vm3511_vm15, %v3510_v6, %v3505_v8 }
 0xc4a   :  { %v3519_v32 = vsel %vm3518_vm0, %v3517_v45, %v3512_v54 }
 0xc4b   :  { %v3526_v33 = vsel %vm3525_vm1, %v3524_v17, %v3519_v32 }
 0xc4c   :  { %3528 = vst [vmem:[#allocation15] sm:$0x1] %v3526_v33 }
 0xc4d   :  { %4496 = shalt.err (!%p4493_p4)
}
 0xc4e   :  { %s6271_s22 = sld [smem:[#allocation34_spill]] }
 0xc54   :  { %s4497_s0 = scalar_lea.hbm %s6271_s22, 16 }
 0xc55   :  { %p4498_p5 = scmp.ne.s32.totalorder %s6271_s22, %s4497_s0  ;;  %p4501_p6 = scmp.lt.u32.totalorder %s4497_s0, %s6271_s22 }
 0xc57   :  { %p4503_p7 = pnand %p4501_p6, %p4498_p5 }
 0xc59   :  { %4506 = shalt.err (!%p4503_p7)
}
 0xc5a   :  { %3538 = dma.vmem_to_hbm [thread:$0]  %s3536_s11, 16, %s6271_s22, [#allocation5]  }
 0xc5b   :  { %4515 = dma.done.wait [#allocation5], 16  }
 0xc5c   :  { %4516 = vsyncadd [#allocation5], 4294967280 }
 0xc5d   :  { %3542 = vsyncpa [#allocation4], 1 }
 0xc5e   :  { %3543 = vsyncpa [#allocation7], 1 }
 0xc5f   :  { %3544 = vsyncpa [#allocation10], 1 }
 0xc60   :  { %3545 = vsyncpa [#allocation13], 1 }
 0xc61   :  { %3546 = vsyncpa [#allocation5], 1 }

</bundles_post_ra>
